<compile_context>
chip_gen: v7x
topology: tpu7x:2x2x1
jax: 0.10.0
libtpu: 0.0.40
codegen_flags: <defaults>
</compile_context>

<pallas_src>
import functools

import jax
import jax.numpy as jnp
from jax.experimental import pallas as pl
from jax.experimental.pallas import tpu as pltpu


LANE = 128
SUBLANE = 8
VMEM_LIMIT = 32 * 1024 * 1024


def _round_up(x, m):
    return (x + m - 1) // m * m


# ----------------------------------------------------------------------------
# Fused kernel:
#   h      = relu(A @ (X W1) + b1); h = relu(A @ (h W2) + b2); h = relu(A @ (h W3) + b3)
#   pooled = P @ h                                  (global mean pool as matmul)
#   xt     = relu(pooled @ Wg1 + bg1); xt = xt @ Wg2 + bg2
#   xc     = relu(fp @ Wfc1_fp + xt @ Wfc1_xt + bfc1)     (== concat + fc1)
#   xc     = relu(xc @ Wfc2 + bfc2);   out = xc @ Wout + bout
# ----------------------------------------------------------------------------
def _fused_gnn_kernel(a_ref, p_ref, x_ref, fp_ref,
                      w1_ref, b1_ref, w2_ref, b2_ref, w3_ref, b3_ref,
                      wg1_ref, bg1_ref, wg2_ref, bg2_ref,
                      wfc1a_ref, wfc1b_ref, bfc1_ref,
                      wfc2_ref, bfc2_ref, wout_ref, bout_ref,
                      o_ref):
    bf16 = jnp.bfloat16
    a = a_ref[...]                                   # (N, N) bf16, read once

    def gcn(h_bf16, w_ref, b_ref):
        # out_dim <= in_dim for layers 2/3, so right-multiply by W first.
        xw = jnp.dot(h_bf16, w_ref[...], preferred_element_type=jnp.float32)
        hh = jnp.dot(a, xw.astype(bf16), preferred_element_type=jnp.float32)
        return jnp.maximum(hh + b_ref[...], 0.0)     # f32 epilogue

    h = gcn(x_ref[...], w1_ref, b1_ref)
    h = gcn(h.astype(bf16), w2_ref, b2_ref)
    h = gcn(h.astype(bf16), w3_ref, b3_ref)

    pooled = jnp.dot(p_ref[...], h.astype(bf16),
                     preferred_element_type=jnp.float32)        # (Bp, 320) f32

    def lin(x_f32, w_ref, b_ref, relu):
        y = jnp.dot(x_f32.astype(bf16), w_ref[...],
                    preferred_element_type=jnp.float32)
        y = y + b_ref[...]
        return jnp.maximum(y, 0.0) if relu else y

    xt = lin(pooled, wg1_ref, bg1_ref, True)                    # (Bp, 1024)
    xt = lin(xt, wg2_ref, bg2_ref, False)                       # (Bp, OD)
    xc = (jnp.dot(fp_ref[...], wfc1a_ref[...],
                  preferred_element_type=jnp.float32)
          + jnp.dot(xt.astype(bf16), wfc1b_ref[...],
                    preferred_element_type=jnp.float32)
          + bfc1_ref[...])
    xc = jnp.maximum(xc, 0.0)                                   # (Bp, 1024)
    xc = lin(xc, wfc2_ref, bfc2_ref, True)                      # (Bp, 512)
    out = lin(xc, wout_ref, bout_ref, False)                    # (Bp, Npad)
    o_ref[...] = out.astype(o_ref.dtype)


def fused_gnn_predictor(a_norm, pool_mat, x, fp, prep):
    n = a_norm.shape[0]
    bp = pool_mat.shape[0]
    f0 = x.shape[1]
    f1, f2, f3 = prep["w1"].shape[1], prep["w2"].shape[1], prep["w3"].shape[1]
    d_g1, d_g2 = prep["wg1"].shape[1], prep["wg2"].shape[1]
    d_fp, d_fc1 = fp.shape[1], prep["wfc1_xt"].shape[1]
    d_fc2, d_out = prep["wfc2"].shape[1], prep["wout"].shape[1]

    flops = (2 * n * (f0 * f1 + f1 * f2 + f2 * f3)
             + 2 * n * n * (f1 + f2 + f3)
             + 2 * bp * n * f3
             + 2 * bp * (f3 * d_g1 + d_g1 * d_g2 + d_fp * d_fc1 + d_g2 * d_fc1
                         + d_fc1 * d_fc2 + d_fc2 * d_out))

    args = [a_norm, pool_mat, x, fp,
            prep["w1"], prep["b1"], prep["w2"], prep["b2"],
            prep["w3"], prep["b3"],
            prep["wg1"], prep["bg1"], prep["wg2"], prep["bg2"],
            prep["wfc1_fp"], prep["wfc1_xt"], prep["bfc1"],
            prep["wfc2"], prep["bfc2"], prep["wout"], prep["bout"]]

    bytes_accessed = (sum(a.size * a.dtype.itemsize for a in args)
                      + bp * d_out * 4)

    in_specs = [pl.BlockSpec(a.shape, lambda i: (0, 0)) for a in args]

    return pl.pallas_call(
        _fused_gnn_kernel,
        out_shape=jax.ShapeDtypeStruct((bp, d_out), jnp.float32),
        grid=(1,),
        in_specs=in_specs,
        out_specs=pl.BlockSpec((bp, d_out), lambda i: (0, 0)),
        compiler_params=pltpu.CompilerParams(
            dimension_semantics=("arbitrary",),
            vmem_limit_bytes=VMEM_LIMIT),
        cost_estimate=pl.CostEstimate(flops=int(flops), transcendentals=0,
                                      bytes_accessed=int(bytes_accessed)),
    )(*args)


# ----------------------------------------------------------------------------
# Glue: GCN normalization, pooling matrix, parameter init / one-time prep
# ----------------------------------------------------------------------------
def build_normalized_adjacency(edge_index, n_nodes):
    """Dense D^{-1/2}(A + I)D^{-1/2} (PyG GCNConv normalization)."""
    src, dst = edge_index[0], edge_index[1]
    a = jnp.zeros((n_nodes, n_nodes), jnp.float32).at[dst, src].set(1.0)
    a_hat = a + jnp.eye(n_nodes, dtype=jnp.float32)
    deg = a_hat.sum(axis=1)
    d_inv_sqrt = jax.lax.rsqrt(deg)
    return d_inv_sqrt[:, None] * a_hat * d_inv_sqrt[None, :]


def build_mean_pool_matrix(batch, n_graphs):
    """P[b, i] = 1/|graph b| if node i belongs to graph b (global_mean_pool)."""
    onehot = (batch[None, :] == jnp.arange(n_graphs)[:, None]).astype(jnp.float32)
    counts = jnp.maximum(onehot.sum(axis=1, keepdims=True), 1.0)
    return onehot / counts


def _linear_params(key, f_in, f_out):
    kw, kb = jax.random.split(key)
    bound = 1.0 / jnp.sqrt(jnp.float32(f_in))
    w = jax.random.uniform(kw, (f_in, f_out), jnp.float32, -bound, bound)
    b = jax.random.uniform(kb, (f_out,), jnp.float32, -bound, bound)
    return w, b


def init_params(key, num_features_pro, output_dim, n_output):
    keys = jax.random.split(key, 8)
    p = {}
    p["w_conv1"], p["b_conv1"] = _linear_params(keys[0], num_features_pro, num_features_pro)
    p["w_conv2"], p["b_conv2"] = _linear_params(keys[1], num_features_pro, 640)
    p["w_conv3"], p["b_conv3"] = _linear_params(keys[2], 640, 320)
    p["w_g1"], p["b_g1"] = _linear_params(keys[3], 320, 1024)
    p["w_g2"], p["b_g2"] = _linear_params(keys[4], 1024, output_dim)
    p["w_fc1"], p["b_fc1"] = _linear_params(keys[5], 193, 1024)
    p["w_fc2"], p["b_fc2"] = _linear_params(keys[6], 1024, 512)
    p["w_out"], p["b_out"] = _linear_params(keys[7], 512, n_output)
    return p


def prepare_params(params, fp_dim, n_output):
    """One-time weight prep: bf16 casts, fc1 split, lane-padded output head."""
    bf16 = jnp.bfloat16
    fp_pad_dim = _round_up(fp_dim, LANE)
    n_out_pad = _round_up(max(n_output, LANE), LANE)

    w_fc1 = params["w_fc1"]
    w_fc1_fp = jnp.zeros((fp_pad_dim, w_fc1.shape[1]),
                         jnp.float32).at[:fp_dim].set(w_fc1[:fp_dim])
    w_fc1_xt = w_fc1[fp_dim:]

    w_out, b_out = params["w_out"], params["b_out"]
    w_out_pad = jnp.zeros((w_out.shape[0], n_out_pad),
                          jnp.float32).at[:, :n_output].set(w_out)
    b_out_pad = jnp.zeros((n_out_pad,), jnp.float32).at[:n_output].set(b_out)

    return {
        "w1": params["w_conv1"].astype(bf16), "b1": params["b_conv1"].reshape(1, -1),
        "w2": params["w_conv2"].astype(bf16), "b2": params["b_conv2"].reshape(1, -1),
        "w3": params["w_conv3"].astype(bf16), "b3": params["b_conv3"].reshape(1, -1),
        "wg1": params["w_g1"].astype(bf16), "bg1": params["b_g1"].reshape(1, -1),
        "wg2": params["w_g2"].astype(bf16), "bg2": params["b_g2"].reshape(1, -1),
        "wfc1_fp": w_fc1_fp.astype(bf16), "wfc1_xt": w_fc1_xt.astype(bf16),
        "bfc1": params["b_fc1"].reshape(1, -1),
        "wfc2": params["w_fc2"].astype(bf16), "bfc2": params["b_fc2"].reshape(1, -1),
        "wout": w_out_pad.astype(bf16), "bout": b_out_pad.reshape(1, -1),
    }


# ----------------------------------------------------------------------------
# Forward pass (1 fused pallas_call)
# ----------------------------------------------------------------------------
@functools.partial(jax.jit, static_argnames=("n_output",))
def gnn_predictor_forward(prep, pro_x, a_norm, pool_mat, fp_x, n_output=1):
    bf16 = jnp.bfloat16
    b = pool_mat.shape[0]
    bp = _round_up(max(b, SUBLANE), SUBLANE)          # sublane-fill the batch

    pool_pad = jnp.zeros((bp, pool_mat.shape[1]), jnp.float32).at[:b].set(pool_mat)

    fp_dim = fp_x.shape[1]
    fp_pad_dim = prep["wfc1_fp"].shape[0]
    fp_pad = jnp.zeros((bp, fp_pad_dim), jnp.float32).at[:b, :fp_dim].set(
        fp_x.astype(jnp.float32))

    out_pad = fused_gnn_predictor(
        a_norm.astype(bf16), pool_pad.astype(bf16),
        pro_x.astype(bf16), fp_pad.astype(bf16), prep)

    return out_pad[:b, :n_output]


# ----------------------------------------------------------------------------
# Demo
# ----------------------------------------------------------------------------
if __name__ == "__main__":
    # Small but structurally faithful shapes.
    NUM_FEATURES_PRO = 256   # constructor arg (1280 by default, shrunk for demo)
    OUTPUT_DIM = 128         # default output_dim
    N_OUTPUT = 1
    NODES_PER_GRAPH = 16
    N_GRAPHS = 2
    N_NODES = NODES_PER_GRAPH * N_GRAPHS
    FP_DIM = 193 - OUTPUT_DIM  # 65, so concat matches fc1's 193 input features

    key = jax.random.PRNGKey(0)
    k_param, k_x, k_fp = jax.random.split(key, 3)

    params = init_params(k_param, NUM_FEATURES_PRO, OUTPUT_DIM, N_OUTPUT)
    prep = prepare_params(params, FP_DIM, N_OUTPUT)

    # data_pro.x: node features, data_pro.edge_index: bidirectional chain edges
    pro_x = jax.random.normal(k_x, (N_NODES, NUM_FEATURES_PRO), jnp.float32)

    edges = []
    for g in range(N_GRAPHS):
        base = g * NODES_PER_GRAPH
        for i in range(NODES_PER_GRAPH - 1):
            edges.append((base + i, base + i + 1))
            edges.append((base + i + 1, base + i))
    edge_index = jnp.array(edges, dtype=jnp.int32).T          # [2, E]

    batch = jnp.repeat(jnp.arange(N_GRAPHS, dtype=jnp.int32), NODES_PER_GRAPH)

    # data_fp: molecular fingerprint features
    fp_x = jax.random.normal(k_fp, (N_GRAPHS, FP_DIM), jnp.float32)

    a_norm = build_normalized_adjacency(edge_index, N_NODES)
    pool_mat = build_mean_pool_matrix(batch, N_GRAPHS)

    out = gnn_predictor_forward(prep, pro_x, a_norm, pool_mat, fp_x,
                                n_output=N_OUTPUT)
    out = jax.block_until_ready(out)
    assert out.shape == (N_GRAPHS, N_OUTPUT)
    assert bool(jnp.all(jnp.isfinite(out)))
    print("KERNEL_OK")
</pallas_src>

<mosaic_0001>
module attributes {stable_mosaic.version = 11 : i64} {
  func.func @_fused_gnn_kernel(%arg0: i32, %arg1: memref<32x32xbf16, #tpu.memory_space<vmem>>, %arg2: memref<8x32xbf16, #tpu.memory_space<vmem>>, %arg3: memref<32x256xbf16, #tpu.memory_space<vmem>>, %arg4: memref<8x128xbf16, #tpu.memory_space<vmem>>, %arg5: memref<256x256xbf16, #tpu.memory_space<vmem>>, %arg6: memref<1x256xf32, #tpu.memory_space<vmem>>, %arg7: memref<256x640xbf16, #tpu.memory_space<vmem>>, %arg8: memref<1x640xf32, #tpu.memory_space<vmem>>, %arg9: memref<640x320xbf16, #tpu.memory_space<vmem>>, %arg10: memref<1x320xf32, #tpu.memory_space<vmem>>, %arg11: memref<320x1024xbf16, #tpu.memory_space<vmem>>, %arg12: memref<1x1024xf32, #tpu.memory_space<vmem>>, %arg13: memref<1024x128xbf16, #tpu.memory_space<vmem>>, %arg14: memref<1x128xf32, #tpu.memory_space<vmem>>, %arg15: memref<128x1024xbf16, #tpu.memory_space<vmem>>, %arg16: memref<128x1024xbf16, #tpu.memory_space<vmem>>, %arg17: memref<1x1024xf32, #tpu.memory_space<vmem>>, %arg18: memref<1024x512xbf16, #tpu.memory_space<vmem>>, %arg19: memref<1x512xf32, #tpu.memory_space<vmem>>, %arg20: memref<512x128xbf16, #tpu.memory_space<vmem>>, %arg21: memref<1x128xf32, #tpu.memory_space<vmem>>, %arg22: memref<8x128xf32, #tpu.memory_space<vmem>>) attributes {dimension_semantics = [#tpu.dimension_semantics<arbitrary>], iteration_bounds = array<i64: 1>, scalar_prefetch = 0 : i64, scratch_operands = 0 : i64, tpu.core_type = #tpu.core_type<tc>, window_params = [{pipeline_mode = #tpu.pipeline_mode<synchronous>, transform_indices = @transform_0, window_bounds = array<i64: 32, 32>}, {pipeline_mode = #tpu.pipeline_mode<synchronous>, transform_indices = @transform_1, window_bounds = array<i64: 8, 32>}, {pipeline_mode = #tpu.pipeline_mode<synchronous>, transform_indices = @transform_2, window_bounds = array<i64: 32, 256>}, {pipeline_mode = #tpu.pipeline_mode<synchronous>, transform_indices = @transform_3, window_bounds = array<i64: 8, 128>}, {pipeline_mode = #tpu.pipeline_mode<synchronous>, transform_indices = @transform_4, window_bounds = array<i64: 256, 256>}, {pipeline_mode = #tpu.pipeline_mode<synchronous>, transform_indices = @transform_5, window_bounds = array<i64: 1, 256>}, {pipeline_mode = #tpu.pipeline_mode<synchronous>, transform_indices = @transform_6, window_bounds = array<i64: 256, 640>}, {pipeline_mode = #tpu.pipeline_mode<synchronous>, transform_indices = @transform_7, window_bounds = array<i64: 1, 640>}, {pipeline_mode = #tpu.pipeline_mode<synchronous>, transform_indices = @transform_8, window_bounds = array<i64: 640, 320>}, {pipeline_mode = #tpu.pipeline_mode<synchronous>, transform_indices = @transform_9, window_bounds = array<i64: 1, 320>}, {pipeline_mode = #tpu.pipeline_mode<synchronous>, transform_indices = @transform_10, window_bounds = array<i64: 320, 1024>}, {pipeline_mode = #tpu.pipeline_mode<synchronous>, transform_indices = @transform_11, window_bounds = array<i64: 1, 1024>}, {pipeline_mode = #tpu.pipeline_mode<synchronous>, transform_indices = @transform_12, window_bounds = array<i64: 1024, 128>}, {pipeline_mode = #tpu.pipeline_mode<synchronous>, transform_indices = @transform_13, window_bounds = array<i64: 1, 128>}, {pipeline_mode = #tpu.pipeline_mode<synchronous>, transform_indices = @transform_14, window_bounds = array<i64: 128, 1024>}, {pipeline_mode = #tpu.pipeline_mode<synchronous>, transform_indices = @transform_15, window_bounds = array<i64: 128, 1024>}, {pipeline_mode = #tpu.pipeline_mode<synchronous>, transform_indices = @transform_16, window_bounds = array<i64: 1, 1024>}, {pipeline_mode = #tpu.pipeline_mode<synchronous>, transform_indices = @transform_17, window_bounds = array<i64: 1024, 512>}, {pipeline_mode = #tpu.pipeline_mode<synchronous>, transform_indices = @transform_18, window_bounds = array<i64: 1, 512>}, {pipeline_mode = #tpu.pipeline_mode<synchronous>, transform_indices = @transform_19, window_bounds = array<i64: 512, 128>}, {pipeline_mode = #tpu.pipeline_mode<synchronous>, transform_indices = @transform_20, window_bounds = array<i64: 1, 128>}, {pipeline_mode = #tpu.pipeline_mode<synchronous>, transform_indices = @transform_21, window_bounds = array<i64: 8, 128>}]} {
    %c0 = arith.constant 0 : index
    %c0_0 = arith.constant 0 : index
    %0 = vector.load %arg1[%c0, %c0_0] : memref<32x32xbf16, #tpu.memory_space<vmem>>, vector<32x32xbf16>
    %c0_1 = arith.constant 0 : index
    %c0_2 = arith.constant 0 : index
    %1 = vector.load %arg3[%c0_1, %c0_2] : memref<32x256xbf16, #tpu.memory_space<vmem>>, vector<32x256xbf16>
    %c0_3 = arith.constant 0 : index
    %c0_4 = arith.constant 0 : index
    %2 = vector.load %arg5[%c0_3, %c0_4] : memref<256x256xbf16, #tpu.memory_space<vmem>>, vector<256x256xbf16>
    %cst = arith.constant dense<0.000000e+00> : vector<32x256xf32>
    %3 = tpu.matmul %1, %2, %cst {dimension_numbers = #tpu.dot_dimension_numbers<[1], [0], [0], [1], [0, 0, 1, 1], [], []>} : vector<32x256xbf16>, vector<256x256xbf16>, vector<32x256xf32> -> vector<32x256xf32>
    %4 = arith.truncf %3 : vector<32x256xf32> to vector<32x256xbf16>
    %cst_5 = arith.constant dense<0.000000e+00> : vector<32x256xf32>
    %5 = tpu.matmul %0, %4, %cst_5 {dimension_numbers = #tpu.dot_dimension_numbers<[1], [0], [0], [1], [0, 0, 1, 1], [], []>} : vector<32x32xbf16>, vector<32x256xbf16>, vector<32x256xf32> -> vector<32x256xf32>
    %c0_6 = arith.constant 0 : index
    %c0_7 = arith.constant 0 : index
    %6 = vector.load %arg6[%c0_6, %c0_7] : memref<1x256xf32, #tpu.memory_space<vmem>>, vector<1x256xf32>
    %7 = vector.broadcast %6 : vector<1x256xf32> to vector<32x256xf32>
    %8 = arith.addf %5, %7 : vector<32x256xf32>
    %cst_8 = arith.constant 0.000000e+00 : f32
    %9 = vector.broadcast %cst_8 : f32 to vector<32x256xf32>
    %10 = arith.maximumf %8, %9 : vector<32x256xf32>
    %11 = arith.truncf %10 : vector<32x256xf32> to vector<32x256xbf16>
    %c0_9 = arith.constant 0 : index
    %c0_10 = arith.constant 0 : index
    %12 = vector.load %arg7[%c0_9, %c0_10] : memref<256x640xbf16, #tpu.memory_space<vmem>>, vector<256x640xbf16>
    %cst_11 = arith.constant dense<0.000000e+00> : vector<32x640xf32>
    %13 = tpu.matmul %11, %12, %cst_11 {dimension_numbers = #tpu.dot_dimension_numbers<[1], [0], [0], [1], [0, 0, 1, 1], [], []>} : vector<32x256xbf16>, vector<256x640xbf16>, vector<32x640xf32> -> vector<32x640xf32>
    %14 = arith.truncf %13 : vector<32x640xf32> to vector<32x640xbf16>
    %cst_12 = arith.constant dense<0.000000e+00> : vector<32x640xf32>
    %15 = tpu.matmul %0, %14, %cst_12 {dimension_numbers = #tpu.dot_dimension_numbers<[1], [0], [0], [1], [0, 0, 1, 1], [], []>} : vector<32x32xbf16>, vector<32x640xbf16>, vector<32x640xf32> -> vector<32x640xf32>
    %c0_13 = arith.constant 0 : index
    %c0_14 = arith.constant 0 : index
    %16 = vector.load %arg8[%c0_13, %c0_14] : memref<1x640xf32, #tpu.memory_space<vmem>>, vector<1x640xf32>
    %17 = vector.broadcast %16 : vector<1x640xf32> to vector<32x640xf32>
    %18 = arith.addf %15, %17 : vector<32x640xf32>
    %cst_15 = arith.constant 0.000000e+00 : f32
    %19 = vector.broadcast %cst_15 : f32 to vector<32x640xf32>
    %20 = arith.maximumf %18, %19 : vector<32x640xf32>
    %21 = arith.truncf %20 : vector<32x640xf32> to vector<32x640xbf16>
    %c0_16 = arith.constant 0 : index
    %c0_17 = arith.constant 0 : index
    %22 = vector.load %arg9[%c0_16, %c0_17] : memref<640x320xbf16, #tpu.memory_space<vmem>>, vector<640x320xbf16>
    %cst_18 = arith.constant dense<0.000000e+00> : vector<32x320xf32>
    %23 = tpu.matmul %21, %22, %cst_18 {dimension_numbers = #tpu.dot_dimension_numbers<[1], [0], [0], [1], [0, 0, 1, 1], [], []>} : vector<32x640xbf16>, vector<640x320xbf16>, vector<32x320xf32> -> vector<32x320xf32>
    %24 = arith.truncf %23 : vector<32x320xf32> to vector<32x320xbf16>
    %cst_19 = arith.constant dense<0.000000e+00> : vector<32x320xf32>
    %25 = tpu.matmul %0, %24, %cst_19 {dimension_numbers = #tpu.dot_dimension_numbers<[1], [0], [0], [1], [0, 0, 1, 1], [], []>} : vector<32x32xbf16>, vector<32x320xbf16>, vector<32x320xf32> -> vector<32x320xf32>
    %c0_20 = arith.constant 0 : index
    %c0_21 = arith.constant 0 : index
    %26 = vector.load %arg10[%c0_20, %c0_21] : memref<1x320xf32, #tpu.memory_space<vmem>>, vector<1x320xf32>
    %27 = vector.broadcast %26 : vector<1x320xf32> to vector<32x320xf32>
    %28 = arith.addf %25, %27 : vector<32x320xf32>
    %cst_22 = arith.constant 0.000000e+00 : f32
    %29 = vector.broadcast %cst_22 : f32 to vector<32x320xf32>
    %30 = arith.maximumf %28, %29 : vector<32x320xf32>
    %c0_23 = arith.constant 0 : index
    %c0_24 = arith.constant 0 : index
    %31 = vector.load %arg2[%c0_23, %c0_24] : memref<8x32xbf16, #tpu.memory_space<vmem>>, vector<8x32xbf16>
    %32 = arith.truncf %30 : vector<32x320xf32> to vector<32x320xbf16>
    %cst_25 = arith.constant dense<0.000000e+00> : vector<8x320xf32>
    %33 = tpu.matmul %31, %32, %cst_25 {dimension_numbers = #tpu.dot_dimension_numbers<[1], [0], [0], [1], [0, 0, 1, 1], [], []>} : vector<8x32xbf16>, vector<32x320xbf16>, vector<8x320xf32> -> vector<8x320xf32>
    %34 = arith.truncf %33 : vector<8x320xf32> to vector<8x320xbf16>
    %c0_26 = arith.constant 0 : index
    %c0_27 = arith.constant 0 : index
    %35 = vector.load %arg11[%c0_26, %c0_27] : memref<320x1024xbf16, #tpu.memory_space<vmem>>, vector<320x1024xbf16>
    %cst_28 = arith.constant dense<0.000000e+00> : vector<8x1024xf32>
    %36 = tpu.matmul %34, %35, %cst_28 {dimension_numbers = #tpu.dot_dimension_numbers<[1], [0], [0], [1], [0, 0, 1, 1], [], []>} : vector<8x320xbf16>, vector<320x1024xbf16>, vector<8x1024xf32> -> vector<8x1024xf32>
    %c0_29 = arith.constant 0 : index
    %c0_30 = arith.constant 0 : index
    %37 = vector.load %arg12[%c0_29, %c0_30] : memref<1x1024xf32, #tpu.memory_space<vmem>>, vector<1x1024xf32>
    %38 = vector.broadcast %37 : vector<1x1024xf32> to vector<8x1024xf32>
    %39 = arith.addf %36, %38 : vector<8x1024xf32>
    %cst_31 = arith.constant 0.000000e+00 : f32
    %40 = vector.broadcast %cst_31 : f32 to vector<8x1024xf32>
    %41 = arith.maximumf %39, %40 : vector<8x1024xf32>
    %42 = arith.truncf %41 : vector<8x1024xf32> to vector<8x1024xbf16>
    %c0_32 = arith.constant 0 : index
    %c0_33 = arith.constant 0 : index
    %43 = vector.load %arg13[%c0_32, %c0_33] : memref<1024x128xbf16, #tpu.memory_space<vmem>>, vector<1024x128xbf16>
    %cst_34 = arith.constant dense<0.000000e+00> : vector<8x128xf32>
    %44 = tpu.matmul %42, %43, %cst_34 {dimension_numbers = #tpu.dot_dimension_numbers<[1], [0], [0], [1], [0, 0, 1, 1], [], []>} : vector<8x1024xbf16>, vector<1024x128xbf16>, vector<8x128xf32> -> vector<8x128xf32>
    %c0_35 = arith.constant 0 : index
    %c0_36 = arith.constant 0 : index
    %45 = vector.load %arg14[%c0_35, %c0_36] : memref<1x128xf32, #tpu.memory_space<vmem>>, vector<1x128xf32>
    %46 = vector.broadcast %45 : vector<1x128xf32> to vector<8x128xf32>
    %47 = arith.addf %44, %46 : vector<8x128xf32>
    %c0_37 = arith.constant 0 : index
    %c0_38 = arith.constant 0 : index
    %48 = vector.load %arg4[%c0_37, %c0_38] : memref<8x128xbf16, #tpu.memory_space<vmem>>, vector<8x128xbf16>
    %c0_39 = arith.constant 0 : index
    %c0_40 = arith.constant 0 : index
    %49 = vector.load %arg15[%c0_39, %c0_40] : memref<128x1024xbf16, #tpu.memory_space<vmem>>, vector<128x1024xbf16>
    %cst_41 = arith.constant dense<0.000000e+00> : vector<8x1024xf32>
    %50 = tpu.matmul %48, %49, %cst_41 {dimension_numbers = #tpu.dot_dimension_numbers<[1], [0], [0], [1], [0, 0, 1, 1], [], []>} : vector<8x128xbf16>, vector<128x1024xbf16>, vector<8x1024xf32> -> vector<8x1024xf32>
    %51 = arith.truncf %47 : vector<8x128xf32> to vector<8x128xbf16>
    %c0_42 = arith.constant 0 : index
    %c0_43 = arith.constant 0 : index
    %52 = vector.load %arg16[%c0_42, %c0_43] : memref<128x1024xbf16, #tpu.memory_space<vmem>>, vector<128x1024xbf16>
    %cst_44 = arith.constant dense<0.000000e+00> : vector<8x1024xf32>
    %53 = tpu.matmul %51, %52, %cst_44 {dimension_numbers = #tpu.dot_dimension_numbers<[1], [0], [0], [1], [0, 0, 1, 1], [], []>} : vector<8x128xbf16>, vector<128x1024xbf16>, vector<8x1024xf32> -> vector<8x1024xf32>
    %54 = arith.addf %50, %53 : vector<8x1024xf32>
    %c0_45 = arith.constant 0 : index
    %c0_46 = arith.constant 0 : index
    %55 = vector.load %arg17[%c0_45, %c0_46] : memref<1x1024xf32, #tpu.memory_space<vmem>>, vector<1x1024xf32>
    %56 = vector.broadcast %55 : vector<1x1024xf32> to vector<8x1024xf32>
    %57 = arith.addf %54, %56 : vector<8x1024xf32>
    %cst_47 = arith.constant 0.000000e+00 : f32
    %58 = vector.broadcast %cst_47 : f32 to vector<8x1024xf32>
    %59 = arith.maximumf %57, %58 : vector<8x1024xf32>
    %60 = arith.truncf %59 : vector<8x1024xf32> to vector<8x1024xbf16>
    %c0_48 = arith.constant 0 : index
    %c0_49 = arith.constant 0 : index
    %61 = vector.load %arg18[%c0_48, %c0_49] : memref<1024x512xbf16, #tpu.memory_space<vmem>>, vector<1024x512xbf16>
    %cst_50 = arith.constant dense<0.000000e+00> : vector<8x512xf32>
    %62 = tpu.matmul %60, %61, %cst_50 {dimension_numbers = #tpu.dot_dimension_numbers<[1], [0], [0], [1], [0, 0, 1, 1], [], []>} : vector<8x1024xbf16>, vector<1024x512xbf16>, vector<8x512xf32> -> vector<8x512xf32>
    %c0_51 = arith.constant 0 : index
    %c0_52 = arith.constant 0 : index
    %63 = vector.load %arg19[%c0_51, %c0_52] : memref<1x512xf32, #tpu.memory_space<vmem>>, vector<1x512xf32>
    %64 = vector.broadcast %63 : vector<1x512xf32> to vector<8x512xf32>
    %65 = arith.addf %62, %64 : vector<8x512xf32>
    %cst_53 = arith.constant 0.000000e+00 : f32
    %66 = vector.broadcast %cst_53 : f32 to vector<8x512xf32>
    %67 = arith.maximumf %65, %66 : vector<8x512xf32>
    %68 = arith.truncf %67 : vector<8x512xf32> to vector<8x512xbf16>
    %c0_54 = arith.constant 0 : index
    %c0_55 = arith.constant 0 : index
    %69 = vector.load %arg20[%c0_54, %c0_55] : memref<512x128xbf16, #tpu.memory_space<vmem>>, vector<512x128xbf16>
    %cst_56 = arith.constant dense<0.000000e+00> : vector<8x128xf32>
    %70 = tpu.matmul %68, %69, %cst_56 {dimension_numbers = #tpu.dot_dimension_numbers<[1], [0], [0], [1], [0, 0, 1, 1], [], []>} : vector<8x512xbf16>, vector<512x128xbf16>, vector<8x128xf32> -> vector<8x128xf32>
    %c0_57 = arith.constant 0 : index
    %c0_58 = arith.constant 0 : index
    %71 = vector.load %arg21[%c0_57, %c0_58] : memref<1x128xf32, #tpu.memory_space<vmem>>, vector<1x128xf32>
    %72 = vector.broadcast %71 : vector<1x128xf32> to vector<8x128xf32>
    %73 = arith.addf %70, %72 : vector<8x128xf32>
    %c0_59 = arith.constant 0 : index
    %c0_60 = arith.constant 0 : index
    %74 = vector.load %arg22[%c0_59, %c0_60] : memref<8x128xf32, #tpu.memory_space<vmem>>, vector<8x128xf32>
    tpu.vector_store %arg22[%c0_59, %c0_60], %73 {strides = array<i32>} : memref<8x128xf32, #tpu.memory_space<vmem>>, vector<8x128xf32>,
    return
  }
  func.func @transform_0(%arg0: i32) -> (i32, i32) {
    %c0_i32 = arith.constant 0 : i32
    %c0_i32_0 = arith.constant 0 : i32
    %c0_i32_1 = arith.constant 0 : i32
    return %c0_i32, %c0_i32_0 : i32, i32
  }
  func.func @transform_1(%arg0: i32) -> (i32, i32) {
    %c0_i32 = arith.constant 0 : i32
    %c0_i32_0 = arith.constant 0 : i32
    %c0_i32_1 = arith.constant 0 : i32
    return %c0_i32, %c0_i32_0 : i32, i32
  }
  func.func @transform_2(%arg0: i32) -> (i32, i32) {
    %c0_i32 = arith.constant 0 : i32
    %c0_i32_0 = arith.constant 0 : i32
    %c0_i32_1 = arith.constant 0 : i32
    return %c0_i32, %c0_i32_0 : i32, i32
  }
  func.func @transform_3(%arg0: i32) -> (i32, i32) {
    %c0_i32 = arith.constant 0 : i32
    %c0_i32_0 = arith.constant 0 : i32
    %c0_i32_1 = arith.constant 0 : i32
    return %c0_i32, %c0_i32_0 : i32, i32
  }
  func.func @transform_4(%arg0: i32) -> (i32, i32) {
    %c0_i32 = arith.constant 0 : i32
    %c0_i32_0 = arith.constant 0 : i32
    %c0_i32_1 = arith.constant 0 : i32
    return %c0_i32, %c0_i32_0 : i32, i32
  }
  func.func @transform_5(%arg0: i32) -> (i32, i32) {
    %c0_i32 = arith.constant 0 : i32
    %c0_i32_0 = arith.constant 0 : i32
    %c0_i32_1 = arith.constant 0 : i32
    return %c0_i32, %c0_i32_0 : i32, i32
  }
  func.func @transform_6(%arg0: i32) -> (i32, i32) {
    %c0_i32 = arith.constant 0 : i32
    %c0_i32_0 = arith.constant 0 : i32
    %c0_i32_1 = arith.constant 0 : i32
    return %c0_i32, %c0_i32_0 : i32, i32
  }
  func.func @transform_7(%arg0: i32) -> (i32, i32) {
    %c0_i32 = arith.constant 0 : i32
    %c0_i32_0 = arith.constant 0 : i32
    %c0_i32_1 = arith.constant 0 : i32
    return %c0_i32, %c0_i32_0 : i32, i32
  }
  func.func @transform_8(%arg0: i32) -> (i32, i32) {
    %c0_i32 = arith.constant 0 : i32
    %c0_i32_0 = arith.constant 0 : i32
    %c0_i32_1 = arith.constant 0 : i32
    return %c0_i32, %c0_i32_0 : i32, i32
  }
  func.func @transform_9(%arg0: i32) -> (i32, i32) {
    %c0_i32 = arith.constant 0 : i32
    %c0_i32_0 = arith.constant 0 : i32
    %c0_i32_1 = arith.constant 0 : i32
    return %c0_i32, %c0_i32_0 : i32, i32
  }
  func.func @transform_10(%arg0: i32) -> (i32, i32) {
    %c0_i32 = arith.constant 0 : i32
    %c0_i32_0 = arith.constant 0 : i32
    %c0_i32_1 = arith.constant 0 : i32
    return %c0_i32, %c0_i32_0 : i32, i32
  }
  func.func @transform_11(%arg0: i32) -> (i32, i32) {
    %c0_i32 = arith.constant 0 : i32
    %c0_i32_0 = arith.constant 0 : i32
    %c0_i32_1 = arith.constant 0 : i32
    return %c0_i32, %c0_i32_0 : i32, i32
  }
  func.func @transform_12(%arg0: i32) -> (i32, i32) {
    %c0_i32 = arith.constant 0 : i32
    %c0_i32_0 = arith.constant 0 : i32
    %c0_i32_1 = arith.constant 0 : i32
    return %c0_i32, %c0_i32_0 : i32, i32
  }
  func.func @transform_13(%arg0: i32) -> (i32, i32) {
    %c0_i32 = arith.constant 0 : i32
    %c0_i32_0 = arith.constant 0 : i32
    %c0_i32_1 = arith.constant 0 : i32
    return %c0_i32, %c0_i32_0 : i32, i32
  }
  func.func @transform_14(%arg0: i32) -> (i32, i32) {
    %c0_i32 = arith.constant 0 : i32
    %c0_i32_0 = arith.constant 0 : i32
    %c0_i32_1 = arith.constant 0 : i32
    return %c0_i32, %c0_i32_0 : i32, i32
  }
  func.func @transform_15(%arg0: i32) -> (i32, i32) {
    %c0_i32 = arith.constant 0 : i32
    %c0_i32_0 = arith.constant 0 : i32
    %c0_i32_1 = arith.constant 0 : i32
    return %c0_i32, %c0_i32_0 : i32, i32
  }
  func.func @transform_16(%arg0: i32) -> (i32, i32) {
    %c0_i32 = arith.constant 0 : i32
    %c0_i32_0 = arith.constant 0 : i32
    %c0_i32_1 = arith.constant 0 : i32
    return %c0_i32, %c0_i32_0 : i32, i32
  }
  func.func @transform_17(%arg0: i32) -> (i32, i32) {
    %c0_i32 = arith.constant 0 : i32
    %c0_i32_0 = arith.constant 0 : i32
    %c0_i32_1 = arith.constant 0 : i32
    return %c0_i32, %c0_i32_0 : i32, i32
  }
  func.func @transform_18(%arg0: i32) -> (i32, i32) {
    %c0_i32 = arith.constant 0 : i32
    %c0_i32_0 = arith.constant 0 : i32
    %c0_i32_1 = arith.constant 0 : i32
    return %c0_i32, %c0_i32_0 : i32, i32
  }
  func.func @transform_19(%arg0: i32) -> (i32, i32) {
    %c0_i32 = arith.constant 0 : i32
    %c0_i32_0 = arith.constant 0 : i32
    %c0_i32_1 = arith.constant 0 : i32
    return %c0_i32, %c0_i32_0 : i32, i32
  }
  func.func @transform_20(%arg0: i32) -> (i32, i32) {
    %c0_i32 = arith.constant 0 : i32
    %c0_i32_0 = arith.constant 0 : i32
    %c0_i32_1 = arith.constant 0 : i32
    return %c0_i32, %c0_i32_0 : i32, i32
  }
  func.func @transform_21(%arg0: i32) -> (i32, i32) {
    %c0_i32 = arith.constant 0 : i32
    %c0_i32_0 = arith.constant 0 : i32
    %c0_i32_1 = arith.constant 0 : i32
    return %c0_i32, %c0_i32_0 : i32, i32
  }
}

</mosaic_0001>

<bundles_post_ra>
// kernel: gnn_predictor_forward.1
= control target key start
LH: loop header
LB: loop body
LE: loop exit
PB: predicated region body
PF: predicated region fallthrough
CT: control target
= control target key end

     0   :  { %s12334_s0 = inlined_call_operand.vmem [shape: bf16[32,32], index: 0, kind: input, shape index: {}]   ;;  %s12335_s1 = inlined_call_operand.vmem [shape: bf16[8,32], index: 1, kind: input, shape index: {}]   ;;  %s12336_s2 = inlined_call_operand.vmem [shape: bf16[32,256], index: 2, kind: input, shape index: {}]   ;;  %s12337_s3 = inlined_call_operand.vmem [shape: bf16[8,128], index: 3, kind: input, shape index: {}]   ;;  %s12338_s4 = inlined_call_operand.hbm [shape: bf16[256,256], index: 4, kind: input, shape index: {}]   ;;  %s12339_s5 = inlined_call_operand.hbm [shape: f32[1,256], index: 5, kind: input, shape index: {}]   ;;  %s12340_s6 = inlined_call_operand.vmem [shape: bf16[256,640], index: 6, kind: input, shape index: {}]   ;;  %s12341_s7 = inlined_call_operand.hbm [shape: f32[1,640], index: 7, kind: input, shape index: {}]   ;;  %s12342_s8 = inlined_call_operand.vmem [shape: bf16[640,320], index: 8, kind: input, shape index: {}]   ;;  %s12343_s9 = inlined_call_operand.hbm [shape: f32[1,320], index: 9, kind: input, shape index: {}]   ;;  %s12344_s10 = inlined_call_operand.vmem [shape: bf16[320,1024], index: 10, kind: input, shape index: {}]   ;;  %s12345_s11 = inlined_call_operand.hbm [shape: f32[1,1024], index: 11, kind: input, shape index: {}]   ;;  %s12346_s12 = inlined_call_operand.hbm [shape: bf16[1024,128], index: 12, kind: input, shape index: {}]   ;;  %s12347_s13 = inlined_call_operand.hbm [shape: f32[1,128], index: 13, kind: input, shape index: {}]   ;;  %s12348_s14 = inlined_call_operand.hbm [shape: bf16[128,1024], index: 14, kind: input, shape index: {}]   ;;  %s12349_s15 = inlined_call_operand.hbm [shape: bf16[128,1024], index: 15, kind: input, shape index: {}]   ;;  %s12350_s16 = inlined_call_operand.hbm [shape: f32[1,1024], index: 16, kind: input, shape index: {}]   ;;  %s12351_s17 = inlined_call_operand.hbm [shape: bf16[1024,512], index: 17, kind: input, shape index: {}]   ;;  %s12352_s18 = inlined_call_operand.hbm [shape: f32[1,512], index: 18, kind: input, shape index: {}]   ;;  %s12353_s19 = inlined_call_operand.hbm [shape: bf16[512,128], index: 19, kind: input, shape index: {}]   ;;  %s12354_s20 = inlined_call_operand.hbm [shape: f32[1,128], index: 20, kind: input, shape index: {}]   ;;  %s12355_s21 = inlined_call_operand.vmem [shape: f32[8,128], index: 21, kind: output, shape index: {}]  }
   0x1   :  { %12361 = sst [smem:[#allocation32_spill]] %s12334_s0 }
   0x2   :  { %12362 = sst [smem:[#allocation33_spill]] %s12335_s1 }
   0x3   :  { %12363 = sst [smem:[#allocation34_spill]] %s12336_s2 }
   0x4   :  { %12364 = sst [smem:[#allocation35_spill]] %s12337_s3 }
   0x5   :  { %12365 = sst [smem:[#allocation36_spill]] %s12338_s4 }
   0x6   :  { %12366 = sst [smem:[#allocation37_spill]] %s12339_s5 }
   0x7   :  { %26 = vsyncpa [#allocation3], 0 }
   0x8   :  { %27 = vsyncpa [#allocation5], 0 }
   0x9   :  { %28 = vsyncpa [#allocation8], 0 }
   0xa   :  { %29 = vsyncpa [#allocation11], 0 }
   0xb   :  { %30 = vsyncpa [#allocation14], 0 }
   0xc   :  { %31 = vsyncpa [#allocation17], 0 }
   0xd   :  { %32 = vsyncpa [#allocation20], 0 }
   0xe   :  { %33 = vsyncpa [#allocation23], 0  ;;  %s10693_s2 = smov [#allocation4]   ;;  %s10694_s26 = smov [#allocation7]  }
   0xf   :  { %s60_s25 = sshll.u32 %s10693_s2, 4  ;;  %s84_s27 = sshll.u32 %s10694_s26, 4  ;;  %s61_s25 = int_to_ptr.vmem [resolvable:$true] %s60_s25  ;;  %s85_s27 = int_to_ptr.vmem [resolvable:$true] %s84_s27 }
  0x10   :  { %s12367_s29 = sld [smem:[#allocation37_spill]] }
  0x16   :  { %s10369_s0 = scalar_lea.hbm %s12367_s29, 32 }
  0x17   :  { %p10370_p0 = scmp.ne.s32.totalorder %s12367_s29, %s10369_s0  ;;  %p10373_p1 = scmp.lt.u32.totalorder %s10369_s0, %s12367_s29 }
  0x19   :  { %p10375_p2 = pnand %p10373_p1, %p10370_p0 }
  0x1b   :  { %10378 = shalt.err (!%p10375_p2)
}
  0x1c   :  { %s10379_s23 = scalar_lea.vmem %s61_s25, 32  ;;  %p10384_p4 = scmp.lt.s32.totalorder %s61_s25, %s61_s25 }
  0x1d   :  { %p10380_p3 = scmp.ne.s32.totalorder %s61_s25, %s10379_s23  ;;  %p10385_p5 = scmp.lt.s32.totalorder %s10379_s23, %s10379_s23 }
  0x1f   :  { %p10386_p6 = por %p10385_p5, %p10384_p4 }
  0x21   :  { %p10387_p7 = pnand %p10386_p6, %p10380_p3 }
  0x23   :  { %10390 = shalt.err (!%p10387_p7)
}
  0x24   :  { %63 = dma.hbm_to_vmem [thread:$0]  %s12367_s29, 32, %s61_s25, [#allocation5]  }
  0x25   :  { %s10391_s3 = scalar_lea.hbm %s12343_s9, 48 }
  0x26   :  { %p10392_p8 = scmp.ne.s32.totalorder %s12343_s9, %s10391_s3  ;;  %p10395_p9 = scmp.lt.u32.totalorder %s10391_s3, %s12343_s9 }
  0x28   :  { %p10397_p10 = pnand %p10395_p9, %p10392_p8 }
  0x2a   :  { %10400 = shalt.err (!%p10397_p10)
}
  0x2b   :  { %s10401_s5 = scalar_lea.vmem %s85_s27, 48  ;;  %s10405_s22 = scalar_lea.vmem %s85_s27, 64 }
  0x2c   :  { %p10402_p11 = scmp.ne.s32.totalorder %s85_s27, %s10401_s5  ;;  %p10406_p12 = scmp.lt.s32.totalorder %s85_s27, %s85_s27 }
  0x2d   :  { %p10407_p13 = scmp.lt.s32.totalorder %s10405_s22, %s10401_s5 }
  0x2f   :  { %p10408_p0 = por %p10407_p13, %p10406_p12 }
  0x31   :  { %p10409_p1 = pnand %p10408_p0, %p10402_p11 }
  0x33   :  { %10412 = shalt.err (!%p10409_p1)
}
  0x34   :  { %87 = dma.hbm_to_vmem [thread:$0]  %s12343_s9, 48, %s85_s27, [#allocation8]  }
  0x35   :  { %s10695_s23 = smov [#allocation10]   ;;  %s10413_s26 = scalar_lea.hbm %s12346_s12, 8192 }
  0x36   :  { %s105_s1 = sshll.u32 %s10695_s23, 4  ;;  %p10414_p2 = scmp.ne.s32.totalorder %s12346_s12, %s10413_s26  ;;  %s106_s1 = int_to_ptr.vmem [resolvable:$true] %s105_s1 }
  0x37   :  { %p10417_p3 = scmp.lt.u32.totalorder %s10413_s26, %s12346_s12 }
  0x39   :  { %p10419_p4 = pnand %p10417_p3, %p10414_p2 }
  0x3b   :  { %10422 = shalt.err (!%p10419_p4)
}
  0x3c   :  { %s10423_s30 = scalar_lea.vmem %s106_s1, 8192  ;;  %p10428_p6 = scmp.lt.s32.totalorder %s106_s1, %s106_s1 }
  0x3d   :  { %p10424_p5 = scmp.ne.s32.totalorder %s106_s1, %s10423_s30  ;;  %p10429_p7 = scmp.lt.s32.totalorder %s10423_s30, %s10423_s30 }
  0x3f   :  { %p10430_p8 = por %p10429_p7, %p10428_p6 }
  0x41   :  { %p10431_p9 = pnand %p10430_p8, %p10424_p5 }
  0x43   :  { %10434 = shalt.err (!%p10431_p9)
}
  0x44   :  { %s12360_s9 = smov 64   ;;  %s10697_s27 = smov 4  }
  0x45   :  { %111 = dma.hbm_to_vmem [thread:$0]  %s12346_s12, 8192, %s106_s1, [#allocation11], %s12360_s9, %s12360_s9, %s10697_s27  }
  0x46   :  { %s10698_s25 = smov [#allocation13]   ;;  %s10435_s2 = scalar_lea.hbm %s12348_s14, 8192 }
  0x47   :  { %s127_s29 = sshll.u32 %s10698_s25, 4  ;;  %p10436_p10 = scmp.ne.s32.totalorder %s12348_s14, %s10435_s2  ;;  %s128_s29 = int_to_ptr.vmem [resolvable:$true] %s127_s29 }
  0x48   :  { %p10439_p11 = scmp.lt.u32.totalorder %s10435_s2, %s12348_s14 }
  0x4a   :  { %p10441_p12 = pnand %p10439_p11, %p10436_p10 }
  0x4c   :  { %10444 = shalt.err (!%p10441_p12)
}
  0x4d   :  { %s10445_s0 = scalar_lea.vmem %s128_s29, 8192  ;;  %p10450_p0 = scmp.lt.s32.totalorder %s128_s29, %s128_s29 }
  0x4e   :  { %p10446_p13 = scmp.ne.s32.totalorder %s128_s29, %s10445_s0  ;;  %p10451_p1 = scmp.lt.s32.totalorder %s10445_s0, %s10445_s0 }
  0x50   :  { %p10452_p2 = por %p10451_p1, %p10450_p0 }
  0x52   :  { %p10453_p3 = pnand %p10452_p2, %p10446_p13 }
  0x54   :  { %10456 = shalt.err (!%p10453_p3)
}
  0x55   :  { %s10699_s12 = smov 512   ;;  %s10700_s1 = smov 32  }
  0x56   :  { %133 = dma.hbm_to_vmem [thread:$0]  %s12348_s14, 8192, %s128_s29, [#allocation14], %s10699_s12, %s10699_s12, %s10700_s1  }
  0x57   :  { %s10701_s22 = smov [#allocation16]   ;;  %s10702_s23 = smov [#allocation19]  }
  0x58   :  { %s152_s25 = sshll.u32 %s10701_s22, 4  ;;  %s174_s24 = sshll.u32 %s10702_s23, 4  ;;  %s153_s25 = int_to_ptr.vmem [resolvable:$true] %s152_s25  ;;  %s175_s24 = int_to_ptr.vmem [resolvable:$true] %s174_s24 }
  0x59   :  { %s10457_s3 = scalar_lea.hbm %s12350_s16, 128 }
  0x5a   :  { %p10458_p4 = scmp.ne.s32.totalorder %s12350_s16, %s10457_s3  ;;  %p10461_p5 = scmp.lt.u32.totalorder %s10457_s3, %s12350_s16 }
  0x5c   :  { %p10463_p6 = pnand %p10461_p5, %p10458_p4 }
  0x5e   :  { %10466 = shalt.err (!%p10463_p6)
}
  0x5f   :  { %s10467_s14 = scalar_lea.vmem %s153_s25, 128  ;;  %p10472_p8 = scmp.lt.s32.totalorder %s153_s25, %s153_s25 }
  0x60   :  { %p10468_p7 = scmp.ne.s32.totalorder %s153_s25, %s10467_s14  ;;  %p10473_p9 = scmp.lt.s32.totalorder %s10467_s14, %s10467_s14 }
  0x62   :  { %p10474_p10 = por %p10473_p9, %p10472_p8 }
  0x64   :  { %p10475_p11 = pnand %p10474_p10, %p10468_p7 }
  0x66   :  { %10478 = shalt.err (!%p10475_p11)
}
  0x67   :  { %155 = dma.hbm_to_vmem [thread:$0]  %s12350_s16, 128, %s153_s25, [#allocation17]  }
  0x68   :  { %s10479_s23 = scalar_lea.hbm %s12352_s18, 64 }
  0x69   :  { %p10480_p12 = scmp.ne.s32.totalorder %s12352_s18, %s10479_s23  ;;  %p10483_p13 = scmp.lt.u32.totalorder %s10479_s23, %s12352_s18 }
  0x6b   :  { %p10485_p0 = pnand %p10483_p13, %p10480_p12 }
  0x6d   :  { %10488 = shalt.err (!%p10485_p0)
}
  0x6e   :  { %s10489_s28 = scalar_lea.vmem %s175_s24, 64  ;;  %p10494_p2 = scmp.lt.s32.totalorder %s175_s24, %s175_s24 }
  0x6f   :  { %p10490_p1 = scmp.ne.s32.totalorder %s175_s24, %s10489_s28  ;;  %p10495_p3 = scmp.lt.s32.totalorder %s10489_s28, %s10489_s28 }
  0x71   :  { %p10496_p4 = por %p10495_p3, %p10494_p2 }
  0x73   :  { %p10497_p5 = pnand %p10496_p4, %p10490_p1 }
  0x75   :  { %10500 = shalt.err (!%p10497_p5)
}
  0x76   :  { %177 = dma.hbm_to_vmem [thread:$0]  %s12352_s18, 64, %s175_s24, [#allocation20]  }
  0x77   :  { %s10703_s4 = smov [#allocation2]   ;;  %s12368_s30 = sld [smem:[#allocation36_spill]] }
  0x78   :  { %s47_s0 = sshll.u32 %s10703_s4, 4  ;;  %s48_s0 = int_to_ptr.vmem [resolvable:$true] %s47_s0 }
  0x7d   :  { %s10501_s5 = scalar_lea.hbm %s12368_s30, 4096 }
  0x7e   :  { %p10502_p6 = scmp.ne.s32.totalorder %s12368_s30, %s10501_s5  ;;  %p10505_p7 = scmp.lt.u32.totalorder %s10501_s5, %s12368_s30 }
  0x80   :  { %p10507_p8 = pnand %p10505_p7, %p10502_p6 }
  0x82   :  { %10510 = shalt.err (!%p10507_p8)
}
  0x83   :  { %s10511_s26 = scalar_lea.vmem %s48_s0, 4096  ;;  %p10516_p10 = scmp.lt.s32.totalorder %s48_s0, %s48_s0 }
  0x84   :  { %p10512_p9 = scmp.ne.s32.totalorder %s48_s0, %s10511_s26  ;;  %p10517_p11 = scmp.lt.s32.totalorder %s10511_s26, %s10511_s26 }
  0x86   :  { %p10518_p12 = por %p10517_p11, %p10516_p10 }
  0x88   :  { %p10519_p13 = pnand %p10518_p12, %p10512_p9 }
  0x8a   :  { %10522 = shalt.err (!%p10519_p13)
}
  0x8b   :  { %s10704_s18 = smov 128   ;;  %s10705_s24 = smov 8  }
  0x8c   :  { %53 = dma.hbm_to_vmem [thread:$0]  %s12368_s30, 4096, %s48_s0, [#allocation3], %s10704_s18, %s10704_s18, %s10705_s24  }
  0x8d   :  { %s10706_s16 = smov [#allocation6]   ;;  %s10707_s4 = smov [#allocation9]  }
  0x8e   :  { %s72_s25 = sshll.u32 %s10706_s16, 4  ;;  %s96_s14 = sshll.u32 %s10707_s4, 4  ;;  %s73_s25 = int_to_ptr.vmem [resolvable:$true] %s72_s25  ;;  %s97_s14 = int_to_ptr.vmem [resolvable:$true] %s96_s14 }
  0x8f   :  { %s10523_s22 = scalar_lea.hbm %s12341_s7, 80 }
  0x90   :  { %p10524_p0 = scmp.ne.s32.totalorder %s12341_s7, %s10523_s22  ;;  %p10527_p1 = scmp.lt.u32.totalorder %s10523_s22, %s12341_s7 }
  0x92   :  { %p10529_p2 = pnand %p10527_p1, %p10524_p0 }
  0x94   :  { %10532 = shalt.err (!%p10529_p2)
}
  0x95   :  { %s10533_s0 = scalar_lea.vmem %s73_s25, 80  ;;  %s10537_s30 = scalar_lea.vmem %s73_s25, 96 }
  0x96   :  { %p10534_p3 = scmp.ne.s32.totalorder %s73_s25, %s10533_s0  ;;  %p10538_p4 = scmp.lt.s32.totalorder %s73_s25, %s73_s25 }
  0x97   :  { %p10539_p5 = scmp.lt.s32.totalorder %s10537_s30, %s10533_s0 }
  0x99   :  { %p10540_p6 = por %p10539_p5, %p10538_p4 }
  0x9b   :  { %p10541_p7 = pnand %p10540_p6, %p10534_p3 }
  0x9d   :  { %10544 = shalt.err (!%p10541_p7)
}
  0x9e   :  { %75 = dma.hbm_to_vmem [thread:$0]  %s12341_s7, 80, %s73_s25, [#allocation5]  }
  0x9f   :  { %s10545_s16 = scalar_lea.hbm %s12345_s11, 128 }
  0xa0   :  { %p10546_p8 = scmp.ne.s32.totalorder %s12345_s11, %s10545_s16  ;;  %p10549_p9 = scmp.lt.u32.totalorder %s10545_s16, %s12345_s11 }
  0xa2   :  { %p10551_p10 = pnand %p10549_p9, %p10546_p8 }
  0xa4   :  { %10554 = shalt.err (!%p10551_p10)
}
  0xa5   :  { %s10555_s23 = scalar_lea.vmem %s97_s14, 128  ;;  %p10560_p12 = scmp.lt.s32.totalorder %s97_s14, %s97_s14 }
  0xa6   :  { %p10556_p11 = scmp.ne.s32.totalorder %s97_s14, %s10555_s23  ;;  %p10561_p13 = scmp.lt.s32.totalorder %s10555_s23, %s10555_s23 }
  0xa8   :  { %p10562_p0 = por %p10561_p13, %p10560_p12 }
  0xaa   :  { %p10563_p1 = pnand %p10562_p0, %p10556_p11 }
  0xac   :  { %10566 = shalt.err (!%p10563_p1)
}
  0xad   :  { %99 = dma.hbm_to_vmem [thread:$0]  %s12345_s11, 128, %s97_s14, [#allocation8]  }
  0xae   :  { %s10708_s2 = smov [#allocation12]   ;;  %s10709_s26 = smov [#allocation15]  }
  0xaf   :  { %s118_s9 = sshll.u32 %s10708_s2, 4  ;;  %s139_s0 = sshll.u32 %s10709_s26, 4  ;;  %s119_s9 = int_to_ptr.vmem [resolvable:$true] %s118_s9  ;;  %s140_s0 = int_to_ptr.vmem [resolvable:$true] %s139_s0 }
  0xb0   :  { %s10567_s24 = scalar_lea.hbm %s12347_s13, 16 }
  0xb1   :  { %p10568_p2 = scmp.ne.s32.totalorder %s12347_s13, %s10567_s24  ;;  %p10571_p3 = scmp.lt.u32.totalorder %s10567_s24, %s12347_s13 }
  0xb3   :  { %p10573_p4 = pnand %p10571_p3, %p10568_p2 }
  0xb5   :  { %10576 = shalt.err (!%p10573_p4)
}
  0xb6   :  { %s10577_s11 = scalar_lea.vmem %s119_s9, 16  ;;  %s10581_s14 = scalar_lea.vmem %s119_s9, 32 }
  0xb7   :  { %p10578_p5 = scmp.ne.s32.totalorder %s119_s9, %s10577_s11  ;;  %p10582_p6 = scmp.lt.s32.totalorder %s119_s9, %s119_s9 }
  0xb8   :  { %p10583_p7 = scmp.lt.s32.totalorder %s10581_s14, %s10577_s11 }
  0xba   :  { %p10584_p8 = por %p10583_p7, %p10582_p6 }
  0xbc   :  { %p10585_p9 = pnand %p10584_p8, %p10578_p5 }
  0xbe   :  { %10588 = shalt.err (!%p10585_p9)
}
  0xbf   :  { %121 = dma.hbm_to_vmem [thread:$0]  %s12347_s13, 16, %s119_s9, [#allocation11]  }
  0xc0   :  { %s10589_s7 = scalar_lea.hbm %s12349_s15, 8192 }
  0xc1   :  { %p10590_p10 = scmp.ne.s32.totalorder %s12349_s15, %s10589_s7  ;;  %p10593_p11 = scmp.lt.u32.totalorder %s10589_s7, %s12349_s15 }
  0xc3   :  { %p10595_p12 = pnand %p10593_p11, %p10590_p10 }
  0xc5   :  { %10598 = shalt.err (!%p10595_p12)
}
  0xc6   :  { %s10599_s18 = scalar_lea.vmem %s140_s0, 8192  ;;  %p10604_p0 = scmp.lt.s32.totalorder %s140_s0, %s140_s0 }
  0xc7   :  { %p10600_p13 = scmp.ne.s32.totalorder %s140_s0, %s10599_s18  ;;  %p10605_p1 = scmp.lt.s32.totalorder %s10599_s18, %s10599_s18 }
  0xc9   :  { %p10606_p2 = por %p10605_p1, %p10604_p0 }
  0xcb   :  { %p10607_p3 = pnand %p10606_p2, %p10600_p13 }
  0xcd   :  { %10610 = shalt.err (!%p10607_p3)
}
  0xce   :  { %145 = dma.hbm_to_vmem [thread:$0]  %s12349_s15, 8192, %s140_s0, [#allocation14], %s10699_s12, %s10699_s12, %s10700_s1  }
  0xcf   :  { %s10710_s24 = smov [#allocation18]   ;;  %s10611_s4 = scalar_lea.hbm %s12351_s17, 32768 }
  0xd0   :  { %s161_s3 = sshll.u32 %s10710_s24, 4  ;;  %p10612_p4 = scmp.ne.s32.totalorder %s12351_s17, %s10611_s4  ;;  %s162_s3 = int_to_ptr.vmem [resolvable:$true] %s161_s3 }
  0xd1   :  { %p10615_p5 = scmp.lt.u32.totalorder %s10611_s4, %s12351_s17 }
  0xd3   :  { %p10617_p6 = pnand %p10615_p5, %p10612_p4 }
  0xd5   :  { %10620 = shalt.err (!%p10617_p6)
}
  0xd6   :  { %s10621_s22 = scalar_lea.vmem %s162_s3, 32768  ;;  %p10626_p8 = scmp.lt.s32.totalorder %s162_s3, %s162_s3 }
  0xd7   :  { %p10622_p7 = scmp.ne.s32.totalorder %s162_s3, %s10621_s22  ;;  %p10627_p9 = scmp.lt.s32.totalorder %s10621_s22, %s10621_s22 }
  0xd9   :  { %p10628_p10 = por %p10627_p9, %p10626_p8 }
  0xdb   :  { %p10629_p11 = pnand %p10628_p10, %p10622_p7 }
  0xdd   :  { %10632 = shalt.err (!%p10629_p11)
}
  0xde   :  { %s10711_s15 = smov 256   ;;  %s10712_s12 = smov 16  }
  0xdf   :  { %167 = dma.hbm_to_vmem [thread:$0]  %s12351_s17, 32768, %s162_s3, [#allocation17], %s10711_s15, %s10711_s15, %s10712_s12  }
  0xe0   :  { %s10713_s23 = smov [#allocation21]   ;;  %s10714_s25 = smov [#allocation22]  }
  0xe1   :  { %s183_s7 = sshll.u32 %s10713_s23, 4  ;;  %s196_s2 = sshll.u32 %s10714_s25, 4  ;;  %s184_s7 = int_to_ptr.vmem [resolvable:$true] %s183_s7  ;;  %s197_s2 = int_to_ptr.vmem [resolvable:$true] %s196_s2 }
  0xe2   :  { %s10633_s18 = scalar_lea.hbm %s12353_s19, 4096 }
  0xe3   :  { %p10634_p12 = scmp.ne.s32.totalorder %s12353_s19, %s10633_s18  ;;  %p10637_p13 = scmp.lt.u32.totalorder %s10633_s18, %s12353_s19 }
  0xe5   :  { %p10639_p0 = pnand %p10637_p13, %p10634_p12 }
  0xe7   :  { %10642 = shalt.err (!%p10639_p0)
}
  0xe8   :  { %s10643_s17 = scalar_lea.vmem %s184_s7, 4096  ;;  %p10648_p2 = scmp.lt.s32.totalorder %s184_s7, %s184_s7 }
  0xe9   :  { %p10644_p1 = scmp.ne.s32.totalorder %s184_s7, %s10643_s17  ;;  %p10649_p3 = scmp.lt.s32.totalorder %s10643_s17, %s10643_s17 }
  0xeb   :  { %p10650_p4 = por %p10649_p3, %p10648_p2 }
  0xed   :  { %p10651_p5 = pnand %p10650_p4, %p10644_p1 }
  0xef   :  { %10654 = shalt.err (!%p10651_p5)
}
  0xf0   :  { %s12369_s3 = smov 64   ;;  %s10655_s29 = scalar_lea.hbm %s12354_s20, 16 }
  0xf1   :  { %189 = dma.hbm_to_vmem [thread:$0]  %s12353_s19, 4096, %s184_s7, [#allocation20], %s12369_s3, %s12369_s3, %s10697_s27  }
  0xf2   :  { %p10656_p6 = scmp.ne.s32.totalorder %s12354_s20, %s10655_s29  ;;  %p10659_p7 = scmp.lt.u32.totalorder %s10655_s29, %s12354_s20 }
  0xf4   :  { %p10661_p8 = pnand %p10659_p7, %p10656_p6 }
  0xf6   :  { %10664 = shalt.err (!%p10661_p8)
}
  0xf7   :  { %s10665_s1 = scalar_lea.vmem %s197_s2, 16  ;;  %s10669_s0 = scalar_lea.vmem %s197_s2, 32 }
  0xf8   :  { %p10666_p9 = scmp.ne.s32.totalorder %s197_s2, %s10665_s1  ;;  %p10670_p10 = scmp.lt.s32.totalorder %s197_s2, %s197_s2 }
  0xf9   :  { %p10671_p11 = scmp.lt.s32.totalorder %s10669_s0, %s10665_s1 }
  0xfb   :  { %p10672_p12 = por %p10671_p11, %p10670_p10 }
  0xfd   :  { %p10673_p13 = pnand %p10672_p12, %p10666_p9 }
  0xff   :  { %10676 = shalt.err (!%p10673_p13)
}
 0x100   :  { %199 = dma.hbm_to_vmem [thread:$0]  %s12354_s20, 16, %s197_s2, [#allocation23]  }
 0x101   :  { %10677 = dma.done.wait [#allocation3], 4096  }
 0x102   :  { %10678 = vsyncadd [#allocation3], 4294963200 }
 0x103   :  { %10679 = dma.done.wait [#allocation5], 112  }
 0x104   :  { %10680 = vsyncadd [#allocation5], 4294967184 }
 0x105   :  { %10681 = dma.done.wait [#allocation8], 176  }
 0x106   :  { %10682 = vsyncadd [#allocation8], 4294967120 }
 0x107   :  { %10683 = dma.done.wait [#allocation11], 8208  }
 0x108   :  { %10684 = vsyncadd [#allocation11], 4294959088 }
 0x109   :  { %10685 = dma.done.wait [#allocation14], 16384  }
 0x10a   :  { %10686 = vsyncadd [#allocation14], 4294950912 }
 0x10b   :  { %10687 = dma.done.wait [#allocation17], 32896  }
 0x10c   :  { %10688 = vsyncadd [#allocation17], 4294934400 }
 0x10d   :  { %10689 = dma.done.wait [#allocation20], 4160  }
 0x10e   :  { %10690 = vsyncadd [#allocation20], 4294963136 }
 0x10f   :  { %10691 = dma.done.wait [#allocation23], 16  }
 0x110   :  { %10692 = vsyncadd [#allocation23], 4294967280  ;;  %v9559_v0 = vld [vmem:[#allocation2 + $0x4] ss:$8 sps:$4 sm:$0xff]   ;;  %v9561_v1 = vld [vmem:[#allocation2] ss:$8 sps:$4 sm:$0xff]  }
 0x111   :  { %463 = vmatprep.subr.bf16.mxu0 %v9559_v0  ;;  %v9562_v2 = vld [vmem:[#allocation2 + $0x14] ss:$8 sps:$4 sm:$0xff]   ;;  %v9564_v3 = vld [vmem:[#allocation2 + $0x10] ss:$8 sps:$4 sm:$0xff]   ;;  %v9565_v4 = vld [vmem:[#allocation2 + $0x24] ss:$8 sps:$4 sm:$0xff]  }
 0x112   :  { %464 = vmatpush1.bf16.msra.mxu0 %v9561_v1  ;;  %v9567_v5 = vld [vmem:[#allocation2 + $0x20] ss:$8 sps:$4 sm:$0xff]   ;;  %v9568_v6 = vld [vmem:[#allocation2 + $0x34] ss:$8 sps:$4 sm:$0xff]   ;;  %v9570_v7 = vld [vmem:[#allocation2 + $0x30] ss:$8 sps:$4 sm:$0xff]  }
 0x113   :  { %465 = vmatprep.subr.bf16.mxu0 %v9562_v2  ;;  %v9571_v8 = vld [vmem:[#allocation2 + $0x44] ss:$8 sps:$4 sm:$0xff]   ;;  %v9573_v9 = vld [vmem:[#allocation2 + $0x40] ss:$8 sps:$4 sm:$0xff]   ;;  %v9574_v10 = vld [vmem:[#allocation2 + $0x54] ss:$8 sps:$4 sm:$0xff]  }
 0x114   :  { %v9576_v11 = vld [vmem:[#allocation2 + $0x50] ss:$8 sps:$4 sm:$0xff]   ;;  %v9577_v12 = vld [vmem:[#allocation2 + $0x64] ss:$8 sps:$4 sm:$0xff]   ;;  %s12370_s7 = sld [smem:[#allocation34_spill]]  ;;  %v10715_v36 = vmov 0  }
 0x115   :  { %v9579_v14 = vld [vmem:[#allocation2 + $0x60] ss:$8 sps:$4 sm:$0xff]   ;;  %v9580_v15 = vld [vmem:[#allocation2 + $0x74] ss:$8 sps:$4 sm:$0xff]   ;;  %v9582_v16 = vld [vmem:[#allocation2 + $0x70] ss:$8 sps:$4 sm:$0xff]   ;;  %581 = vmatprep.mubr.bf16.mxu1 %v10715_v36 }
 0x116   :  { %466 = vmatpush1.bf16.msra.mxu0 %v9564_v3  ;;  %v9583_v17 = vld [vmem:[#allocation2 + $0x84] ss:$8 sps:$4 sm:$0xff]   ;;  %v9585_v18 = vld [vmem:[#allocation2 + $0x80] ss:$8 sps:$4 sm:$0xff]   ;;  %v9586_v19 = vld [vmem:[#allocation2 + $0x94] ss:$8 sps:$4 sm:$0xff]  }
 0x117   :  { %467 = vmatprep.subr.bf16.mxu0 %v9565_v4  ;;  %v9588_v20 = vld [vmem:[#allocation2 + $0x90] ss:$8 sps:$4 sm:$0xff]   ;;  %v9589_v21 = vld [vmem:[#allocation2 + $0xa4] ss:$8 sps:$4 sm:$0xff]   ;;  %v9591_v22 = vld [vmem:[#allocation2 + $0xa0] ss:$8 sps:$4 sm:$0xff]  }
 0x118   :  { %v9592_v23 = vld [vmem:[#allocation2 + $0xb4] ss:$8 sps:$4 sm:$0xff]   ;;  %v9594_v24 = vld [vmem:[#allocation2 + $0xb0] ss:$8 sps:$4 sm:$0xff]   ;;  %v9595_v25 = vld [vmem:[#allocation2 + $0xc4] ss:$8 sps:$4 sm:$0xff]  }
 0x119   :  { %v9597_v26 = vld [vmem:[#allocation2 + $0xc0] ss:$8 sps:$4 sm:$0xff]   ;;  %v9598_v27 = vld [vmem:[#allocation2 + $0xd4] ss:$8 sps:$4 sm:$0xff]   ;;  %v9600_v28 = vld [vmem:[#allocation2 + $0xd0] ss:$8 sps:$4 sm:$0xff]  }
 0x11a   :  { %468 = vmatpush1.bf16.msra.mxu0 %v9567_v5  ;;  %v9609_v13 = vld [vmem:[%s12370_s7 + $0x4] ss:$8 sps:$4 sm:$0xff]   ;;  %v9603_v30 = vld [vmem:[#allocation2 + $0xe0] ss:$8 sps:$4 sm:$0xff]   ;;  %v9604_v31 = vld [vmem:[#allocation2 + $0xf4] ss:$8 sps:$4 sm:$0xff]  }
 0x11b   :  { %469 = vmatprep.subr.bf16.mxu0 %v9568_v6  ;;  %495 = vmatprep.mubr.bf16.mxu0 %v9609_v13  ;;  %v9601_v29 = vld [vmem:[#allocation2 + $0xe4] ss:$8 sps:$4 sm:$0xff]   ;;  %v9606_v32 = vld [vmem:[#allocation2 + $0xf0] ss:$8 sps:$4 sm:$0xff]   ;;  %v9607_v33 = vld [vmem:[%s12370_s7] ss:$8 sps:$4 sm:$0xff]  }
 0x11c   :  { %v9610_v34 = vld [vmem:[%s12370_s7 + $0x14] ss:$8 sps:$4 sm:$0xff]   ;;  %v9612_v35 = vld [vmem:[%s12370_s7 + $0x10] ss:$8 sps:$4 sm:$0xff]   ;;  %v9620_v38 = vld [vmem:[%s12340_s6 + $0xc] ss:$20 sps:$4 sm:$0xff]  }
 0x11d   :  { %v9618_v37 = vld [vmem:[%s12340_s6 + $0x8] ss:$20 sps:$4 sm:$0xff]   ;;  %v9624_v40 = vld [vmem:[%s12340_s6 + $0x30] ss:$20 sps:$4 sm:$0xff]   ;;  %v9630_v42 = vld [vmem:[%s12340_s6 + $0x58] ss:$20 sps:$4 sm:$0xff]  }
 0x11e   :  { %470 = vmatpush1.bf16.msra.mxu0 %v9570_v7  ;;  %v9626_v39 = vld [vmem:[%s12340_s6 + $0x34] ss:$20 sps:$4 sm:$0xff]   ;;  %v9632_v41 = vld [vmem:[%s12340_s6 + $0x5c] ss:$20 sps:$4 sm:$0xff]   ;;  %v9638_v43 = vld [vmem:[%s12340_s6 + $0x84] ss:$20 sps:$4 sm:$0xff]  }
 0x11f   :  { %471 = vmatprep.subr.bf16.mxu0 %v9571_v8  ;;  %v9636_v44 = vld [vmem:[%s12340_s6 + $0x80] ss:$20 sps:$4 sm:$0xff]   ;;  %v9642_v46 = vld [vmem:[%s12340_s6 + $0xa8] ss:$20 sps:$4 sm:$0xff]   ;;  %v9648_v48 = vld [vmem:[%s12340_s6 + $0xd0] ss:$20 sps:$4 sm:$0xff]  }
 0x120   :  { %v9644_v45 = vld [vmem:[%s12340_s6 + $0xac] ss:$20 sps:$4 sm:$0xff]   ;;  %v9650_v47 = vld [vmem:[%s12340_s6 + $0xd4] ss:$20 sps:$4 sm:$0xff]   ;;  %v9656_v49 = vld [vmem:[%s12340_s6 + $0xfc] ss:$20 sps:$4 sm:$0xff]  }
 0x121   :  { %v9654_v50 = vld [vmem:[%s12340_s6 + $0xf8] ss:$20 sps:$4 sm:$0xff]   ;;  %v9660_v52 = vld [vmem:[%s12340_s6 + $0x120] ss:$20 sps:$4 sm:$0xff]   ;;  %v9666_v54 = vld [vmem:[%s12340_s6 + $0x148] ss:$20 sps:$4 sm:$0xff]  }
 0x122   :  { %472 = vmatpush1.bf16.msra.mxu0 %v9573_v9  ;;  %v9662_v51 = vld [vmem:[%s12340_s6 + $0x124] ss:$20 sps:$4 sm:$0xff]   ;;  %v9668_v53 = vld [vmem:[%s12340_s6 + $0x14c] ss:$20 sps:$4 sm:$0xff]   ;;  %v9674_v55 = vld [vmem:[%s12340_s6 + $0x174] ss:$20 sps:$4 sm:$0xff]  }
 0x123   :  { %473 = vmatprep.subr.bf16.mxu0 %v9574_v10  ;;  %v9672_v56 = vld [vmem:[%s12340_s6 + $0x170] ss:$20 sps:$4 sm:$0xff]   ;;  %v9678_v58 = vld [vmem:[%s12340_s6 + $0x198] ss:$20 sps:$4 sm:$0xff]   ;;  %v9684_v60 = vld [vmem:[%s12340_s6 + $0x1c0] ss:$20 sps:$4 sm:$0xff]  }
 0x124   :  { %v9680_v57 = vld [vmem:[%s12340_s6 + $0x19c] ss:$20 sps:$4 sm:$0xff]   ;;  %v9686_v59 = vld [vmem:[%s12340_s6 + $0x1c4] ss:$20 sps:$4 sm:$0xff]   ;;  %v9692_v61 = vld [vmem:[%s12340_s6 + $0x1ec] ss:$20 sps:$4 sm:$0xff]  }
 0x125   :  { %v9690_v62 = vld [vmem:[%s12340_s6 + $0x1e8] ss:$20 sps:$4 sm:$0xff]   ;;  %v9696_v0 = vld [vmem:[%s12340_s6 + $0x210] ss:$20 sps:$4 sm:$0xff]   ;;  %s12371_s4 = sld [smem:[#allocation32_spill]]  ;;  %vm542_vm0 = vcmask 261120  }
 0x126   :  { %474 = vmatpush1.bf16.msra.mxu0 %v9576_v11  ;;  %v9698_v63 = vld [vmem:[%s12340_s6 + $0x214] ss:$20 sps:$4 sm:$0xff]   ;;  %v9617_v13 = vld [vmem:[%s12340_s6 + $0x4] ss:$20 sps:$4 sm:$0xff]   ;;  %s12372_s5 = sld [smem:[#allocation33_spill]]  ;;  %vm10717_vm1 = vmmov 0  }
 0x127   :  { %475 = vmatprep.subr.bf16.mxu0 %v9577_v12  ;;  %vm3842_vm2 = vcmask 523264  }
 0x12a   :  { %476 = vmatpush1.bf16.msra.mxu0 %v9579_v14 }
 0x12b   :  { %477 = vmatprep.subr.bf16.mxu0 %v9580_v15  ;;  %v11111_v14 = vld [vmem:[%s12371_s4] sm:$0xff]  }
 0x12c   :  { %v9615_v15 = vld [vmem:[%s12340_s6] ss:$20 sps:$4 sm:$0xff]  }
 0x12e   :  { %478 = vmatpush1.bf16.msra.mxu0 %v9582_v16  ;;  %v9623_v16 = vld [vmem:[%s12340_s6 + $0x2c] ss:$20 sps:$4 sm:$0xff]  }
 0x12f   :  { %479 = vmatprep.subr.bf16.mxu0 %v9583_v17  ;;  %v9621_v17 = vld [vmem:[%s12340_s6 + $0x28] ss:$20 sps:$4 sm:$0xff]  }
 0x132   :  { %480 = vmatpush1.bf16.msra.mxu0 %v9585_v18  ;;  %v9629_v18 = vld [vmem:[%s12340_s6 + $0x54] ss:$20 sps:$4 sm:$0xff]  }
 0x133   :  { %481 = vmatprep.subr.bf16.mxu0 %v9586_v19  ;;  %v11131_v19 = vld [vmem:[%s12371_s4 + $0x8] sm:$0xff]  }
 0x136   :  { %482 = vmatpush1.bf16.msra.mxu0 %v9588_v20  ;;  %v9627_v20 = vld [vmem:[%s12340_s6 + $0x50] ss:$20 sps:$4 sm:$0xff]  }
 0x137   :  { %483 = vmatprep.subr.bf16.mxu0 %v9589_v21  ;;  %v9635_v21 = vld [vmem:[%s12340_s6 + $0x7c] ss:$20 sps:$4 sm:$0xff]  }
 0x13a   :  { %484 = vmatpush1.bf16.msra.mxu0 %v9591_v22  ;;  %v9633_v22 = vld [vmem:[%s12340_s6 + $0x78] ss:$20 sps:$4 sm:$0xff]  }
 0x13b   :  { %485 = vmatprep.subr.bf16.mxu0 %v9592_v23  ;;  %v9641_v23 = vld [vmem:[%s12340_s6 + $0xa4] ss:$20 sps:$4 sm:$0xff]  }
 0x13e   :  { %486 = vmatpush1.bf16.msra.mxu0 %v9594_v24  ;;  %v9639_v24 = vld [vmem:[%s12340_s6 + $0xa0] ss:$20 sps:$4 sm:$0xff]  }
 0x13f   :  { %487 = vmatprep.subr.bf16.mxu0 %v9595_v25  ;;  %v9647_v25 = vld [vmem:[%s12340_s6 + $0xcc] ss:$20 sps:$4 sm:$0xff]  }
 0x142   :  { %488 = vmatpush1.bf16.msra.mxu0 %v9597_v26  ;;  %v9645_v26 = vld [vmem:[%s12340_s6 + $0xc8] ss:$20 sps:$4 sm:$0xff]  }
 0x143   :  { %489 = vmatprep.subr.bf16.mxu0 %v9598_v27  ;;  %v9653_v27 = vld [vmem:[%s12340_s6 + $0xf4] ss:$20 sps:$4 sm:$0xff]  }
 0x146   :  { %490 = vmatpush1.bf16.msra.mxu0 %v9600_v28  ;;  %v9651_v28 = vld [vmem:[%s12340_s6 + $0xf0] ss:$20 sps:$4 sm:$0xff]  }
 0x147   :  { %491 = vmatprep.subr.bf16.mxu0 %v9601_v29  ;;  %v9659_v29 = vld [vmem:[%s12340_s6 + $0x11c] ss:$20 sps:$4 sm:$0xff]  }
 0x14a   :  { %492 = vmatpush1.bf16.msra.mxu0 %v9603_v30  ;;  %v9657_v30 = vld [vmem:[%s12340_s6 + $0x118] ss:$20 sps:$4 sm:$0xff]  }
 0x14b   :  { %493 = vmatprep.subr.bf16.mxu0 %v9604_v31  ;;  %v9665_v31 = vld [vmem:[%s12340_s6 + $0x144] ss:$20 sps:$4 sm:$0xff]  }
 0x14e   :  { %494 = vmatpush1.bf16.msra.mxu0 %v9606_v32  ;;  %v9663_v32 = vld [vmem:[%s12340_s6 + $0x140] ss:$20 sps:$4 sm:$0xff]  }
 0x14f   :  { %1179 = vmatprep.subr.bf16.mxu0 %v9620_v38  ;;  %v9683_v38 = vld [vmem:[%s12340_s6 + $0x1bc] ss:$20 sps:$4 sm:$0xff]  }
 0x151   :  { %496 = vmatmul.mubr.bf16.vlgmr.msra.gmra.mrb[0].mxu0 %v9607_v33  ;;  %v9671_v33 = vld [vmem:[%s12340_s6 + $0x16c] ss:$20 sps:$4 sm:$0xff]  }
 0x152   :  { %505 = vmatprep.mubr.bf16.mxu0 %v9610_v34  ;;  %1180 = vmatpush1.bf16.msra.mxu0 %v9618_v37  ;;  %v9669_v34 = vld [vmem:[%s12340_s6 + $0x168] ss:$20 sps:$4 sm:$0xff]   ;;  %v9675_v37 = vld [vmem:[%s12340_s6 + $0x190] ss:$20 sps:$4 sm:$0xff]  }
 0x153   :  { %1181 = vmatprep.subr.bf16.mxu0 %v9626_v39  ;;  %v9681_v39 = vld [vmem:[%s12340_s6 + $0x1b8] ss:$20 sps:$4 sm:$0xff]  }
 0x156   :  { %1182 = vmatpush1.bf16.msra.mxu0 %v9624_v40  ;;  %v9689_v40 = vld [vmem:[%s12340_s6 + $0x1e4] ss:$20 sps:$4 sm:$0xff]  }
 0x157   :  { %1183 = vmatprep.subr.bf16.mxu0 %v9632_v41  ;;  %v9687_v41 = vld [vmem:[%s12340_s6 + $0x1e0] ss:$20 sps:$4 sm:$0xff]  }
 0x159   :  { %506 = vmatmul.mubr.bf16.gmra.mrb[4].mxu0 %v9612_v35  ;;  %v9677_v35 = vld [vmem:[%s12340_s6 + $0x194] ss:$20 sps:$4 sm:$0xff]  }
 0x15a   :  { %1184 = vmatpush1.bf16.msra.mxu0 %v9630_v42  ;;  %v9695_v42 = vld [vmem:[%s12340_s6 + $0x20c] ss:$20 sps:$4 sm:$0xff]  }
 0x15b   :  { %1185 = vmatprep.subr.bf16.mxu0 %v9638_v43  ;;  %v9693_v43 = vld [vmem:[%s12340_s6 + $0x208] ss:$20 sps:$4 sm:$0xff]  }
 0x15e   :  { %1186 = vmatpush1.bf16.msra.mxu0 %v9636_v44  ;;  %v9701_v44 = vld [vmem:[%s12340_s6 + $0x234] ss:$20 sps:$4 sm:$0xff]  }
 0x15f   :  { %1187 = vmatprep.subr.bf16.mxu0 %v9644_v45  ;;  %v9699_v45 = vld [vmem:[%s12340_s6 + $0x230] ss:$20 sps:$4 sm:$0xff]  }
 0x162   :  { %1188 = vmatpush1.bf16.msra.mxu0 %v9642_v46  ;;  %v9704_v46 = vld [vmem:[%s12340_s6 + $0x23c] ss:$20 sps:$4 sm:$0xff]  }
 0x163   :  { %1189 = vmatprep.subr.bf16.mxu0 %v9650_v47  ;;  %v9702_v47 = vld [vmem:[%s12340_s6 + $0x238] ss:$20 sps:$4 sm:$0xff]  }
 0x166   :  { %1190 = vmatpush1.bf16.msra.mxu0 %v9648_v48  ;;  %v9707_v48 = vld [vmem:[%s12340_s6 + $0x25c] ss:$20 sps:$4 sm:$0xff]  }
 0x167   :  { %1191 = vmatprep.subr.bf16.mxu0 %v9656_v49  ;;  %v9705_v49 = vld [vmem:[%s12340_s6 + $0x258] ss:$20 sps:$4 sm:$0xff]  }
 0x16a   :  { %1192 = vmatpush1.bf16.msra.mxu0 %v9654_v50  ;;  %v9710_v50 = vld [vmem:[%s12340_s6 + $0x264] ss:$20 sps:$4 sm:$0xff]  }
 0x16b   :  { %1193 = vmatprep.subr.bf16.mxu0 %v9662_v51  ;;  %v9708_v51 = vld [vmem:[%s12340_s6 + $0x260] ss:$20 sps:$4 sm:$0xff]  }
 0x16e   :  { %1194 = vmatpush1.bf16.msra.mxu0 %v9660_v52  ;;  %v9711_v52 = vld [vmem:[%s12340_s6 + $0x150] ss:$20 sps:$4 sm:$0xff]  }
 0x16f   :  { %1195 = vmatprep.subr.bf16.mxu0 %v9668_v53  ;;  %v522_v53 = vlaneseq }
 0x172   :  { %1196 = vmatpush1.bf16.msra.mxu0 %v9666_v54  ;;  %v11231_v54 = vshrl.u32 %v522_v53, 7 }
 0x173   :  { %1197 = vmatprep.subr.bf16.mxu0 %v9674_v55 }
 0x174   :  { %v11234_v55 = vsub.s32 0, %v11231_v54 }
 0x176   :  { %1198 = vmatpush1.bf16.msra.mxu0 %v9672_v56  ;;  %v520_v56 = vld [vmem:[#allocation4] sm:$0x3] }
 0x177   :  { %1199 = vmatprep.subr.bf16.mxu0 %v9680_v57  ;;  %v11237_v57 = vsub.s32 1, %v11231_v54 }
 0x17a   :  { %1200 = vmatpush1.bf16.msra.mxu0 %v9678_v58  ;;  %v525_v58 = vrot.slane %v520_v56, %v11234_v55 }
 0x17b   :  { %1201 = vmatprep.subr.bf16.mxu0 %v9686_v59  ;;  %v529_v59 = vrot.slane %v520_v56, %v11237_v57 }
 0x17e   :  { %1202 = vmatpush1.bf16.msra.mxu0 %v9684_v60 }
 0x17f   :  { %1203 = vmatprep.subr.bf16.mxu0 %v9692_v61 }
 0x182   :  { %1204 = vmatpush1.bf16.msra.mxu0 %v9690_v62 }
 0x183   :  { %1205 = vmatprep.subr.bf16.mxu0 %v9698_v63 }
 0x186   :  { %1206 = vmatpush1.bf16.msra.mxu0 %v9696_v0 }
 0x187   :  { %1207 = vmatprep.subr.bf16.mxu0 %v9704_v46 }
 0x18a   :  { %1208 = vmatpush1.bf16.msra.mxu0 %v9702_v47 }
 0x18b   :  { %1209 = vmatprep.subr.bf16.mxu0 %v9710_v50 }
 0x18e   :  { %1210 = vmatpush1.bf16.msra.mxu0 %v9708_v51 }
 0x224   :  { %v497_v1 = vpop.f32.mrb[0].mxu0 }
 0x225   :  { %v499_v2 = vpop.f32.mrb[1].mxu0 }
 0x226   :  { %v501_v3 = vpop.f32.mrb[2].mxu0 }
 0x227   :  { %v516_v4 = vpack.c.bf16 %v501_v3, %v497_v1  ;;  %v503_v5 = vpop.f32.mrb[3].mxu0 }
 0x228   :  { %v517_v6 = vpack.c.bf16 %v503_v5, %v499_v2 }
 0x22a   :  { %549 = vmatprep.subr.bf16.mxu1 %v517_v6 }
 0x22b   :  { %550 = vmatpush1.bf16.msra.mxu1 %v516_v4 }
 0x22c   :  { %v507_v7 = vpop.f32.mrb[4].mxu0 }
 0x22d   :  { %v509_v8 = vpop.f32.mrb[5].mxu0 }
 0x22e   :  { %v511_v9 = vpop.f32.mrb[6].mxu0 }
 0x22f   :  { %v518_v10 = vpack.c.bf16 %v511_v9, %v507_v7  ;;  %v513_v11 = vpop.f32.mrb[7].mxu0 }
 0x230   :  { %v519_v12 = vpack.c.bf16 %v513_v11, %v509_v8  ;;  %v9712_v11 = vld [vmem:[%s12340_s6 + $0x10] ss:$20 sps:$4 sm:$0xff]  }
 0x232   :  { %551 = vmatprep.subr.bf16.mxu1 %v519_v12 }
 0x233   :  { %552 = vmatpush1.bf16.msra.mxu1 %v518_v10 }
 0x234   :  { %1126 = vmatprep.subr.bf16.mxu1 %v9617_v13 }
 0x236   :  { %8321 = vmatmul.mubr.msk.bf16.vlgmr.msra.gmra.mrb[0].mxu1 %vm542_vm0, %v11111_v14 }
 0x237   :  { %591 = vmatprep.mubr.bf16.mxu1 %v10715_v36  ;;  %1127 = vmatpush1.bf16.msra.mxu1 %v9615_v15  ;;  %v9713_v15 = vld [vmem:[%s12340_s6 + $0x178] ss:$20 sps:$4 sm:$0xff]  }
 0x238   :  { %1128 = vmatprep.subr.bf16.mxu1 %v9623_v16 }
 0x23b   :  { %1129 = vmatpush1.bf16.msra.mxu1 %v9621_v17 }
 0x23c   :  { %1130 = vmatprep.subr.bf16.mxu1 %v9629_v18 }
 0x23e   :  { %8322 = vmatmul.mubr.msk.bf16.gmra.mrb[4].mxu1 %vm542_vm0, %v11131_v19 }
 0x23f   :  { %1131 = vmatpush1.bf16.msra.mxu1 %v9627_v20 }
 0x240   :  { %1132 = vmatprep.subr.bf16.mxu1 %v9635_v21 }
 0x243   :  { %1133 = vmatpush1.bf16.msra.mxu1 %v9633_v22  ;;  %v9714_v22 = vld [vmem:[%s12340_s6 + $0x38] ss:$20 sps:$4 sm:$0xff]  }
 0x244   :  { %1134 = vmatprep.subr.bf16.mxu1 %v9641_v23 }
 0x247   :  { %1135 = vmatpush1.bf16.msra.mxu1 %v9639_v24 }
 0x248   :  { %1136 = vmatprep.subr.bf16.mxu1 %v9647_v25  ;;  %v9715_v25 = vld [vmem:[%s12340_s6 + $0x1a0] ss:$20 sps:$4 sm:$0xff]  }
 0x24b   :  { %1137 = vmatpush1.bf16.msra.mxu1 %v9645_v26 }
 0x24c   :  { %1138 = vmatprep.subr.bf16.mxu1 %v9653_v27 }
 0x24f   :  { %1139 = vmatpush1.bf16.msra.mxu1 %v9651_v28 }
 0x250   :  { %1140 = vmatprep.subr.bf16.mxu1 %v9659_v29 }
 0x253   :  { %1141 = vmatpush1.bf16.msra.mxu1 %v9657_v30  ;;  %v9716_v30 = vld [vmem:[%s12340_s6 + $0x60] ss:$20 sps:$4 sm:$0xff]  }
 0x254   :  { %1142 = vmatprep.subr.bf16.mxu1 %v9665_v31  ;;  %v9717_v31 = vld [vmem:[%s12340_s6 + $0x1c8] ss:$20 sps:$4 sm:$0xff]  }
 0x257   :  { %1143 = vmatpush1.bf16.msra.mxu1 %v9663_v32  ;;  %v9718_v32 = vld [vmem:[%s12340_s6 + $0x88] ss:$20 sps:$4 sm:$0xff]  }
 0x258   :  { %1144 = vmatprep.subr.bf16.mxu1 %v9671_v33  ;;  %v9719_v33 = vld [vmem:[%s12340_s6 + $0x1f0] ss:$20 sps:$4 sm:$0xff]  }
 0x25b   :  { %1145 = vmatpush1.bf16.msra.mxu1 %v9669_v34  ;;  %v9720_v34 = vld [vmem:[%s12340_s6 + $0xb0] ss:$20 sps:$4 sm:$0xff]  }
 0x25c   :  { %1146 = vmatprep.subr.bf16.mxu1 %v9677_v35  ;;  %v9721_v35 = vld [vmem:[%s12340_s6 + $0x218] ss:$20 sps:$4 sm:$0xff]  }
 0x25f   :  { %1147 = vmatpush1.bf16.msra.mxu1 %v9675_v37  ;;  %v9722_v37 = vld [vmem:[%s12340_s6 + $0xd8] ss:$20 sps:$4 sm:$0xff]  }
 0x260   :  { %1148 = vmatprep.subr.bf16.mxu1 %v9683_v38  ;;  %v9723_v38 = vld [vmem:[%s12340_s6 + $0x240] ss:$20 sps:$4 sm:$0xff]  }
 0x263   :  { %1149 = vmatpush1.bf16.msra.mxu1 %v9681_v39  ;;  %v9724_v39 = vld [vmem:[%s12340_s6 + $0x100] ss:$20 sps:$4 sm:$0xff]  }
 0x264   :  { %1150 = vmatprep.subr.bf16.mxu1 %v9689_v40  ;;  %v9725_v40 = vld [vmem:[%s12340_s6 + $0x268] ss:$20 sps:$4 sm:$0xff]  }
 0x267   :  { %1151 = vmatpush1.bf16.msra.mxu1 %v9687_v41  ;;  %v9726_v41 = vld [vmem:[%s12340_s6 + $0x128] ss:$20 sps:$4 sm:$0xff]  }
 0x268   :  { %1152 = vmatprep.subr.bf16.mxu1 %v9695_v42 }
 0x26b   :  { %1153 = vmatpush1.bf16.msra.mxu1 %v9693_v43 }
 0x26c   :  { %1154 = vmatprep.subr.bf16.mxu1 %v9701_v44 }
 0x26f   :  { %1155 = vmatpush1.bf16.msra.mxu1 %v9699_v45 }
 0x270   :  { %1156 = vmatprep.subr.bf16.mxu1 %v9707_v48 }
 0x273   :  { %1157 = vmatpush1.bf16.msra.mxu1 %v9705_v49 }
 0x274   :  { %9181 = vmatprep.subr.bf16.mxu1 %v9711_v52 }
 0x309   :  { %v583_v60 = vpop.f32.mrb[0].mxu1 }
 0x30a   :  { %v584_v61 = vadd.f32 %v583_v60, %v525_v58  ;;  %v585_v62 = vpop.f32.mrb[1].mxu1 }
 0x30b   :  { %v586_v63 = vadd.f32 %v585_v62, %v529_v59  ;;  %v587_v0 = vpop.f32.mrb[2].mxu1 }
 0x30c   :  { %v588_v1 = vadd.f32 %v587_v0, %v525_v58  ;;  %v589_v2 = vpop.f32.mrb[3].mxu1  ;;  %v602_v4 = vmax.f32 %v584_v61, 0.0 }
 0x30d   :  { %v590_v3 = vadd.f32 %v589_v2, %v529_v59  ;;  %v603_v6 = vmax.f32 %v586_v63, 0.0 }
 0x30e   :  { %v604_v5 = vmax.f32 %v588_v1, 0.0 }
 0x30f   :  { %v605_v7 = vmax.f32 %v590_v3, 0.0 }
 0x310   :  { %v610_v8 = vpack.c.bf16 %v604_v5, %v602_v4  ;;  %v9729_v5 = vld [vmem:[%s12342_s8 + $0x4] ss:$12 sps:$4 sm:$0xff]  }
 0x311   :  { %v611_v9 = vpack.c.bf16 %v605_v7, %v603_v6  ;;  %v593_v10 = vpop.f32.mrb[4].mxu1  ;;  %v9727_v6 = vld [vmem:[%s12342_s8] ss:$12 sps:$4 sm:$0xff]   ;;  %v9732_v7 = vld [vmem:[%s12342_s8 + $0x1c] ss:$12 sps:$4 sm:$0xff]  }
 0x312   :  { %v594_v12 = vadd.f32 %v593_v10, %v525_v58  ;;  %v595_v13 = vpop.f32.mrb[5].mxu1  ;;  %v9733_v10 = vld [vmem:[%s12342_s8 + $0x30] ss:$12 sps:$4 sm:$0xff]  }
 0x313   :  { %v596_v16 = vadd.f32 %v595_v13, %v529_v59  ;;  %v597_v17 = vpop.f32.mrb[6].mxu1  ;;  %1158 = vmatprep.mubr.bf16.mxu1 %v611_v9  ;;  %1211 = vmatprep.mubr.bf16.mxu0 %v611_v9 }
 0x314   :  { %v598_v18 = vadd.f32 %v597_v17, %v525_v58  ;;  %v599_v20 = vpop.f32.mrb[7].mxu1  ;;  %1159 = vmatmul.mubr.bf16.vlgmr.msra.gmra.mrb[8].mxu1 %v610_v8  ;;  %1212 = vmatmul.mubr.bf16.vlgmr.msra.gmra.mrb[8].mxu0 %v610_v8  ;;  %v606_v23 = vmax.f32 %v594_v12, 0.0  ;;  %v9736_v17 = vld [vmem:[%s12342_s8 + $0x48] ss:$12 sps:$4 sm:$0xff]  }
 0x315   :  { %v600_v21 = vadd.f32 %v599_v20, %v529_v59  ;;  %9182 = vmatpush3.bf16.msra.mxu1 %v9712_v11  ;;  %v607_v26 = vmax.f32 %v596_v16, 0.0  ;;  %v9741_v20 = vld [vmem:[%s12342_s8 + $0x64] ss:$12 sps:$4 sm:$0xff]  }
 0x316   :  { %v608_v24 = vmax.f32 %v598_v18, 0.0  ;;  %9183 = vmatprep.subr.bf16.mxu1 %v9713_v15 }
 0x317   :  { %v609_v27 = vmax.f32 %v600_v21, 0.0 }
 0x318   :  { %v612_v28 = vpack.c.bf16 %v608_v24, %v606_v23  ;;  %v9744_v24 = vld [vmem:[%s12342_s8 + $0x7c] ss:$12 sps:$4 sm:$0xff]  }
 0x319   :  { %v613_v29 = vpack.c.bf16 %v609_v27, %v607_v26  ;;  %9184 = vmatpush3.bf16.msra.mxu1 %v9714_v22  ;;  %v9739_v22 = vld [vmem:[%s12342_s8 + $0x60] ss:$12 sps:$4 sm:$0xff]  }
 0x31a   :  { %9185 = vmatprep.subr.bf16.mxu1 %v9715_v25 }
 0x31b   :  { %1168 = vmatprep.mubr.bf16.mxu1 %v613_v29  ;;  %1221 = vmatprep.mubr.bf16.mxu0 %v613_v29 }
 0x31c   :  { %1169 = vmatmul.mubr.bf16.gmra.mrb[12].mxu1 %v612_v28  ;;  %1222 = vmatmul.mubr.bf16.gmra.mrb[12].mxu0 %v612_v28 }
 0x31d   :  { %9186 = vmatpush3.bf16.msra.mxu1 %v9716_v30  ;;  %1264 = vmatprep.mubr.bf16.mxu1 %v611_v9  ;;  %v9735_v9 = vld [vmem:[%s12342_s8 + $0x34] ss:$12 sps:$4 sm:$0xff]  }
 0x31e   :  { %9187 = vmatprep.subr.bf16.mxu1 %v9717_v31  ;;  %1350 = vmatprep.mubr.bf16.mxu0 %v10715_v36  ;;  %v9747_v31 = vld [vmem:[%s12342_s8 + $0x94] ss:$12 sps:$4 sm:$0xff]  }
 0x321   :  { %9188 = vmatpush3.bf16.msra.mxu1 %v9718_v32 }
 0x322   :  { %9189 = vmatprep.subr.bf16.mxu1 %v9719_v33  ;;  %v9754_v33 = vld [vmem:[%s12342_s8 + $0xc8] ss:$12 sps:$4 sm:$0xff]  }
 0x325   :  { %9190 = vmatpush3.bf16.msra.mxu1 %v9720_v34  ;;  %v9745_v34 = vld [vmem:[%s12342_s8 + $0x90] ss:$12 sps:$4 sm:$0xff]  }
 0x326   :  { %9191 = vmatprep.subr.bf16.mxu1 %v9721_v35  ;;  %v9750_v35 = vld [vmem:[%s12342_s8 + $0xac] ss:$12 sps:$4 sm:$0xff]  }
 0x329   :  { %9192 = vmatpush3.bf16.msra.mxu1 %v9722_v37  ;;  %v9755_v37 = vld [vmem:[%s12342_s8 + $0x8] ss:$12 sps:$4 sm:$0xff]  }
 0x32a   :  { %9193 = vmatprep.subr.bf16.mxu1 %v9723_v38  ;;  %v9759_v38 = vld [vmem:[%s12342_s8 + $0xe0] ss:$12 sps:$4 sm:$0xff]  }
 0x32d   :  { %9194 = vmatpush3.bf16.msra.mxu1 %v9724_v39  ;;  %v9748_v39 = vld [vmem:[%s12342_s8 + $0xa8] ss:$12 sps:$4 sm:$0xff]  }
 0x32e   :  { %9195 = vmatprep.subr.bf16.mxu1 %v9725_v40  ;;  %v9753_v40 = vld [vmem:[%s12342_s8 + $0xc4] ss:$12 sps:$4 sm:$0xff]  }
 0x331   :  { %9196 = vmatpush3.bf16.msra.mxu1 %v9726_v41  ;;  %v9760_v41 = vld [vmem:[%s12342_s8 + $0x20] ss:$12 sps:$4 sm:$0xff]  }
 0x334   :  { %1265 = vmatmul.mubr.bf16.vlgmr.msra.gmra.mrb[16].mxu1 %v610_v8  ;;  %v9730_v8 = vld [vmem:[%s12342_s8 + $0x18] ss:$12 sps:$4 sm:$0xff]  }
 0x335   :  { %1272 = vmatprep.mubr.bf16.mxu1 %v613_v29  ;;  %v9742_v29 = vld [vmem:[%s12342_s8 + $0x78] ss:$12 sps:$4 sm:$0xff]  }
 0x33c   :  { %1273 = vmatmul.mubr.bf16.gmra.mrb[20].mxu1 %v612_v28 }
 0x33d   :  { %1360 = vmatprep.mubr.bf16.mxu1 %v10715_v36 }
 0x3e7   :  { %v1160_v42 = vpop.f32.mrb[8].mxu1  ;;  %v1213_v43 = vpop.f32.mrb[8].mxu0 }
 0x3e8   :  { %v1162_v44 = vpop.f32.mrb[9].mxu1  ;;  %v1215_v45 = vpop.f32.mrb[9].mxu0 }
 0x3e9   :  { %v1164_v46 = vpop.f32.mrb[10].mxu1  ;;  %v1217_v47 = vpop.f32.mrb[10].mxu0 }
 0x3ea   :  { %v1281_v48 = vpack.c.bf16 %v1164_v46, %v1160_v42  ;;  %v1283_v49 = vpack.c.bf16 %v1217_v47, %v1213_v43  ;;  %v1166_v50 = vpop.f32.mrb[11].mxu1  ;;  %v1219_v51 = vpop.f32.mrb[11].mxu0  ;;  %v9764_v42 = vld [vmem:[%s12342_s8 + $0xf8] ss:$12 sps:$4 sm:$0xff]   ;;  %v9758_v43 = vld [vmem:[%s12342_s8 + $0xdc] ss:$12 sps:$4 sm:$0xff]  }
 0x3eb   :  { %v1282_v52 = vpack.c.bf16 %v1166_v50, %v1162_v44  ;;  %v1284_v53 = vpack.c.bf16 %v1219_v51, %v1215_v45  ;;  %v9765_v44 = vld [vmem:[%s12342_s8 + $0x38] ss:$12 sps:$4 sm:$0xff]   ;;  %v9769_v45 = vld [vmem:[%s12342_s8 + $0x110] ss:$12 sps:$4 sm:$0xff]   ;;  %v9763_v47 = vld [vmem:[%s12342_s8 + $0xf4] ss:$12 sps:$4 sm:$0xff]  }
 0x3ec   :  { %v9756_v46 = vld [vmem:[%s12342_s8 + $0xd8] ss:$12 sps:$4 sm:$0xff]   ;;  %v9761_v50 = vld [vmem:[%s12342_s8 + $0xf0] ss:$12 sps:$4 sm:$0xff]  }
 0x3ed   :  { %1318 = vmatprep.subr.bf16.mxu0 %v1282_v52  ;;  %9462 = vmatprep.subr.bf16.mxu1 %v1282_v52  ;;  %v9768_v51 = vld [vmem:[%s12342_s8 + $0x10c] ss:$12 sps:$4 sm:$0xff]   ;;  %v9775_v52 = vld [vmem:[%s12342_s8 + $0x68] ss:$12 sps:$4 sm:$0xff]  }
 0x3ee   :  { %1319 = vmatpush1.bf16.msra.mxu0 %v1281_v48  ;;  %9464 = vmatpush1.bf16.msra.mxu1 %v1281_v48  ;;  %v9770_v48 = vld [vmem:[%s12342_s8 + $0x50] ss:$12 sps:$4 sm:$0xff]  }
 0x3ef   :  { %v1170_v56 = vpop.f32.mrb[12].mxu1  ;;  %v1223_v58 = vpop.f32.mrb[12].mxu0 }
 0x3f0   :  { %v1172_v59 = vpop.f32.mrb[13].mxu1  ;;  %v1225_v60 = vpop.f32.mrb[13].mxu0 }
 0x3f1   :  { %v1174_v61 = vpop.f32.mrb[14].mxu1  ;;  %v1227_v62 = vpop.f32.mrb[14].mxu0 }
 0x3f2   :  { %v1286_v63 = vpack.c.bf16 %v1174_v61, %v1170_v56  ;;  %v1288_v0 = vpack.c.bf16 %v1227_v62, %v1223_v58  ;;  %v1176_v1 = vpop.f32.mrb[15].mxu1  ;;  %v1229_v2 = vpop.f32.mrb[15].mxu0  ;;  %v9766_v56 = vld [vmem:[%s12342_s8 + $0x108] ss:$12 sps:$4 sm:$0xff]   ;;  %v9773_v58 = vld [vmem:[%s12342_s8 + $0x124] ss:$12 sps:$4 sm:$0xff]  }
 0x3f3   :  { %v1287_v3 = vpack.c.bf16 %v1176_v1, %v1172_v59  ;;  %v1289_v4 = vpack.c.bf16 %v1229_v2, %v1225_v60  ;;  %v9780_v59 = vld [vmem:[%s12342_s8 + $0x80] ss:$12 sps:$4 sm:$0xff]   ;;  %v9778_v61 = vld [vmem:[%s12342_s8 + $0x13c] ss:$12 sps:$4 sm:$0xff]   ;;  %v9776_v62 = vld [vmem:[%s12342_s8 + $0x138] ss:$12 sps:$4 sm:$0xff]  }
 0x3f4   :  { %v9771_v60 = vld [vmem:[%s12342_s8 + $0x120] ss:$12 sps:$4 sm:$0xff]   ;;  %v9781_v1 = vld [vmem:[%s12342_s8 + $0x150] ss:$12 sps:$4 sm:$0xff]   ;;  %v9785_v2 = vld [vmem:[%s12342_s8 + $0x98] ss:$12 sps:$4 sm:$0xff]  }
 0x3f5   :  { %1320 = vmatprep.subr.bf16.mxu0 %v1287_v3  ;;  %9463 = vmatprep.subr.bf16.mxu1 %v1287_v3  ;;  %v9788_v3 = vld [vmem:[%s12342_s8 + $0x16c] ss:$12 sps:$4 sm:$0xff]  }
 0x3f6   :  { %1321 = vmatpush1.bf16.msra.mxu0 %v1286_v63  ;;  %9465 = vmatpush1.bf16.msra.mxu1 %v1286_v63  ;;  %v9783_v63 = vld [vmem:[%s12342_s8 + $0x154] ss:$12 sps:$4 sm:$0xff]  }
 0x3f7   :  { %1371 = vmatprep.subr.bf16.mxu1 %v1284_v53  ;;  %v9779_v53 = vld [vmem:[%s12342_s8 + $0x140] ss:$12 sps:$4 sm:$0xff]  }
 0x3f9   :  { %8403 = vmatmul.mubr.msk.bf16.vlgmr.msra.gmra.mrb[16].mxu0 %vm542_vm0, %v11111_v14  ;;  %8404 = vmatmul.mubr.msk.bf16.vlgmr.msra.gmra.mrb[24].mxu1 %vm542_vm0, %v11131_v19 }
 0x3fa   :  { %1372 = vmatpush1.bf16.msra.mxu1 %v1283_v49  ;;  %1403 = vmatprep.mubr.bf16.mxu1 %v10715_v36  ;;  %v9774_v49 = vld [vmem:[%s12342_s8 + $0x128] ss:$12 sps:$4 sm:$0xff]  }
 0x3fb   :  { %1373 = vmatprep.subr.bf16.mxu1 %v1289_v4  ;;  %9422 = vmatprep.mubr.msk.bf16.mxu0 %vm542_vm0, %v11111_v14  ;;  %v9789_v4 = vld [vmem:[%s12342_s8 + $0x170] ss:$12 sps:$4 sm:$0xff]  }
 0x3fe   :  { %1374 = vmatpush1.bf16.msra.mxu1 %v1288_v0  ;;  %v9784_v0 = vld [vmem:[%s12342_s8 + $0x158] ss:$12 sps:$4 sm:$0xff]  }
 0x3ff   :  { %2303 = vmatprep.subr.bf16.mxu1 %v9729_v5  ;;  %v9786_v5 = vld [vmem:[%s12342_s8 + $0x168] ss:$12 sps:$4 sm:$0xff]  }
 0x401   :  { %8405 = vmatmul.mubr.msk.bf16.vlgmr.msra.gmra.mrb[28].mxu1 %vm542_vm0, %v11111_v14  ;;  %v9738_v14 = vld [vmem:[%s12342_s8 + $0x4c] ss:$12 sps:$4 sm:$0xff]  }
 0x402   :  { %1413 = vmatprep.mubr.bf16.mxu1 %v10715_v36  ;;  %2304 = vmatpush1.bf16.msra.mxu1 %v9727_v6  ;;  %v9790_v6 = vld [vmem:[%s12342_s8 + $0xb0] ss:$12 sps:$4 sm:$0xff]  }
 0x403   :  { %2305 = vmatprep.subr.bf16.mxu1 %v9732_v7  ;;  %v9793_v7 = vld [vmem:[%s12342_s8 + $0x184] ss:$12 sps:$4 sm:$0xff]  }
 0x406   :  { %2306 = vmatpush1.bf16.msra.mxu1 %v9730_v8  ;;  %v9794_v8 = vld [vmem:[%s12342_s8 + $0x248] ss:$12 sps:$4 sm:$0xff]  }
 0x407   :  { %v9197_v11 = vpop.f32.mrb[16].mxu1  ;;  %2307 = vmatprep.subr.bf16.mxu1 %v9735_v9  ;;  %v11452_v9 = vld [vmem:[#allocation6] sm:$0x1f] }
 0x408   :  { %v9198_v12 = vpop.f32.mrb[17].mxu1 }
 0x409   :  { %v9199_v13 = vadd.f32 %v9198_v12, %v9197_v11  ;;  %v9200_v15 = vpop.f32.mrb[18].mxu1  ;;  %8406 = vmatmul.mubr.msk.bf16.gmra.mrb[32].mxu1 %vm542_vm0, %v11131_v19  ;;  %v1300_v11 = vrot.slane %v11452_v9, %v11237_v57 }
 0x40a   :  { %v9201_v16 = vpop.f32.mrb[19].mxu1  ;;  %2308 = vmatpush1.bf16.msra.mxu1 %v9733_v10  ;;  %v1296_v10 = vrot.slane %v11452_v9, %v11234_v55 }
 0x40b   :  { %v9202_v18 = vadd.f32 %v9201_v16, %v9200_v15  ;;  %2309 = vmatprep.subr.bf16.mxu1 %v9738_v14 }
 0x40d   :  { %v1285_v21 = vpack.c.bf16 %v9202_v18, %v9199_v13  ;;  %v11459_v18 = vsub.s32 2, %v11231_v54 }
 0x40e   :  { %2310 = vmatpush1.bf16.msra.mxu1 %v9736_v17 }
 0x40f   :  { %v9203_v23 = vpop.f32.mrb[20].mxu1  ;;  %9418 = vmatprep.subr.bf16.mxu0 %v1285_v21  ;;  %2311 = vmatprep.subr.bf16.mxu1 %v9741_v20 }
 0x410   :  { %v9204_v25 = vpop.f32.mrb[21].mxu1  ;;  %9419 = vmatpush3.bf16.msra.mxu0 %v1285_v21 }
 0x411   :  { %v9205_v26 = vadd.f32 %v9204_v25, %v9203_v23  ;;  %v9206_v27 = vpop.f32.mrb[22].mxu1 }
 0x412   :  { %v9207_v28 = vpop.f32.mrb[23].mxu1  ;;  %2312 = vmatpush1.bf16.msra.mxu1 %v9739_v22 }
 0x413   :  { %v9208_v30 = vadd.f32 %v9207_v28, %v9206_v27  ;;  %2313 = vmatprep.subr.bf16.mxu1 %v9744_v24  ;;  %v11462_v24 = vsub.s32 3, %v11231_v54 }
 0x415   :  { %v1290_v32 = vpack.c.bf16 %v9208_v30, %v9205_v26 }
 0x416   :  { %2314 = vmatpush1.bf16.msra.mxu1 %v9742_v29 }
 0x417   :  { %9420 = vmatprep.subr.bf16.mxu0 %v1290_v32  ;;  %2315 = vmatprep.subr.bf16.mxu1 %v9747_v31 }
 0x418   :  { %9421 = vmatpush3.bf16.msra.mxu0 %v1290_v32 }
 0x419   :  { %9213 = vmatprep.subr.bf16.mxu0 %v9754_v33 }
 0x41a   :  { %2316 = vmatpush1.bf16.msra.mxu1 %v9745_v34 }
 0x41b   :  { %9423 = vmatmul.mubr.msk.bf16.vlgmr.msra.gmra.mrb[20].mxu0 %vm542_vm0, %v11131_v19  ;;  %2317 = vmatprep.subr.bf16.mxu1 %v9750_v35  ;;  %v9751_v19 = vld [vmem:[%s12342_s8 + $0xc0] ss:$12 sps:$4 sm:$0xff]  }
 0x41c   :  { %9214 = vmatpush3.bf16.msra.mxu0 %v9755_v37  ;;  %v1304_v37 = vrot.slane %v11452_v9, %v11459_v18 }
 0x41d   :  { %9215 = vmatprep.subr.bf16.mxu0 %v9759_v38 }
 0x41e   :  { %2318 = vmatpush1.bf16.msra.mxu1 %v9748_v39 }
 0x41f   :  { %2319 = vmatprep.subr.bf16.mxu1 %v9753_v40 }
 0x420   :  { %9216 = vmatpush3.bf16.msra.mxu0 %v9760_v41  ;;  %v1308_v41 = vrot.slane %v11452_v9, %v11462_v24 }
 0x421   :  { %9217 = vmatprep.subr.bf16.mxu0 %v9764_v42 }
 0x422   :  { %2320 = vmatpush1.bf16.msra.mxu1 %v9751_v19 }
 0x423   :  { %2321 = vmatprep.subr.bf16.mxu1 %v9758_v43 }
 0x424   :  { %9218 = vmatpush3.bf16.msra.mxu0 %v9765_v44  ;;  %v9791_v44 = vld [vmem:[%s12342_s8 + $0x180] ss:$12 sps:$4 sm:$0xff]  }
 0x425   :  { %9219 = vmatprep.subr.bf16.mxu0 %v9769_v45  ;;  %v9795_v45 = vld [vmem:[%s12342_s8 + $0x188] ss:$12 sps:$4 sm:$0xff]  }
 0x426   :  { %2322 = vmatpush1.bf16.msra.mxu1 %v9756_v46 }
 0x427   :  { %2323 = vmatprep.subr.bf16.mxu1 %v9763_v47 }
 0x428   :  { %9220 = vmatpush3.bf16.msra.mxu0 %v9770_v48  ;;  %v9798_v48 = vld [vmem:[%s12342_s8 + $0x19c] ss:$12 sps:$4 sm:$0xff]  }
 0x429   :  { %9221 = vmatprep.subr.bf16.mxu0 %v9774_v49  ;;  %v9799_v49 = vld [vmem:[%s12342_s8 + $0x260] ss:$12 sps:$4 sm:$0xff]  }
 0x42a   :  { %2324 = vmatpush1.bf16.msra.mxu1 %v9761_v50 }
 0x42b   :  { %2325 = vmatprep.subr.bf16.mxu1 %v9768_v51 }
 0x42c   :  { %9222 = vmatpush3.bf16.msra.mxu0 %v9775_v52 }
 0x42d   :  { %9223 = vmatprep.subr.bf16.mxu0 %v9779_v53 }
 0x42e   :  { %2326 = vmatpush1.bf16.msra.mxu1 %v9766_v56 }
 0x42f   :  { %2327 = vmatprep.subr.bf16.mxu1 %v9773_v58 }
 0x430   :  { %9224 = vmatpush3.bf16.msra.mxu0 %v9780_v59 }
 0x431   :  { %9225 = vmatprep.subr.bf16.mxu0 %v9784_v0  ;;  %v9803_v0 = vld [vmem:[%s12342_s8 + $0x1b4] ss:$12 sps:$4 sm:$0xff]  }
 0x432   :  { %2328 = vmatpush1.bf16.msra.mxu1 %v9771_v60  ;;  %v9796_v60 = vld [vmem:[%s12342_s8 + $0x198] ss:$12 sps:$4 sm:$0xff]  }
 0x433   :  { %2329 = vmatprep.subr.bf16.mxu1 %v9778_v61  ;;  %v9800_v61 = vld [vmem:[%s12342_s8 + $0x1a0] ss:$12 sps:$4 sm:$0xff]  }
 0x434   :  { %9226 = vmatpush3.bf16.msra.mxu0 %v9785_v2 }
 0x435   :  { %9227 = vmatprep.subr.bf16.mxu0 %v9789_v4 }
 0x436   :  { %2330 = vmatpush1.bf16.msra.mxu1 %v9776_v62 }
 0x437   :  { %2331 = vmatprep.subr.bf16.mxu1 %v9783_v63 }
 0x438   :  { %9228 = vmatpush3.bf16.msra.mxu0 %v9790_v6  ;;  %v9805_v6 = vld [vmem:[%s12342_s8 + $0x1b8] ss:$12 sps:$4 sm:$0xff]  }
 0x439   :  { %9241 = vmatprep.subr.bf16.mxu0 %v9794_v8 }
 0x43a   :  { %2332 = vmatpush1.bf16.msra.mxu1 %v9781_v1  ;;  %v9804_v1 = vld [vmem:[%s12342_s8 + $0x278] ss:$12 sps:$4 sm:$0xff]  }
 0x43b   :  { %2333 = vmatprep.subr.bf16.mxu1 %v9788_v3 }
 0x43e   :  { %2334 = vmatpush1.bf16.msra.mxu1 %v9786_v5  ;;  %v9801_v5 = vld [vmem:[%s12342_s8 + $0x1b0] ss:$12 sps:$4 sm:$0xff]  }
 0x43f   :  { %2356 = vmatprep.subr.bf16.mxu1 %v9793_v7 }
 0x4cc   :  { %v1352_v14 = vpop.f32.mrb[16].mxu0  ;;  %v1362_v12 = vpop.f32.mrb[24].mxu1 }
 0x4cd   :  { %v1353_v13 = vadd.f32 %v1352_v14, %v1296_v10  ;;  %v1354_v15 = vpop.f32.mrb[17].mxu0  ;;  %v1363_v16 = vadd.f32 %v1362_v12, %v1296_v10  ;;  %v1364_v17 = vpop.f32.mrb[25].mxu1 }
 0x4ce   :  { %v1355_v20 = vadd.f32 %v1354_v15, %v1300_v11  ;;  %v1356_v21 = vpop.f32.mrb[18].mxu0  ;;  %v1365_v22 = vadd.f32 %v1364_v17, %v1300_v11  ;;  %v1366_v23 = vpop.f32.mrb[26].mxu1 }
 0x4cf   :  { %v1357_v25 = vadd.f32 %v1356_v21, %v1296_v10  ;;  %v1358_v26 = vpop.f32.mrb[19].mxu0  ;;  %v1483_v27 = vmax.f32 %v1363_v16, 0.0  ;;  %v1367_v28 = vadd.f32 %v1366_v23, %v1296_v10  ;;  %v1368_v29 = vpop.f32.mrb[27].mxu1  ;;  %v1473_v33 = vmax.f32 %v1353_v13, 0.0  ;;  %v9808_v10 = vld [vmem:[%s12342_s8 + $0x1cc] ss:$12 sps:$4 sm:$0xff]  }
 0x4d0   :  { %v1359_v30 = vadd.f32 %v1358_v26, %v1300_v11  ;;  %v1484_v31 = vmax.f32 %v1365_v22, 0.0  ;;  %v1369_v32 = vadd.f32 %v1368_v29, %v1300_v11  ;;  %v1474_v38 = vmax.f32 %v1355_v20, 0.0  ;;  %v9809_v11 = vld [vmem:[%s12342_s8 + $0x290] ss:$12 sps:$4 sm:$0xff]   ;;  %v9806_v21 = vld [vmem:[%s12342_s8 + $0x1c8] ss:$12 sps:$4 sm:$0xff]  }
 0x4d1   :  { %v1478_v34 = vmax.f32 %v1357_v25, 0.0  ;;  %v1488_v35 = vmax.f32 %v1367_v28, 0.0  ;;  %v9810_v22 = vld [vmem:[%s12342_s8 + $0x1d0] ss:$12 sps:$4 sm:$0xff]  }
 0x4d2   :  { %v1479_v39 = vmax.f32 %v1359_v30, 0.0  ;;  %v1489_v40 = vmax.f32 %v1369_v32, 0.0  ;;  %v9813_v26 = vld [vmem:[%s12342_s8 + $0x1e4] ss:$12 sps:$4 sm:$0xff]   ;;  %v9815_v32 = vld [vmem:[%s12342_s8 + $0x1e8] ss:$12 sps:$4 sm:$0xff]  }
 0x4d3   :  { %v1493_v42 = vpack.c.bf16 %v1478_v34, %v1473_v33  ;;  %v1498_v19 = vpack.c.bf16 %v1488_v35, %v1483_v27  ;;  %v9814_v27 = vld [vmem:[%s12342_s8 + $0x2a8] ss:$12 sps:$4 sm:$0xff]   ;;  %v9819_v35 = vld [vmem:[%s12342_s8 + $0x2c0] ss:$12 sps:$4 sm:$0xff]  }
 0x4d4   :  { %v1494_v43 = vpack.c.bf16 %v1479_v39, %v1474_v38  ;;  %v1499_v46 = vpack.c.bf16 %v1489_v40, %v1484_v31  ;;  %v1405_v47 = vpop.f32.mrb[28].mxu1  ;;  %v9811_v31 = vld [vmem:[%s12342_s8 + $0x1e0] ss:$12 sps:$4 sm:$0xff]   ;;  %v9818_v34 = vld [vmem:[%s12342_s8 + $0x1fc] ss:$12 sps:$4 sm:$0xff]  }
 0x4d5   :  { %v1406_v50 = vadd.f32 %v1405_v47, %v1304_v37  ;;  %v1407_v51 = vpop.f32.mrb[29].mxu1  ;;  %v9816_v38 = vld [vmem:[%s12342_s8 + $0x1f8] ss:$12 sps:$4 sm:$0xff]   ;;  %v9820_v39 = vld [vmem:[%s12342_s8 + $0x200] ss:$12 sps:$4 sm:$0xff]  }
 0x4d6   :  { %2335 = vmatprep.mubr.bf16.mxu1 %v1494_v43  ;;  %2494 = vmatprep.mubr.bf16.mxu0 %v1494_v43  ;;  %v1408_v52 = vadd.f32 %v1407_v51, %v1308_v41  ;;  %v1409_v53 = vpop.f32.mrb[30].mxu1  ;;  %v9823_v40 = vld [vmem:[%s12342_s8 + $0x214] ss:$12 sps:$4 sm:$0xff]   ;;  %v9825_v43 = vld [vmem:[%s12342_s8 + $0x218] ss:$12 sps:$4 sm:$0xff]  }
 0x4d7   :  { %2336 = vmatmul.mubr.bf16.vlgmr.msra.gmra.mrb[36].mxu1 %v1493_v42  ;;  %2495 = vmatmul.mubr.bf16.vlgmr.msra.gmra.mrb[24].mxu0 %v1493_v42  ;;  %v1475_v56 = vmax.f32 %v1406_v50, 0.0  ;;  %v1410_v58 = vadd.f32 %v1409_v53, %v1304_v37  ;;  %v1411_v59 = vpop.f32.mrb[31].mxu1  ;;  %v9834_v53 = vld [vmem:[%s12342_s8 + $0x308] ss:$12 sps:$4 sm:$0xff]  }
 0x4d8   :  { %2357 = vmatpush1.bf16.msra.mxu1 %v9791_v44  ;;  %9242 = vmatpush3.bf16.msra.mxu0 %v9795_v45  ;;  %v1476_v62 = vmax.f32 %v1408_v52, 0.0  ;;  %v1412_v63 = vadd.f32 %v1411_v59, %v1308_v41  ;;  %v9828_v44 = vld [vmem:[%s12342_s8 + $0x22c] ss:$12 sps:$4 sm:$0xff]   ;;  %v9833_v52 = vld [vmem:[%s12342_s8 + $0x244] ss:$12 sps:$4 sm:$0xff]  }
 0x4d9   :  { %2358 = vmatprep.subr.bf16.mxu1 %v9798_v48  ;;  %9243 = vmatprep.subr.bf16.mxu0 %v9799_v49  ;;  %v1480_v2 = vmax.f32 %v1410_v58, 0.0  ;;  %v9826_v48 = vld [vmem:[%s12342_s8 + $0x228] ss:$12 sps:$4 sm:$0xff]   ;;  %v9830_v49 = vld [vmem:[%s12342_s8 + $0x230] ss:$12 sps:$4 sm:$0xff]  }
 0x4da   :  { %2502 = vmatprep.mubr.bf16.mxu0 %v1499_v46  ;;  %v1481_v3 = vmax.f32 %v1412_v63, 0.0  ;;  %2345 = vmatprep.mubr.bf16.mxu1 %v1499_v46  ;;  %v9831_v63 = vld [vmem:[%s12342_s8 + $0x240] ss:$12 sps:$4 sm:$0xff]  }
 0x4db   :  { %v11492_v4 = vpack.c.bf16 %v1480_v2, %v1475_v56  ;;  %v9838_v2 = vld [vmem:[%s12342_s8 + $0x320] ss:$12 sps:$4 sm:$0xff]  }
 0x4dc   :  { %2359 = vmatpush1.bf16.msra.mxu1 %v9796_v60  ;;  %9244 = vmatpush3.bf16.msra.mxu0 %v9800_v61  ;;  %v1496_v7 = vpack.c.bf16 %v1481_v3, %v1476_v62  ;;  %v1415_v8 = vpop.f32.mrb[32].mxu1 }
 0x4dd   :  { %2360 = vmatprep.subr.bf16.mxu1 %v9803_v0  ;;  %9245 = vmatprep.subr.bf16.mxu0 %v9804_v1  ;;  %v1416_v14 = vadd.f32 %v1415_v8, %v1304_v37  ;;  %v1417_v12 = vpop.f32.mrb[33].mxu1  ;;  %v9837_v1 = vld [vmem:[%s12342_s8 + $0x25c] ss:$12 sps:$4 sm:$0xff]   ;;  %v9842_v8 = vld [vmem:[%s12342_s8 + $0x338] ss:$12 sps:$4 sm:$0xff]  }
 0x4de   :  { %v1418_v13 = vadd.f32 %v1417_v12, %v1308_v41  ;;  %v1419_v15 = vpop.f32.mrb[34].mxu1  ;;  %v9843_v12 = vld [vmem:[%s12342_s8 + $0x288] ss:$12 sps:$4 sm:$0xff]  }
 0x4df   :  { %2503 = vmatmul.mubr.bf16.gmra.mrb[28].mxu0 %v1498_v19  ;;  %v1485_v16 = vmax.f32 %v1416_v14, 0.0  ;;  %v1420_v17 = vadd.f32 %v1419_v15, %v1304_v37  ;;  %v1421_v20 = vpop.f32.mrb[35].mxu1  ;;  %2346 = vmatmul.mubr.bf16.gmra.mrb[40].mxu1 %v1498_v19  ;;  %v11535_v37 = vsub.s32 4, %v11231_v54  ;;  %v9821_v19 = vld [vmem:[%s12342_s8 + $0x210] ss:$12 sps:$4 sm:$0xff]  }
 0x4e0   :  { %2361 = vmatpush1.bf16.msra.mxu1 %v9801_v5  ;;  %9246 = vmatpush3.bf16.msra.mxu0 %v9805_v6  ;;  %v1486_v23 = vmax.f32 %v1418_v13, 0.0  ;;  %v1422_v25 = vadd.f32 %v1421_v20, %v1308_v41  ;;  %v9824_v41 = vld [vmem:[%s12342_s8 + $0x2d8] ss:$12 sps:$4 sm:$0xff]   ;;  %v9846_v14 = vld [vmem:[%s12342_s8 + $0x350] ss:$12 sps:$4 sm:$0xff]  }
 0x4e1   :  { %2362 = vmatprep.subr.bf16.mxu1 %v9808_v10  ;;  %9247 = vmatprep.subr.bf16.mxu0 %v9809_v11  ;;  %v1490_v28 = vmax.f32 %v1420_v17, 0.0  ;;  %v1312_v42 = vrot.slane %v11452_v9, %v11535_v37  ;;  %v9829_v9 = vld [vmem:[%s12342_s8 + $0x2f0] ss:$12 sps:$4 sm:$0xff]   ;;  %v9835_v6 = vld [vmem:[%s12342_s8 + $0x258] ss:$12 sps:$4 sm:$0xff]  }
 0x4e2   :  { %2543 = vmatprep.mubr.bf16.mxu0 %v1496_v7  ;;  %v1491_v29 = vmax.f32 %v1422_v25, 0.0  ;;  %2388 = vmatprep.mubr.bf16.mxu1 %v1496_v7  ;;  %v9841_v7 = vld [vmem:[%s12342_s8 + $0x274] ss:$12 sps:$4 sm:$0xff]   ;;  %v9839_v10 = vld [vmem:[%s12342_s8 + $0x270] ss:$12 sps:$4 sm:$0xff]  }
 0x4e3   :  { %v11518_v30 = vpack.c.bf16 %v1490_v28, %v1485_v16  ;;  %v9845_v11 = vld [vmem:[%s12342_s8 + $0x28c] ss:$12 sps:$4 sm:$0xff]   ;;  %v9849_v13 = vld [vmem:[%s12342_s8 + $0x2a4] ss:$12 sps:$4 sm:$0xff]   ;;  %v9850_v15 = vld [vmem:[%s12342_s8 + $0x368] ss:$12 sps:$4 sm:$0xff]  }
 0x4e4   :  { %2363 = vmatpush1.bf16.msra.mxu1 %v9806_v21  ;;  %9248 = vmatpush3.bf16.msra.mxu0 %v9810_v22  ;;  %v11526_v33 = vpack.c.bf16 %v1491_v29, %v1486_v23  ;;  %v9847_v16 = vld [vmem:[%s12342_s8 + $0x2a0] ss:$12 sps:$4 sm:$0xff]   ;;  %v9853_v17 = vld [vmem:[%s12342_s8 + $0x2bc] ss:$12 sps:$4 sm:$0xff]   ;;  %v9851_v21 = vld [vmem:[%s12342_s8 + $0x2b8] ss:$12 sps:$4 sm:$0xff]  }
 0x4e5   :  { %2364 = vmatprep.subr.bf16.mxu1 %v9813_v26  ;;  %9249 = vmatprep.subr.bf16.mxu0 %v9814_v27  ;;  %v9854_v20 = vld [vmem:[%s12342_s8 + $0x380] ss:$12 sps:$4 sm:$0xff]   ;;  %v9858_v23 = vld [vmem:[%s12342_s8 + $0x398] ss:$12 sps:$4 sm:$0xff]   ;;  %v9855_v25 = vld [vmem:[%s12342_s8 + $0x2d0] ss:$12 sps:$4 sm:$0xff]  }
 0x4e6   :  { %v9857_v22 = vld [vmem:[%s12342_s8 + $0x2d4] ss:$12 sps:$4 sm:$0xff]   ;;  %v9861_v26 = vld [vmem:[%s12342_s8 + $0x2ec] ss:$12 sps:$4 sm:$0xff]   ;;  %v9862_v27 = vld [vmem:[%s12342_s8 + $0x3b0] ss:$12 sps:$4 sm:$0xff]  }
 0x4e7   :  { %v9859_v28 = vld [vmem:[%s12342_s8 + $0x2e8] ss:$12 sps:$4 sm:$0xff]   ;;  %v9865_v29 = vld [vmem:[%s12342_s8 + $0x304] ss:$12 sps:$4 sm:$0xff]  }
 0x4e8   :  { %2365 = vmatpush1.bf16.msra.mxu1 %v9811_v31  ;;  %9250 = vmatpush3.bf16.msra.mxu0 %v9815_v32  ;;  %v9863_v31 = vld [vmem:[%s12342_s8 + $0x300] ss:$12 sps:$4 sm:$0xff]   ;;  %v9868_v32 = vld [vmem:[%s12342_s8 + $0x31c] ss:$12 sps:$4 sm:$0xff]  }
 0x4e9   :  { %2366 = vmatprep.subr.bf16.mxu1 %v9818_v34  ;;  %9251 = vmatprep.subr.bf16.mxu0 %v9819_v35  ;;  %v9866_v34 = vld [vmem:[%s12342_s8 + $0x318] ss:$12 sps:$4 sm:$0xff]   ;;  %v9871_v35 = vld [vmem:[%s12342_s8 + $0x334] ss:$12 sps:$4 sm:$0xff]  }
 0x4ec   :  { %2367 = vmatpush1.bf16.msra.mxu1 %v9816_v38  ;;  %9252 = vmatpush3.bf16.msra.mxu0 %v9820_v39  ;;  %v9869_v38 = vld [vmem:[%s12342_s8 + $0x330] ss:$12 sps:$4 sm:$0xff]  }
 0x4ed   :  { %2368 = vmatprep.subr.bf16.mxu1 %v9823_v40  ;;  %9253 = vmatprep.subr.bf16.mxu0 %v9824_v41  ;;  %v9877_v39 = vld [vmem:[%s12342_s8 + $0x364] ss:$12 sps:$4 sm:$0xff]   ;;  %v9875_v40 = vld [vmem:[%s12342_s8 + $0x360] ss:$12 sps:$4 sm:$0xff]  }
 0x4ee   :  { %v9424_v45 = vpop.f32.mrb[20].mxu0  ;;  %v9878_v41 = vld [vmem:[%s12342_s8 + $0x378] ss:$12 sps:$4 sm:$0xff]  }
 0x4ef   :  { %v1467_v46 = vadd.f32 %v9424_v45, %v1312_v42  ;;  %v1458_v47 = vpop.f32.mrb[21].mxu0 }
 0x4f0   :  { %2369 = vmatpush1.bf16.msra.mxu1 %v9821_v19  ;;  %9254 = vmatpush3.bf16.msra.mxu0 %v9825_v43  ;;  %v1459_v50 = vadd.f32 %v1458_v47, %v1312_v42  ;;  %v9425_v51 = vpop.f32.mrb[22].mxu0  ;;  %v9881_v19 = vld [vmem:[%s12342_s8 + $0x390] ss:$12 sps:$4 sm:$0xff]   ;;  %v9886_v43 = vld [vmem:[%s12342_s8 + $0x3ac] ss:$12 sps:$4 sm:$0xff]  }
 0x4f1   :  { %2370 = vmatprep.subr.bf16.mxu1 %v9828_v44  ;;  %9255 = vmatprep.subr.bf16.mxu0 %v9829_v9  ;;  %v1487_v56 = vmax.f32 %v1467_v46, 0.0  ;;  %v1470_v58 = vadd.f32 %v9425_v51, %v1312_v42  ;;  %v1461_v59 = vpop.f32.mrb[23].mxu0  ;;  %v9884_v44 = vld [vmem:[%s12342_s8 + $0x3a8] ss:$12 sps:$4 sm:$0xff]  }
 0x4f2   :  { %v1477_v60 = vmax.f32 %v1459_v50, 0.0  ;;  %v1462_v61 = vadd.f32 %v1461_v59, %v1312_v42  ;;  %v9883_v42 = vld [vmem:[%s12342_s8 + $0x394] ss:$12 sps:$4 sm:$0xff]  }
 0x4f3   :  { %v1492_v62 = vmax.f32 %v1470_v58, 0.0 }
 0x4f4   :  { %2371 = vmatpush1.bf16.msra.mxu1 %v9826_v48  ;;  %9256 = vmatpush3.bf16.msra.mxu0 %v9830_v49  ;;  %v1482_v0 = vmax.f32 %v1462_v61, 0.0 }
 0x4f5   :  { %2372 = vmatprep.subr.bf16.mxu1 %v9833_v52  ;;  %9426 = vmatprep.subr.bf16.mxu0 %v9834_v53  ;;  %v11584_v3 = vpack.c.bf16 %v1492_v62, %v1487_v56 }
 0x4f6   :  { %v11586_v5 = vpack.c.bf16 %v1482_v0, %v1477_v60 }
 0x4f7   :  { %2544 = vmatmul.mubr.bf16.vlgmr.msra.gmra.mrb[32].mxu0 %v11492_v4 }
 0x4f8   :  { %2373 = vmatpush1.bf16.msra.mxu1 %v9831_v63  ;;  %9427 = vmatpush3.bf16.msra.mxu0 %v9834_v53 }
 0x4f9   :  { %2374 = vmatprep.subr.bf16.mxu1 %v9837_v1  ;;  %9428 = vmatprep.subr.bf16.mxu0 %v9838_v2 }
 0x4fa   :  { %2551 = vmatprep.mubr.bf16.mxu0 %v11526_v33 }
 0x4fc   :  { %2375 = vmatpush1.bf16.msra.mxu1 %v9835_v6  ;;  %9429 = vmatpush3.bf16.msra.mxu0 %v9838_v2 }
 0x4fd   :  { %2376 = vmatprep.subr.bf16.mxu1 %v9841_v7  ;;  %9430 = vmatprep.subr.bf16.mxu0 %v9842_v8 }
 0x4ff   :  { %2552 = vmatmul.mubr.bf16.gmra.mrb[36].mxu0 %v11518_v30 }
 0x500   :  { %2377 = vmatpush1.bf16.msra.mxu1 %v9839_v10  ;;  %9431 = vmatpush3.bf16.msra.mxu0 %v9842_v8 }
 0x501   :  { %2378 = vmatprep.subr.bf16.mxu1 %v9845_v11  ;;  %9432 = vmatprep.subr.bf16.mxu0 %v9846_v14 }
 0x502   :  { %9442 = vmatprep.mubr.bf16.mxu0 %v11586_v5 }
 0x504   :  { %2379 = vmatpush1.bf16.msra.mxu1 %v9843_v12  ;;  %9433 = vmatpush3.bf16.msra.mxu0 %v9846_v14 }
 0x505   :  { %2380 = vmatprep.subr.bf16.mxu1 %v9849_v13  ;;  %9434 = vmatprep.subr.bf16.mxu0 %v9850_v15 }
 0x508   :  { %2381 = vmatpush1.bf16.msra.mxu1 %v9847_v16  ;;  %9435 = vmatpush3.bf16.msra.mxu0 %v9850_v15 }
 0x509   :  { %2382 = vmatprep.subr.bf16.mxu1 %v9853_v17  ;;  %9436 = vmatprep.subr.bf16.mxu0 %v9854_v20 }
 0x50c   :  { %2383 = vmatpush1.bf16.msra.mxu1 %v9851_v21  ;;  %9437 = vmatpush3.bf16.msra.mxu0 %v9854_v20 }
 0x50d   :  { %2384 = vmatprep.subr.bf16.mxu1 %v9857_v22  ;;  %9438 = vmatprep.subr.bf16.mxu0 %v9858_v23 }
 0x510   :  { %2385 = vmatpush1.bf16.msra.mxu1 %v9855_v25  ;;  %9439 = vmatpush3.bf16.msra.mxu0 %v9858_v23 }
 0x511   :  { %2386 = vmatprep.subr.bf16.mxu1 %v9861_v26  ;;  %9440 = vmatprep.subr.bf16.mxu0 %v9862_v27 }
 0x514   :  { %2387 = vmatpush1.bf16.msra.mxu1 %v9859_v28  ;;  %9441 = vmatpush3.bf16.msra.mxu0 %v9862_v27 }
 0x515   :  { %2409 = vmatprep.subr.bf16.mxu1 %v9865_v29 }
 0x517   :  { %9443 = vmatmul.mubr.bf16.vlgmr.msra.gmra.mrb[40].mxu0 %v11584_v3  ;;  %2389 = vmatmul.mubr.bf16.vlgmr.msra.gmra.mrb[36].mxu1 %v11492_v4  ;;  %v9874_v4 = vld [vmem:[%s12342_s8 + $0x34c] ss:$12 sps:$4 sm:$0xff]  }
 0x518   :  { %2410 = vmatpush1.bf16.msra.mxu1 %v9863_v31  ;;  %2398 = vmatprep.mubr.bf16.mxu1 %v11526_v33  ;;  %v9872_v33 = vld [vmem:[%s12342_s8 + $0x348] ss:$12 sps:$4 sm:$0xff]  }
 0x519   :  { %2411 = vmatprep.subr.bf16.mxu1 %v9868_v32  ;;  %2664 = vmatprep.mubr.bf16.mxu0 %v10715_v36 }
 0x51c   :  { %2412 = vmatpush1.bf16.msra.mxu1 %v9866_v34 }
 0x51d   :  { %2413 = vmatprep.subr.bf16.mxu1 %v9871_v35 }
 0x51f   :  { %2399 = vmatmul.mubr.bf16.gmra.mrb[40].mxu1 %v11518_v30  ;;  %v9880_v30 = vld [vmem:[%s12342_s8 + $0x37c] ss:$12 sps:$4 sm:$0xff]  }
 0x520   :  { %2414 = vmatpush1.bf16.msra.mxu1 %v9869_v38  ;;  %2441 = vmatprep.mubr.bf16.mxu1 %v10715_v36 }
 0x521   :  { %2415 = vmatprep.subr.bf16.mxu1 %v9874_v4 }
 0x524   :  { %2416 = vmatpush1.bf16.msra.mxu1 %v9872_v33 }
 0x525   :  { %2417 = vmatprep.subr.bf16.mxu1 %v9877_v39 }
 0x528   :  { %2418 = vmatpush1.bf16.msra.mxu1 %v9875_v40  ;;  %v10367_v40 = vld [vmem:[%s12371_s4] sm:$0xff]  }
 0x529   :  { %2419 = vmatprep.subr.bf16.mxu1 %v9880_v30  ;;  %v10368_v30 = vld [vmem:[%s12371_s4 + $0x8] sm:$0xff]   ;;  %s12373_s4 = sld [smem:[#allocation35_spill]] }
 0x52c   :  { %2420 = vmatpush1.bf16.msra.mxu1 %v9878_v41  ;;  %v2841_v41 = vld [vmem:[%s12344_s10 + $0x8] sm:$0xff] }
 0x52d   :  { %2421 = vmatprep.subr.bf16.mxu1 %v9883_v42  ;;  %v2845_v42 = vld [vmem:[%s12344_s10 + $0x28] sm:$0xff] }
 0x530   :  { %2422 = vmatpush1.bf16.msra.mxu1 %v9881_v19  ;;  %v8537_v19 = vcombine.low %v2841_v41, %v2845_v42 }
 0x531   :  { %2423 = vmatprep.subr.bf16.mxu1 %v9886_v43  ;;  %v8538_v43 = vcombine.high %v2841_v41, %v2845_v42  ;;  %v2957_v41 = vld [vmem:[%s12344_s10 + $0x3a8] sm:$0xff] }
 0x534   :  { %2424 = vmatpush1.bf16.msra.mxu1 %v9884_v44  ;;  %v2849_v44 = vld [vmem:[%s12344_s10 + $0x48] sm:$0xff] }
 0x535   :  { %3928 = vmatprep.subr.bf16.mxu1 %v8538_v43  ;;  %v2615_v43 = vld [vmem:[#allocation7] sm:$0x7] }
 0x537   :  { %2442 = vmatmul.mubr.bf16.vlgmr.msra.gmra.mrb[36].mxu1 %v11586_v5 }
 0x538   :  { %2451 = vmatprep.mubr.bf16.mxu1 %v10715_v36  ;;  %3929 = vmatpush1.bf16.msra.mxu1 %v8537_v19 }
 0x53f   :  { %2452 = vmatmul.mubr.bf16.gmra.mrb[40].mxu1 %v11584_v3 }
 0x5aa   :  { %v9229_v9 = vpop.f32.mrb[24].mxu0 }
 0x5ab   :  { %v9230_v45 = vpop.f32.mrb[25].mxu0 }
 0x5ac   :  { %v9231_v46 = vadd.f32 %v9230_v45, %v9229_v9  ;;  %v9232_v47 = vpop.f32.mrb[26].mxu0  ;;  %v2853_v9 = vld [vmem:[%s12344_s10 + $0x68] sm:$0xff] }
 0x5ad   :  { %v9233_v48 = vpop.f32.mrb[27].mxu0  ;;  %v8546_v45 = vcombine.high %v2849_v44, %v2853_v9 }
 0x5ae   :  { %v9234_v49 = vadd.f32 %v9233_v48, %v9232_v47  ;;  %v2857_v47 = vld [vmem:[%s12344_s10 + $0x88] sm:$0xff] }
 0x5af   :  { %3930 = vmatprep.subr.bf16.mxu1 %v8546_v45  ;;  %v2861_v48 = vld [vmem:[%s12344_s10 + $0xa8] sm:$0xff] }
 0x5b2   :  { %v9235_v50 = vpop.f32.mrb[28].mxu0 }
 0x5b3   :  { %v9236_v51 = vpop.f32.mrb[29].mxu0 }
 0x5b4   :  { %v9237_v52 = vadd.f32 %v9236_v51, %v9235_v50  ;;  %v9238_v53 = vpop.f32.mrb[30].mxu0  ;;  %v8553_v50 = vcombine.low %v2857_v47, %v2861_v48  ;;  %v2865_v51 = vld [vmem:[%s12344_s10 + $0xc8] sm:$0xff] }
 0x5b5   :  { %v9239_v56 = vpop.f32.mrb[31].mxu0 }
 0x5b6   :  { %v9240_v58 = vadd.f32 %v9239_v56, %v9238_v53 }
 0x5ca   :  { %v9257_v59 = vpop.f32.mrb[32].mxu0 }
 0x5cb   :  { %v9258_v60 = vpop.f32.mrb[33].mxu0 }
 0x5cc   :  { %v9259_v61 = vadd.f32 %v9258_v60, %v9257_v59  ;;  %v9260_v62 = vpop.f32.mrb[34].mxu0  ;;  %v2877_v59 = vld [vmem:[%s12344_s10 + $0x128] sm:$0xff] }
 0x5cd   :  { %v9261_v63 = vpop.f32.mrb[35].mxu0 }
 0x5ce   :  { %v9262_v0 = vadd.f32 %v9261_v63, %v9260_v62  ;;  %v2546_v1 = vadd.f32 %v9259_v61, %v9231_v46  ;;  %v8545_v46 = vcombine.low %v2849_v44, %v2853_v9  ;;  %v2881_v62 = vld [vmem:[%s12344_s10 + $0x148] sm:$0xff]  ;;  %v2620_v44 = vrot.slane %v2615_v43, %v11234_v55 }
 0x5cf   :  { %v2885_v63 = vld [vmem:[%s12344_s10 + $0x168] sm:$0xff]  ;;  %v2624_v9 = vrot.slane %v2615_v43, %v11237_v57 }
 0x5d0   :  { %v2549_v2 = vadd.f32 %v9262_v0, %v9234_v49  ;;  %v8554_v49 = vcombine.high %v2857_v47, %v2861_v48  ;;  %3931 = vmatpush1.bf16.msra.mxu1 %v8545_v46  ;;  %v8578_v0 = vcombine.high %v2881_v62, %v2885_v63 }
 0x5d2   :  { %v9263_v3 = vpop.f32.mrb[36].mxu0  ;;  %3932 = vmatprep.subr.bf16.mxu1 %v8554_v49 }
 0x5d3   :  { %v9264_v5 = vpop.f32.mrb[37].mxu0 }
 0x5d4   :  { %v9265_v6 = vadd.f32 %v9264_v5, %v9263_v3  ;;  %v9266_v7 = vpop.f32.mrb[38].mxu0  ;;  %3933 = vmatpush1.bf16.msra.mxu1 %v8553_v50  ;;  %v2893_v3 = vld [vmem:[%s12344_s10 + $0x1a8] sm:$0xff] }
 0x5d5   :  { %v9267_v8 = vpop.f32.mrb[39].mxu0 }
 0x5d6   :  { %v9268_v10 = vadd.f32 %v9267_v8, %v9266_v7  ;;  %v2554_v11 = vadd.f32 %v9265_v6, %v9237_v52  ;;  %v2869_v52 = vld [vmem:[%s12344_s10 + $0xe8] sm:$0xff] }
 0x5d7   :  { %v8562_v53 = vcombine.high %v2865_v51, %v2869_v52  ;;  %v8561_v56 = vcombine.low %v2865_v51, %v2869_v52  ;;  %v2897_v7 = vld [vmem:[%s12344_s10 + $0x1c8] sm:$0xff] }
 0x5d8   :  { %v2557_v14 = vadd.f32 %v9268_v10, %v9240_v58  ;;  %v2873_v58 = vld [vmem:[%s12344_s10 + $0x108] sm:$0xff] }
 0x5d9   :  { %3934 = vmatprep.subr.bf16.mxu1 %v8562_v53  ;;  %v8570_v60 = vcombine.high %v2873_v58, %v2877_v59  ;;  %v8569_v61 = vcombine.low %v2873_v58, %v2877_v59  ;;  %v2901_v8 = vld [vmem:[%s12344_s10 + $0x1e8] sm:$0xff] }
 0x5da   :  { %3935 = vmatpush1.bf16.msra.mxu1 %v8561_v56  ;;  %v8594_v10 = vcombine.high %v2897_v7, %v2901_v8 }
 0x5db   :  { %3936 = vmatprep.subr.bf16.mxu1 %v8570_v60 }
 0x5de   :  { %3937 = vmatpush1.bf16.msra.mxu1 %v8569_v61 }
 0x5df   :  { %3938 = vmatprep.subr.bf16.mxu1 %v8578_v0 }
 0x5ea   :  { %v9444_v12 = vpop.f32.mrb[40].mxu0 }
 0x5eb   :  { %v2603_v13 = vadd.f32 %v9444_v12, %v2554_v11  ;;  %v2594_v15 = vpop.f32.mrb[41].mxu0  ;;  %v8593_v11 = vcombine.low %v2897_v7, %v2901_v8  ;;  %v2909_v12 = vld [vmem:[%s12344_s10 + $0x228] sm:$0xff] }
 0x5ec   :  { %v2595_v16 = vadd.f32 %v2594_v15, %v2546_v1  ;;  %v9445_v17 = vpop.f32.mrb[42].mxu0  ;;  %v8577_v1 = vcombine.low %v2881_v62, %v2885_v63 }
 0x5ed   :  { %v2606_v20 = vadd.f32 %v9445_v17, %v2557_v14  ;;  %v2597_v21 = vpop.f32.mrb[43].mxu0  ;;  %v2905_v14 = vld [vmem:[%s12344_s10 + $0x208] sm:$0xff] }
 0x5ee   :  { %v2598_v22 = vadd.f32 %v2597_v21, %v2549_v2  ;;  %v2889_v2 = vld [vmem:[%s12344_s10 + $0x188] sm:$0xff]  ;;  %3939 = vmatpush1.bf16.msra.mxu1 %v8577_v1  ;;  %v8601_v15 = vcombine.low %v2905_v14, %v2909_v12 }
 0x5ef   :  { %v2614_v23 = vpack.c.bf16 %v2606_v20, %v2603_v13  ;;  %v8586_v5 = vcombine.high %v2889_v2, %v2893_v3  ;;  %v8585_v6 = vcombine.low %v2889_v2, %v2893_v3  ;;  %v8602_v13 = vcombine.high %v2905_v14, %v2909_v12  ;;  %v2917_v17 = vld [vmem:[%s12344_s10 + $0x268] sm:$0xff] }
 0x5f0   :  { %v2611_v25 = vpack.c.bf16 %v2598_v22, %v2595_v16  ;;  %v2913_v16 = vld [vmem:[%s12344_s10 + $0x248] sm:$0xff]  ;;  %v2628_v14 = vrot.slane %v2615_v43, %v11459_v18 }
 0x5f1   :  { %3940 = vmatprep.subr.bf16.mxu1 %v8586_v5  ;;  %v8610_v20 = vcombine.high %v2913_v16, %v2917_v17  ;;  %v8609_v21 = vcombine.low %v2913_v16, %v2917_v17  ;;  %v2921_v22 = vld [vmem:[%s12344_s10 + $0x288] sm:$0xff] }
 0x5f2   :  { %3941 = vmatpush1.bf16.msra.mxu1 %v8585_v6 }
 0x5f3   :  { %3942 = vmatprep.subr.bf16.mxu1 %v8594_v10 }
 0x5f6   :  { %3943 = vmatpush1.bf16.msra.mxu1 %v8593_v11 }
 0x5f7   :  { %3944 = vmatprep.subr.bf16.mxu1 %v8602_v13 }
 0x5fa   :  { %3945 = vmatpush1.bf16.msra.mxu1 %v8601_v15 }
 0x5fb   :  { %3946 = vmatprep.subr.bf16.mxu1 %v8610_v20 }
 0x5fe   :  { %3947 = vmatpush1.bf16.msra.mxu1 %v8609_v21 }
 0x60a   :  { %v2443_v26 = vpop.f32.mrb[36].mxu1 }
 0x60b   :  { %v2445_v27 = vpop.f32.mrb[37].mxu1 }
 0x60c   :  { %v2447_v28 = vpop.f32.mrb[38].mxu1 }
 0x60d   :  { %v2609_v29 = vpack.c.bf16 %v2447_v28, %v2443_v26  ;;  %v2449_v31 = vpop.f32.mrb[39].mxu1  ;;  %v2933_v28 = vld [vmem:[%s12344_s10 + $0x2e8] sm:$0xff] }
 0x60e   :  { %v2610_v32 = vpack.c.bf16 %v2449_v31, %v2445_v27  ;;  %v2929_v27 = vld [vmem:[%s12344_s10 + $0x2c8] sm:$0xff] }
 0x60f   :  { %v8625_v31 = vcombine.low %v2929_v27, %v2933_v28 }
 0x610   :  { %2632 = vmatprep.subr.bf16.mxu0 %v2610_v32  ;;  %v2937_v32 = vld [vmem:[%s12344_s10 + $0x308] sm:$0xff] }
 0x611   :  { %2633 = vmatpush1.bf16.msra.mxu0 %v2609_v29  ;;  %v8626_v29 = vcombine.high %v2929_v27, %v2933_v28 }
 0x612   :  { %v2453_v34 = vpop.f32.mrb[40].mxu1 }
 0x613   :  { %v2455_v35 = vpop.f32.mrb[41].mxu1 }
 0x614   :  { %v2457_v38 = vpop.f32.mrb[42].mxu1 }
 0x615   :  { %v2612_v4 = vpack.c.bf16 %v2457_v38, %v2453_v34  ;;  %v2459_v33 = vpop.f32.mrb[43].mxu1  ;;  %v2941_v34 = vld [vmem:[%s12344_s10 + $0x328] sm:$0xff] }
 0x616   :  { %v2613_v39 = vpack.c.bf16 %v2459_v33, %v2455_v35  ;;  %v8634_v35 = vcombine.high %v2937_v32, %v2941_v34  ;;  %v8633_v38 = vcombine.low %v2937_v32, %v2941_v34  ;;  %v2949_v33 = vld [vmem:[%s12344_s10 + $0x368] sm:$0xff] }
 0x618   :  { %2634 = vmatprep.subr.bf16.mxu0 %v2613_v39 }
 0x619   :  { %2635 = vmatpush1.bf16.msra.mxu0 %v2612_v4  ;;  %v2945_v4 = vld [vmem:[%s12344_s10 + $0x348] sm:$0xff] }
 0x61a   :  { %9446 = vmatprep.subr.bf16.mxu0 %v2611_v25  ;;  %v8642_v39 = vcombine.high %v2945_v4, %v2949_v33 }
 0x61c   :  { %8529 = vmatmul.mubr.msk.bf16.vlgmr.msra.gmra.mrb[44].mxu0 %vm542_vm0, %v10367_v40 }
 0x61d   :  { %9447 = vmatpush3.bf16.msra.mxu0 %v2611_v25  ;;  %2674 = vmatprep.mubr.bf16.mxu0 %v10715_v36 }
 0x61e   :  { %9448 = vmatprep.subr.bf16.mxu0 %v2614_v23 }
 0x621   :  { %9449 = vmatpush3.bf16.msra.mxu0 %v2614_v23  ;;  %v2925_v23 = vld [vmem:[%s12344_s10 + $0x2a8] sm:$0xff] }
 0x622   :  { %v8618_v25 = vcombine.high %v2921_v22, %v2925_v23  ;;  %v8617_v26 = vcombine.low %v2921_v22, %v2925_v23 }
 0x624   :  { %8530 = vmatmul.mubr.msk.bf16.gmra.mrb[48].mxu0 %vm542_vm0, %v10368_v30  ;;  %3948 = vmatprep.subr.bf16.mxu1 %v8618_v25  ;;  %v2746_v25 = vld [vmem:[%s12372_s5] sm:$0xf] }
 0x625   :  { %9450 = vmatprep.mubr.msk.bf16.mxu0 %vm542_vm0, %v10367_v40  ;;  %3949 = vmatpush1.bf16.msra.mxu1 %v8617_v26  ;;  %v8641_v40 = vcombine.low %v2945_v4, %v2949_v33  ;;  %v2844_v4 = vld [vmem:[%s12344_s10 + $0x20] sm:$0xff] }
 0x626   :  { %3950 = vmatprep.subr.bf16.mxu1 %v8626_v29  ;;  %v10716_v29 = vmov 0.0  }
 0x629   :  { %3951 = vmatpush1.bf16.msra.mxu1 %v8625_v31 }
 0x62a   :  { %3952 = vmatprep.subr.bf16.mxu1 %v8634_v35 }
 0x62c   :  { %9451 = vmatmul.mubr.msk.bf16.vlgmr.msra.gmra.mrb[52].mxu0 %vm542_vm0, %v10368_v30  ;;  %v2953_v30 = vld [vmem:[%s12344_s10 + $0x388] sm:$0xff] }
 0x62d   :  { %2788 = vmatprep.mubr.bf16.mxu0 %v10715_v36  ;;  %3953 = vmatpush1.bf16.msra.mxu1 %v8633_v38  ;;  %v8650_v42 = vcombine.high %v2953_v30, %v2957_v41  ;;  %v8649_v19 = vcombine.low %v2953_v30, %v2957_v41  ;;  %v2840_v38 = vld [vmem:[%s12344_s10] sm:$0xff] }
 0x62e   :  { %3954 = vmatprep.subr.bf16.mxu1 %v8642_v39  ;;  %v8536_v33 = vcombine.high %v2840_v38, %v2844_v4  ;;  %v2848_v39 = vld [vmem:[%s12344_s10 + $0x40] sm:$0xff]  ;;  %v8535_v30 = vcombine.low %v2840_v38, %v2844_v4 }
 0x631   :  { %3955 = vmatpush1.bf16.msra.mxu1 %v8641_v40  ;;  %v2852_v40 = vld [vmem:[%s12344_s10 + $0x60] sm:$0xff] }
 0x632   :  { %3956 = vmatprep.subr.bf16.mxu1 %v8650_v42  ;;  %v8544_v41 = vcombine.high %v2848_v39, %v2852_v40  ;;  %v2856_v42 = vld [vmem:[%s12344_s10 + $0x80] sm:$0xff]  ;;  %v8543_v43 = vcombine.low %v2848_v39, %v2852_v40 }
 0x633   :  { %v2960_v39 = vld [vmem:[%s12344_s10 + $0x3c0] sm:$0xff] }
 0x634   :  { %v2964_v40 = vld [vmem:[%s12344_s10 + $0x3e0] sm:$0xff] }
 0x635   :  { %3957 = vmatpush1.bf16.msra.mxu1 %v8649_v19  ;;  %v2860_v19 = vld [vmem:[%s12344_s10 + $0xa0] sm:$0xff] }
 0x6ef   :  { %v2666_v45 = vpop.f32.mrb[44].mxu0 }
 0x6f0   :  { %v2667_v46 = vadd.f32 %v2666_v45, %v2620_v44  ;;  %v2668_v47 = vpop.f32.mrb[45].mxu0  ;;  %v2868_v45 = vld [vmem:[%s12344_s10 + $0xe0] sm:$0xff] }
 0x6f1   :  { %v2669_v48 = vadd.f32 %v2668_v47, %v2624_v9  ;;  %v2670_v49 = vpop.f32.mrb[46].mxu0 }
 0x6f2   :  { %v2671_v50 = vadd.f32 %v2670_v49, %v2620_v44  ;;  %v2672_v51 = vpop.f32.mrb[47].mxu0  ;;  %v2734_v53 = vmax.f32 %v2667_v46, 0.0  ;;  %v8551_v46 = vcombine.low %v2856_v42, %v2860_v19  ;;  %v2876_v49 = vld [vmem:[%s12344_s10 + $0x120] sm:$0xff] }
 0x6f3   :  { %v2673_v52 = vadd.f32 %v2672_v51, %v2624_v9  ;;  %v2735_v58 = vmax.f32 %v2669_v48, 0.0  ;;  %v2872_v48 = vld [vmem:[%s12344_s10 + $0x100] sm:$0xff] }
 0x6f4   :  { %v2737_v56 = vmax.f32 %v2671_v50, 0.0  ;;  %v8568_v51 = vcombine.high %v2872_v48, %v2876_v49 }
 0x6f5   :  { %v2738_v59 = vmax.f32 %v2673_v52, 0.0  ;;  %v2880_v52 = vld [vmem:[%s12344_s10 + $0x140] sm:$0xff] }
 0x6f6   :  { %v2747_v60 = vpack.c.bf16 %v2737_v56, %v2734_v53  ;;  %v2884_v53 = vld [vmem:[%s12344_s10 + $0x160] sm:$0xff]  ;;  %v8567_v56 = vcombine.low %v2872_v48, %v2876_v49  ;;  %v2973_v48 = vld [vmem:[%s12344_s10 + $0x428] sm:$0xff] }
 0x6f7   :  { %v2748_v61 = vpack.c.bf16 %v2738_v59, %v2735_v58  ;;  %v2676_v62 = vpop.f32.mrb[48].mxu0  ;;  %v8576_v58 = vcombine.high %v2880_v52, %v2884_v53  ;;  %v2888_v59 = vld [vmem:[%s12344_s10 + $0x180] sm:$0xff] }
 0x6f8   :  { %v2677_v63 = vadd.f32 %v2676_v62, %v2620_v44  ;;  %v2678_v0 = vpop.f32.mrb[49].mxu0 }
 0x6f9   :  { %v2679_v1 = vadd.f32 %v2678_v0, %v2624_v9  ;;  %v2680_v2 = vpop.f32.mrb[50].mxu0  ;;  %2756 = vmatprep.subr.bf16.mxu0 %v2748_v61  ;;  %v8575_v61 = vcombine.low %v2880_v52, %v2884_v53  ;;  %v2900_v0 = vld [vmem:[%s12344_s10 + $0x1e0] sm:$0xff] }
 0x6fa   :  { %v2681_v3 = vadd.f32 %v2680_v2, %v2620_v44  ;;  %v2682_v5 = vpop.f32.mrb[51].mxu0  ;;  %2757 = vmatpush1.bf16.msra.mxu0 %v2747_v60  ;;  %v2740_v7 = vmax.f32 %v2677_v63, 0.0  ;;  %v8552_v44 = vcombine.high %v2856_v42, %v2860_v19  ;;  %v2892_v60 = vld [vmem:[%s12344_s10 + $0x1a0] sm:$0xff]  ;;  %v2965_v42 = vld [vmem:[%s12344_s10 + $0x3e8] sm:$0xff]  ;;  %v8655_v19 = vcombine.low %v2960_v39, %v2964_v40 }
 0x6fb   :  { %v2683_v6 = vadd.f32 %v2682_v5, %v2624_v9  ;;  %v2741_v10 = vmax.f32 %v2679_v1, 0.0  ;;  %v2864_v9 = vld [vmem:[%s12344_s10 + $0xc0] sm:$0xff]  ;;  %v8584_v62 = vcombine.high %v2888_v59, %v2892_v60  ;;  %v8583_v1 = vcombine.low %v2888_v59, %v2892_v60  ;;  %v2981_v59 = vld [vmem:[%s12344_s10 + $0x468] sm:$0xff] }
 0x6fc   :  { %v2743_v8 = vmax.f32 %v2681_v3, 0.0  ;;  %v8560_v47 = vcombine.high %v2864_v9, %v2868_v45  ;;  %v8559_v50 = vcombine.low %v2864_v9, %v2868_v45  ;;  %v2896_v63 = vld [vmem:[%s12344_s10 + $0x1c0] sm:$0xff] }
 0x6fd   :  { %v2744_v11 = vmax.f32 %v2683_v6, 0.0  ;;  %v8592_v2 = vcombine.high %v2896_v63, %v2900_v0  ;;  %v2904_v3 = vld [vmem:[%s12344_s10 + $0x200] sm:$0xff]  ;;  %v8591_v6 = vcombine.low %v2896_v63, %v2900_v0 }
 0x6fe   :  { %v2750_v12 = vpack.c.bf16 %v2743_v8, %v2740_v7  ;;  %v2908_v5 = vld [vmem:[%s12344_s10 + $0x220] sm:$0xff] }
 0x6ff   :  { %v2751_v13 = vpack.c.bf16 %v2744_v11, %v2741_v10  ;;  %v9452_v15 = vpop.f32.mrb[52].mxu0  ;;  %v8600_v7 = vcombine.high %v2904_v3, %v2908_v5  ;;  %v2912_v8 = vld [vmem:[%s12344_s10 + $0x240] sm:$0xff]  ;;  %v8599_v11 = vcombine.low %v2904_v3, %v2908_v5 }
 0x700   :  { %v2728_v16 = vadd.f32 %v9452_v15, %v2628_v14  ;;  %v2719_v17 = vpop.f32.mrb[53].mxu0  ;;  %v2916_v10 = vld [vmem:[%s12344_s10 + $0x260] sm:$0xff] }
 0x701   :  { %2758 = vmatprep.subr.bf16.mxu0 %v2751_v13  ;;  %v2720_v20 = vadd.f32 %v2719_v17, %v2628_v14  ;;  %v9453_v21 = vpop.f32.mrb[54].mxu0  ;;  %v2924_v13 = vld [vmem:[%s12344_s10 + $0x2a0] sm:$0xff]  ;;  %v8607_v15 = vcombine.low %v2912_v8, %v2916_v10 }
 0x702   :  { %2759 = vmatpush1.bf16.msra.mxu0 %v2750_v12  ;;  %v2742_v22 = vmax.f32 %v2728_v16, 0.0  ;;  %v2731_v23 = vadd.f32 %v9453_v21, %v2628_v14  ;;  %v2722_v26 = vpop.f32.mrb[55].mxu0  ;;  %v2920_v12 = vld [vmem:[%s12344_s10 + $0x280] sm:$0xff] }
 0x703   :  { %v2736_v27 = vmax.f32 %v2720_v20, 0.0  ;;  %v2723_v28 = vadd.f32 %v2722_v26, %v2628_v14  ;;  %9454 = vmatprep.subr.bf16.mxu0 %v10716_v29  ;;  %v8608_v14 = vcombine.high %v2912_v8, %v2916_v10  ;;  %v8616_v16 = vcombine.high %v2920_v12, %v2924_v13  ;;  %v2928_v17 = vld [vmem:[%s12344_s10 + $0x2c0] sm:$0xff] }
 0x704   :  { %v2745_v31 = vmax.f32 %v2731_v23, 0.0  ;;  %v2932_v20 = vld [vmem:[%s12344_s10 + $0x2e0] sm:$0xff]  ;;  %v8615_v21 = vcombine.low %v2920_v12, %v2924_v13 }
 0x705   :  { %8533 = vmatmul.mubr.msk.bf16.vlgmr.msra.gmra.mrb[56].mxu0 %vm542_vm0, %v2746_v25  ;;  %v2739_v32 = vmax.f32 %v2723_v28, 0.0  ;;  %v2936_v23 = vld [vmem:[%s12344_s10 + $0x300] sm:$0xff]  ;;  %v8623_v26 = vcombine.low %v2928_v17, %v2932_v20 }
 0x706   :  { %v2752_v34 = vpack.c.bf16 %v2745_v31, %v2742_v22  ;;  %9458 = vmatprep.mubr.msk.bf16.mxu0 %vm10717_vm1, %v10716_v29  ;;  %v8624_v22 = vcombine.high %v2928_v17, %v2932_v20  ;;  %v2944_v28 = vld [vmem:[%s12344_s10 + $0x340] sm:$0xff] }
 0x707   :  { %v2749_v35 = vpack.c.bf16 %v2739_v32, %v2736_v27  ;;  %v2968_v9 = vld [vmem:[%s12344_s10 + $0x400] sm:$0xff] }
 0x708   :  { %v2972_v45 = vld [vmem:[%s12344_s10 + $0x420] sm:$0xff] }
 0x709   :  { %9455 = vmatpush3.bf16.msra.mxu0 %v2749_v35  ;;  %v2956_v35 = vld [vmem:[%s12344_s10 + $0x3a0] sm:$0xff]  ;;  %v8663_v49 = vcombine.low %v2968_v9, %v2972_v45 }
 0x70a   :  { %9456 = vmatprep.subr.bf16.mxu0 %v10716_v29  ;;  %v2948_v29 = vld [vmem:[%s12344_s10 + $0x360] sm:$0xff] }
 0x70b   :  { %v8640_v32 = vcombine.high %v2944_v28, %v2948_v29  ;;  %v8639_v38 = vcombine.low %v2944_v28, %v2948_v29  ;;  %v2976_v52 = vld [vmem:[%s12344_s10 + $0x440] sm:$0xff]  ;;  %v2847_v28 = vld [vmem:[%s12344_s10 + $0x38] sm:$0xff] }
 0x70c   :  { %v2984_v3 = vld [vmem:[%s12344_s10 + $0x480] sm:$0xff] }
 0x70d   :  { %9457 = vmatpush3.bf16.msra.mxu0 %v2752_v34  ;;  %v2952_v34 = vld [vmem:[%s12344_s10 + $0x380] sm:$0xff] }
 0x70e   :  { %3846 = vmatprep.subr.bf16.mxu0 %v8536_v33  ;;  %v8648_v4 = vcombine.high %v2952_v34, %v2956_v35  ;;  %v8647_v33 = vcombine.low %v2952_v34, %v2956_v35  ;;  %v2988_v5 = vld [vmem:[%s12344_s10 + $0x4a0] sm:$0xff] }
 0x70f   :  { %v2992_v12 = vld [vmem:[%s12344_s10 + $0x4c0] sm:$0xff]  ;;  %v8679_v17 = vcombine.low %v2984_v3, %v2988_v5 }
 0x710   :  { %9459 = vmatmul.mubr.msk.bf16.vlgmr.msra.gmra.mrb[60].mxu0 %vm542_vm0, %v2746_v25  ;;  %v2940_v25 = vld [vmem:[%s12344_s10 + $0x320] sm:$0xff] }
 0x711   :  { %3847 = vmatpush1.bf16.msra.mxu0 %v8535_v30  ;;  %v8632_v27 = vcombine.high %v2936_v23, %v2940_v25  ;;  %v8631_v31 = vcombine.low %v2936_v23, %v2940_v25  ;;  %v2961_v30 = vld [vmem:[%s12344_s10 + $0x3c8] sm:$0xff]  ;;  %v2996_v13 = vld [vmem:[%s12344_s10 + $0x4e0] sm:$0xff]  ;;  %v2842_v25 = vld [vmem:[%s12344_s10 + $0x10] sm:$0xff] }
 0x712   :  { %3848 = vmatprep.subr.bf16.mxu0 %v8544_v41  ;;  %v8656_v41 = vcombine.high %v2960_v39, %v2964_v40  ;;  %v2854_v40 = vld [vmem:[%s12344_s10 + $0x70] sm:$0xff] }
 0x715   :  { %3849 = vmatpush1.bf16.msra.mxu0 %v8543_v43  ;;  %v8657_v43 = vcombine.low %v2961_v30, %v2965_v42 }
 0x716   :  { %3850 = vmatprep.subr.bf16.mxu0 %v8552_v44  ;;  %v8658_v44 = vcombine.high %v2961_v30, %v2965_v42  ;;  %v2851_v30 = vld [vmem:[%s12344_s10 + $0x58] sm:$0xff] }
 0x718   :  { %3958 = vmatprep.subr.bf16.mxu1 %v8658_v44 }
 0x719   :  { %3851 = vmatpush1.bf16.msra.mxu0 %v8551_v46  ;;  %v2969_v46 = vld [vmem:[%s12344_s10 + $0x408] sm:$0xff]  ;;  %3959 = vmatpush1.bf16.msra.mxu1 %v8657_v43 }
 0x71a   :  { %3852 = vmatprep.subr.bf16.mxu0 %v8560_v47  ;;  %v8664_v47 = vcombine.high %v2968_v9, %v2972_v45  ;;  %v2858_v9 = vld [vmem:[%s12344_s10 + $0x90] sm:$0xff] }
 0x71b   :  { %v2862_v45 = vld [vmem:[%s12344_s10 + $0xb0] sm:$0xff] }
 0x71d   :  { %3853 = vmatpush1.bf16.msra.mxu0 %v8559_v50  ;;  %v8665_v50 = vcombine.low %v2969_v46, %v2973_v48 }
 0x71e   :  { %3854 = vmatprep.subr.bf16.mxu0 %v8568_v51  ;;  %v8666_v51 = vcombine.high %v2969_v46, %v2973_v48  ;;  %v2859_v46 = vld [vmem:[%s12344_s10 + $0x98] sm:$0xff] }
 0x720   :  { %3969 = vmatprep.subr.bf16.mxu1 %v8666_v51 }
 0x721   :  { %3855 = vmatpush1.bf16.msra.mxu0 %v8567_v56  ;;  %v2980_v56 = vld [vmem:[%s12344_s10 + $0x460] sm:$0xff] }
 0x722   :  { %3856 = vmatprep.subr.bf16.mxu0 %v8576_v58  ;;  %v2977_v58 = vld [vmem:[%s12344_s10 + $0x448] sm:$0xff]  ;;  %v8671_v8 = vcombine.low %v2976_v52, %v2980_v56 }
 0x723   :  { %v8673_v10 = vcombine.low %v2977_v58, %v2981_v59 }
 0x725   :  { %3857 = vmatpush1.bf16.msra.mxu0 %v8575_v61 }
 0x726   :  { %3858 = vmatprep.subr.bf16.mxu0 %v8584_v62 }
 0x729   :  { %3859 = vmatpush1.bf16.msra.mxu0 %v8583_v1  ;;  %v8672_v1 = vcombine.high %v2976_v52, %v2980_v56  ;;  %v2866_v52 = vld [vmem:[%s12344_s10 + $0xd0] sm:$0xff]  ;;  %v2867_v56 = vld [vmem:[%s12344_s10 + $0xd8] sm:$0xff] }
 0x72a   :  { %3860 = vmatprep.subr.bf16.mxu0 %v8592_v2  ;;  %v8674_v2 = vcombine.high %v2977_v58, %v2981_v59  ;;  %v2871_v58 = vld [vmem:[%s12344_s10 + $0xf8] sm:$0xff]  ;;  %v8555_v59 = vcombine.low %v2858_v9, %v2862_v45 }
 0x72d   :  { %3861 = vmatpush1.bf16.msra.mxu0 %v8591_v6  ;;  %v2985_v6 = vld [vmem:[%s12344_s10 + $0x488] sm:$0xff] }
 0x72e   :  { %3862 = vmatprep.subr.bf16.mxu0 %v8600_v7  ;;  %v2989_v7 = vld [vmem:[%s12344_s10 + $0x4a8] sm:$0xff] }
 0x72f   :  { %v8681_v20 = vcombine.low %v2985_v6, %v2989_v7 }
 0x731   :  { %3863 = vmatpush1.bf16.msra.mxu0 %v8599_v11  ;;  %v8680_v11 = vcombine.high %v2984_v3, %v2988_v5  ;;  %v2879_v3 = vld [vmem:[%s12344_s10 + $0x138] sm:$0xff] }
 0x732   :  { %3864 = vmatprep.subr.bf16.mxu0 %v8608_v14  ;;  %v8682_v14 = vcombine.high %v2985_v6, %v2989_v7  ;;  %v8565_v6 = vcombine.low %v2867_v56, %v2871_v58 }
 0x735   :  { %3865 = vmatpush1.bf16.msra.mxu0 %v8607_v15  ;;  %v2993_v15 = vld [vmem:[%s12344_s10 + $0x4c8] sm:$0xff] }
 0x736   :  { %3866 = vmatprep.subr.bf16.mxu0 %v8616_v16  ;;  %v2997_v16 = vld [vmem:[%s12344_s10 + $0x4e8] sm:$0xff] }
 0x737   :  { %v8689_v34 = vcombine.low %v2993_v15, %v2997_v16 }
 0x739   :  { %3867 = vmatpush1.bf16.msra.mxu0 %v8615_v21  ;;  %v8688_v21 = vcombine.high %v2992_v12, %v2996_v13 }
 0x73a   :  { %3868 = vmatprep.subr.bf16.mxu0 %v8624_v22  ;;  %v8690_v22 = vcombine.high %v2993_v15, %v2997_v16 }
 0x73d   :  { %3869 = vmatpush1.bf16.msra.mxu0 %v8623_v26  ;;  %v2846_v26 = vld [vmem:[%s12344_s10 + $0x30] sm:$0xff] }
 0x73e   :  { %3870 = vmatprep.subr.bf16.mxu0 %v8632_v27  ;;  %v2843_v27 = vld [vmem:[%s12344_s10 + $0x18] sm:$0xff]  ;;  %v8539_v42 = vcombine.low %v2842_v25, %v2846_v26 }
 0x741   :  { %3871 = vmatpush1.bf16.msra.mxu0 %v8631_v31 }
 0x742   :  { %3872 = vmatprep.subr.bf16.mxu0 %v8640_v32  ;;  %v8687_v32 = vcombine.low %v2992_v12, %v2996_v13  ;;  %v2887_v12 = vld [vmem:[%s12344_s10 + $0x178] sm:$0xff] }
 0x745   :  { %3873 = vmatpush1.bf16.msra.mxu0 %v8639_v38  ;;  %v8540_v38 = vcombine.high %v2842_v25, %v2846_v26 }
 0x746   :  { %3874 = vmatprep.subr.bf16.mxu0 %v8648_v4  ;;  %v8542_v4 = vcombine.high %v2843_v27, %v2847_v28 }
 0x749   :  { %3875 = vmatpush1.bf16.msra.mxu0 %v8647_v33  ;;  %v2850_v33 = vld [vmem:[%s12344_s10 + $0x50] sm:$0xff] }
 0x74a   :  { %3876 = vmatprep.subr.bf16.mxu0 %v8656_v41  ;;  %v2855_v41 = vld [vmem:[%s12344_s10 + $0x78] sm:$0xff]  ;;  %v8548_v43 = vcombine.high %v2850_v33, %v2854_v40  ;;  %v8547_v48 = vcombine.low %v2850_v33, %v2854_v40  ;;  %v2906_v40 = vld [vmem:[%s12344_s10 + $0x210] sm:$0xff] }
 0x74b   :  { %v8550_v44 = vcombine.high %v2851_v30, %v2855_v41 }
 0x74d   :  { %3877 = vmatpush1.bf16.msra.mxu0 %v8655_v19  ;;  %v8541_v19 = vcombine.low %v2843_v27, %v2847_v28 }
 0x74e   :  { %3887 = vmatprep.subr.bf16.mxu0 %v8664_v47  ;;  %v2863_v47 = vld [vmem:[%s12344_s10 + $0xb8] sm:$0xff] }
 0x74f   :  { %v8558_v51 = vcombine.high %v2859_v46, %v2863_v47 }
 0x7d8   :  { %v2790_v53 = vpop.f32.mrb[56].mxu0 }
 0x7d9   :  { %v2792_v60 = vpop.f32.mrb[57].mxu0  ;;  %v11944_v63 = vpack.c.bf16 %v2790_v53, %v2790_v53  ;;  %v2870_v53 = vld [vmem:[%s12344_s10 + $0xf0] sm:$0xff] }
 0x7da   :  { %v11942_v61 = vpack.c.bf16 %v2792_v60, %v2792_v60  ;;  %v2794_v62 = vpop.f32.mrb[58].mxu0  ;;  %v8557_v60 = vcombine.low %v2859_v46, %v2863_v47  ;;  %v8563_v5 = vcombine.low %v2866_v52, %v2870_v53  ;;  %v2918_v46 = vld [vmem:[%s12344_s10 + $0x270] sm:$0xff]  ;;  %v2915_v47 = vld [vmem:[%s12344_s10 + $0x258] sm:$0xff] }
 0x7db   :  { %v2795_v0 = vpop.f32.mrb[59].mxu0  ;;  %v8566_v62 = vcombine.high %v2867_v56, %v2871_v58  ;;  %v2926_v56 = vld [vmem:[%s12344_s10 + $0x2b0] sm:$0xff]  ;;  %v2923_v58 = vld [vmem:[%s12344_s10 + $0x298] sm:$0xff] }
 0x7dc   :  { %3878 = vmatprep.mubr.bf16.mxu0 %v11942_v61  ;;  %3960 = vmatprep.mubr.bf16.mxu1 %v11942_v61  ;;  %v2874_v0 = vld [vmem:[%s12344_s10 + $0x110] sm:$0xff] }
 0x7dd   :  { %3879 = vmatmul.mubr.bf16.vlgmr.msra.gmra.mrb[64].mxu0 %v11944_v63  ;;  %3961 = vmatmul.mubr.bf16.vlgmr.msra.gmra.mrb[44].mxu1 %v11944_v63 }
 0x7de   :  { %3888 = vmatpush1.bf16.msra.mxu0 %v8663_v49  ;;  %3970 = vmatpush1.bf16.msra.mxu1 %v8665_v50  ;;  %v8549_v49 = vcombine.low %v2851_v30, %v2855_v41  ;;  %v8556_v50 = vcombine.high %v2858_v9, %v2862_v45  ;;  %v2910_v30 = vld [vmem:[%s12344_s10 + $0x230] sm:$0xff]  ;;  %v2907_v41 = vld [vmem:[%s12344_s10 + $0x218] sm:$0xff] }
 0x7df   :  { %3889 = vmatprep.subr.bf16.mxu0 %v8672_v1  ;;  %3971 = vmatprep.subr.bf16.mxu1 %v8674_v2  ;;  %v2878_v1 = vld [vmem:[%s12344_s10 + $0x130] sm:$0xff]  ;;  %v2875_v2 = vld [vmem:[%s12344_s10 + $0x118] sm:$0xff] }
 0x7e0   :  { %3919 = vmatprep.mubr.bf16.mxu0 %v10715_v36  ;;  %4001 = vmatprep.mubr.bf16.mxu1 %v10715_v36  ;;  %v8572_v7 = vcombine.high %v2874_v0, %v2878_v1  ;;  %v8571_v13 = vcombine.low %v2874_v0, %v2878_v1  ;;  %v8573_v15 = vcombine.low %v2875_v2, %v2879_v3  ;;  %v2914_v45 = vld [vmem:[%s12344_s10 + $0x250] sm:$0xff] }
 0x7e1   :  { %v2930_v1 = vld [vmem:[%s12344_s10 + $0x2d0] sm:$0xff] }
 0x7e2   :  { %3890 = vmatpush1.bf16.msra.mxu0 %v8671_v8  ;;  %3972 = vmatpush1.bf16.msra.mxu1 %v8673_v10  ;;  %v8574_v8 = vcombine.high %v2875_v2, %v2879_v3  ;;  %v2882_v10 = vld [vmem:[%s12344_s10 + $0x150] sm:$0xff]  ;;  %v2931_v3 = vld [vmem:[%s12344_s10 + $0x2d8] sm:$0xff] }
 0x7e3   :  { %3891 = vmatprep.subr.bf16.mxu0 %v8680_v11  ;;  %3973 = vmatprep.subr.bf16.mxu1 %v8682_v14  ;;  %v2831_v23 = vpop.f32.mrb[60].mxu0  ;;  %v2886_v11 = vld [vmem:[%s12344_s10 + $0x170] sm:$0xff]  ;;  %v2883_v14 = vld [vmem:[%s12344_s10 + $0x158] sm:$0xff] }
 0x7e4   :  { %v9460_v29 = vpop.f32.mrb[61].mxu0  ;;  %v11991_v39 = vpack.c.bf16 %v2831_v23, %v2831_v23  ;;  %v8580_v16 = vcombine.high %v2882_v10, %v2886_v11  ;;  %v2895_v23 = vld [vmem:[%s12344_s10 + $0x1b8] sm:$0xff]  ;;  %v8579_v25 = vcombine.low %v2882_v10, %v2886_v11  ;;  %v8581_v26 = vcombine.low %v2883_v14, %v2887_v12  ;;  %v2934_v2 = vld [vmem:[%s12344_s10 + $0x2f0] sm:$0xff] }
 0x7e5   :  { %v2834_v31 = vpop.f32.mrb[62].mxu0  ;;  %v2898_v29 = vld [vmem:[%s12344_s10 + $0x1d0] sm:$0xff] }
 0x7e6   :  { %3892 = vmatpush1.bf16.msra.mxu0 %v8679_v17  ;;  %3974 = vmatpush1.bf16.msra.mxu1 %v8681_v20  ;;  %v9461_v35 = vpop.f32.mrb[63].mxu0  ;;  %v8582_v17 = vcombine.high %v2883_v14, %v2887_v12  ;;  %v2890_v20 = vld [vmem:[%s12344_s10 + $0x190] sm:$0xff]  ;;  %v2939_v12 = vld [vmem:[%s12344_s10 + $0x318] sm:$0xff] }
 0x7e7   :  { %3893 = vmatprep.subr.bf16.mxu0 %v8688_v21  ;;  %3975 = vmatprep.subr.bf16.mxu1 %v8690_v22  ;;  %v2894_v21 = vld [vmem:[%s12344_s10 + $0x1b0] sm:$0xff]  ;;  %v2891_v22 = vld [vmem:[%s12344_s10 + $0x198] sm:$0xff] }
 0x7e8   :  { %v8588_v27 = vcombine.high %v2890_v20, %v2894_v21  ;;  %v8590_v28 = vcombine.high %v2891_v22, %v2895_v23  ;;  %v2902_v31 = vld [vmem:[%s12344_s10 + $0x1f0] sm:$0xff]  ;;  %v8587_v35 = vcombine.low %v2890_v20, %v2894_v21 }
 0x7e9   :  { %v2938_v11 = vld [vmem:[%s12344_s10 + $0x310] sm:$0xff] }
 0x7ea   :  { %3894 = vmatpush1.bf16.msra.mxu0 %v8687_v32  ;;  %3976 = vmatpush1.bf16.msra.mxu1 %v8689_v34  ;;  %v2899_v32 = vld [vmem:[%s12344_s10 + $0x1d8] sm:$0xff]  ;;  %v2942_v14 = vld [vmem:[%s12344_s10 + $0x330] sm:$0xff] }
 0x7eb   :  { %4010 = vmatprep.subr.bf16.mxu0 %v8540_v38  ;;  %4092 = vmatprep.subr.bf16.mxu1 %v8542_v4  ;;  %v2903_v34 = vld [vmem:[%s12344_s10 + $0x1f8] sm:$0xff]  ;;  %v8589_v38 = vcombine.low %v2891_v22, %v2895_v23  ;;  %v8596_v4 = vcombine.high %v2898_v29, %v2902_v31  ;;  %v2946_v21 = vld [vmem:[%s12344_s10 + $0x350] sm:$0xff] }
 0x7ec   :  { %v8598_v33 = vcombine.high %v2899_v32, %v2903_v34  ;;  %v2950_v22 = vld [vmem:[%s12344_s10 + $0x370] sm:$0xff]  ;;  %v2947_v23 = vld [vmem:[%s12344_s10 + $0x358] sm:$0xff] }
 0x7ed   :  { %8695 = vmatmul.mubr.msk.bf16.vlgmr.msra.gmra.mrb[64].mxu0 %vm3842_vm2, %v11991_v39  ;;  %8696 = vmatmul.mubr.msk.bf16.vlgmr.msra.gmra.mrb[44].mxu1 %vm3842_vm2, %v11991_v39 }
 0x7ee   :  { %4011 = vmatpush1.bf16.msra.mxu0 %v8539_v42  ;;  %4042 = vmatprep.mubr.bf16.mxu0 %v11942_v61  ;;  %v2911_v42 = vld [vmem:[%s12344_s10 + $0x238] sm:$0xff] }
 0x7ef   :  { %4093 = vmatpush1.bf16.msra.mxu1 %v8541_v19  ;;  %4124 = vmatprep.mubr.bf16.mxu1 %v11942_v61  ;;  %v8564_v61 = vcombine.high %v2866_v52, %v2870_v53  ;;  %v8595_v19 = vcombine.low %v2898_v29, %v2902_v31  ;;  %v8606_v9 = vcombine.high %v2907_v41, %v2911_v42  ;;  %v2922_v53 = vld [vmem:[%s12344_s10 + $0x290] sm:$0xff] }
 0x7f0   :  { %4012 = vmatprep.subr.bf16.mxu0 %v8548_v43  ;;  %4094 = vmatprep.subr.bf16.mxu1 %v8550_v44  ;;  %v8597_v43 = vcombine.low %v2899_v32, %v2903_v34  ;;  %v8604_v44 = vcombine.high %v2906_v40, %v2910_v30  ;;  %v2954_v31 = vld [vmem:[%s12344_s10 + $0x390] sm:$0xff]  ;;  %v2955_v34 = vld [vmem:[%s12344_s10 + $0x398] sm:$0xff] }
 0x7f1   :  { %v2958_v32 = vld [vmem:[%s12344_s10 + $0x3b0] sm:$0xff] }
 0x7f2   :  { %4013 = vmatpush1.bf16.msra.mxu0 %v8547_v48  ;;  %v2919_v48 = vld [vmem:[%s12344_s10 + $0x278] sm:$0xff] }
 0x7f3   :  { %4095 = vmatpush1.bf16.msra.mxu1 %v8549_v49  ;;  %4014 = vmatprep.subr.bf16.mxu0 %v8556_v50  ;;  %v8603_v49 = vcombine.low %v2906_v40, %v2910_v30  ;;  %v8605_v50 = vcombine.low %v2907_v41, %v2911_v42  ;;  %v8614_v52 = vcombine.high %v2915_v47, %v2919_v48  ;;  %v2962_v30 = vld [vmem:[%s12344_s10 + $0x3d0] sm:$0xff]  ;;  %v2963_v42 = vld [vmem:[%s12344_s10 + $0x3d8] sm:$0xff] }
 0x7f4   :  { %4096 = vmatprep.subr.bf16.mxu1 %v8558_v51  ;;  %v8612_v51 = vcombine.high %v2914_v45, %v2918_v46  ;;  %v2966_v41 = vld [vmem:[%s12344_s10 + $0x3f0] sm:$0xff] }
 0x7f6   :  { %4015 = vmatpush1.bf16.msra.mxu0 %v8555_v59  ;;  %v2927_v59 = vld [vmem:[%s12344_s10 + $0x2b8] sm:$0xff] }
 0x7f7   :  { %4097 = vmatpush1.bf16.msra.mxu1 %v8557_v60  ;;  %4016 = vmatprep.subr.bf16.mxu0 %v8564_v61  ;;  %v8611_v60 = vcombine.low %v2914_v45, %v2918_v46  ;;  %v8613_v61 = vcombine.low %v2915_v47, %v2919_v48  ;;  %v8622_v0 = vcombine.high %v2923_v58, %v2927_v59  ;;  %v2970_v46 = vld [vmem:[%s12344_s10 + $0x410] sm:$0xff]  ;;  %v2971_v48 = vld [vmem:[%s12344_s10 + $0x418] sm:$0xff] }
 0x7f8   :  { %4098 = vmatprep.subr.bf16.mxu1 %v8566_v62  ;;  %v8620_v62 = vcombine.high %v2922_v53, %v2926_v56  ;;  %v2974_v47 = vld [vmem:[%s12344_s10 + $0x430] sm:$0xff] }
 0x7fa   :  { %4017 = vmatpush1.bf16.msra.mxu0 %v8563_v5  ;;  %v2935_v5 = vld [vmem:[%s12344_s10 + $0x2f8] sm:$0xff] }
 0x7fb   :  { %4099 = vmatpush1.bf16.msra.mxu1 %v8565_v6  ;;  %4018 = vmatprep.subr.bf16.mxu0 %v8572_v7  ;;  %v8619_v6 = vcombine.low %v2922_v53, %v2926_v56  ;;  %v8621_v7 = vcombine.low %v2923_v58, %v2927_v59  ;;  %v8630_v10 = vcombine.high %v2931_v3, %v2935_v5  ;;  %v2978_v56 = vld [vmem:[%s12344_s10 + $0x450] sm:$0xff]  ;;  %v2979_v59 = vld [vmem:[%s12344_s10 + $0x458] sm:$0xff] }
 0x7fc   :  { %4100 = vmatprep.subr.bf16.mxu1 %v8574_v8  ;;  %v8628_v8 = vcombine.high %v2930_v1, %v2934_v2  ;;  %v2982_v58 = vld [vmem:[%s12344_s10 + $0x470] sm:$0xff] }
 0x7fe   :  { %4019 = vmatpush1.bf16.msra.mxu0 %v8571_v13  ;;  %v2943_v13 = vld [vmem:[%s12344_s10 + $0x338] sm:$0xff] }
 0x7ff   :  { %4101 = vmatpush1.bf16.msra.mxu1 %v8573_v15  ;;  %4020 = vmatprep.subr.bf16.mxu0 %v8580_v16  ;;  %v8627_v15 = vcombine.low %v2930_v1, %v2934_v2  ;;  %v8629_v16 = vcombine.low %v2931_v3, %v2935_v5  ;;  %v8638_v20 = vcombine.high %v2939_v12, %v2943_v13  ;;  %v2986_v2 = vld [vmem:[%s12344_s10 + $0x490] sm:$0xff]  ;;  %v2987_v5 = vld [vmem:[%s12344_s10 + $0x498] sm:$0xff] }
 0x800   :  { %4102 = vmatprep.subr.bf16.mxu1 %v8582_v17  ;;  %v8636_v17 = vcombine.high %v2938_v11, %v2942_v14  ;;  %v2990_v3 = vld [vmem:[%s12344_s10 + $0x4b0] sm:$0xff] }
 0x802   :  { %4021 = vmatpush1.bf16.msra.mxu0 %v8579_v25  ;;  %v2951_v25 = vld [vmem:[%s12344_s10 + $0x378] sm:$0xff] }
 0x803   :  { %4103 = vmatpush1.bf16.msra.mxu1 %v8581_v26  ;;  %4022 = vmatprep.subr.bf16.mxu0 %v8588_v27  ;;  %v8635_v26 = vcombine.low %v2938_v11, %v2942_v14  ;;  %v8637_v27 = vcombine.low %v2939_v12, %v2943_v13  ;;  %v8646_v29 = vcombine.high %v2947_v23, %v2951_v25  ;;  %v2994_v14 = vld [vmem:[%s12344_s10 + $0x4d0] sm:$0xff]  ;;  %v2999_v13 = vld [vmem:[%s12344_s10 + $0x4f8] sm:$0xff] }
 0x804   :  { %4104 = vmatprep.subr.bf16.mxu1 %v8590_v28  ;;  %v8644_v28 = vcombine.high %v2946_v21, %v2950_v22  ;;  %v2998_v12 = vld [vmem:[%s12344_s10 + $0x4f0] sm:$0xff] }
 0x806   :  { %4023 = vmatpush1.bf16.msra.mxu0 %v8587_v35  ;;  %v2959_v35 = vld [vmem:[%s12344_s10 + $0x3b8] sm:$0xff] }
 0x807   :  { %4105 = vmatpush1.bf16.msra.mxu1 %v8589_v38  ;;  %4024 = vmatprep.subr.bf16.mxu0 %v8596_v4  ;;  %v8643_v38 = vcombine.low %v2946_v21, %v2950_v22  ;;  %v8645_v4 = vcombine.low %v2947_v23, %v2951_v25  ;;  %v8654_v40 = vcombine.high %v2955_v34, %v2959_v35  ;;  %v9887_v23 = vld [vmem:[#allocation10 + $0x40] sm:$0xff]  }
 0x808   :  { %4106 = vmatprep.subr.bf16.mxu1 %v8598_v33  ;;  %v8652_v33 = vcombine.high %v2954_v31, %v2958_v32  ;;  %v8691_v21 = vcombine.low %v2994_v14, %v2998_v12  ;;  %v9888_v25 = vld [vmem:[#allocation10 + $0xc0] sm:$0xff]  }
 0x80a   :  { %4025 = vmatpush1.bf16.msra.mxu0 %v8595_v19  ;;  %v2967_v19 = vld [vmem:[%s12344_s10 + $0x3f8] sm:$0xff] }
 0x80b   :  { %4107 = vmatpush1.bf16.msra.mxu1 %v8597_v43  ;;  %4026 = vmatprep.subr.bf16.mxu0 %v8604_v44  ;;  %v8651_v43 = vcombine.low %v2954_v31, %v2958_v32  ;;  %v8653_v44 = vcombine.low %v2955_v34, %v2959_v35  ;;  %v8662_v45 = vcombine.high %v2963_v42, %v2967_v19  ;;  %v9893_v31 = vld [vmem:[#allocation10 + $0x8] sm:$0xff]   ;;  %v9895_v34 = vld [vmem:[#allocation10 + $0x50] sm:$0xff]  }
 0x80c   :  { %4108 = vmatprep.subr.bf16.mxu1 %v8606_v9  ;;  %v8660_v9 = vcombine.high %v2962_v30, %v2966_v41  ;;  %v9894_v32 = vld [vmem:[#allocation10 + $0x88] sm:$0xff]   ;;  %v9896_v35 = vld [vmem:[#allocation10 + $0xd0] sm:$0xff]  }
 0x80e   :  { %4027 = vmatpush1.bf16.msra.mxu0 %v8603_v49  ;;  %v2975_v49 = vld [vmem:[%s12344_s10 + $0x438] sm:$0xff] }
 0x80f   :  { %4109 = vmatpush1.bf16.msra.mxu1 %v8605_v50  ;;  %4028 = vmatprep.subr.bf16.mxu0 %v8612_v51  ;;  %v8659_v50 = vcombine.low %v2962_v30, %v2966_v41  ;;  %v8661_v51 = vcombine.low %v2963_v42, %v2967_v19  ;;  %v8670_v53 = vcombine.high %v2971_v48, %v2975_v49  ;;  %v9901_v30 = vld [vmem:[#allocation10 + $0x18] sm:$0xff]   ;;  %v9903_v41 = vld [vmem:[#allocation10 + $0x60] sm:$0xff]  }
 0x810   :  { %4110 = vmatprep.subr.bf16.mxu1 %v8614_v52  ;;  %v8668_v52 = vcombine.high %v2970_v46, %v2974_v47  ;;  %v9904_v42 = vld [vmem:[#allocation10 + $0xe0] sm:$0xff]  }
 0x811   :  { %v9905_v19 = vld [vmem:[#allocation10 + $0x20] sm:$0xff]  }
 0x812   :  { %4029 = vmatpush1.bf16.msra.mxu0 %v8611_v60  ;;  %v2983_v60 = vld [vmem:[%s12344_s10 + $0x478] sm:$0xff] }
 0x813   :  { %4111 = vmatpush1.bf16.msra.mxu1 %v8613_v61  ;;  %4030 = vmatprep.subr.bf16.mxu0 %v8620_v62  ;;  %v8667_v61 = vcombine.low %v2970_v46, %v2974_v47  ;;  %v8669_v62 = vcombine.low %v2971_v48, %v2975_v49  ;;  %v8678_v1 = vcombine.high %v2979_v59, %v2983_v60  ;;  %v9910_v46 = vld [vmem:[#allocation10 + $0xa8] sm:$0xff]   ;;  %v9911_v47 = vld [vmem:[#allocation10 + $0x70] sm:$0xff]  }
 0x814   :  { %4112 = vmatprep.subr.bf16.mxu1 %v8622_v0  ;;  %v8676_v0 = vcombine.high %v2978_v56, %v2982_v58  ;;  %v9912_v48 = vld [vmem:[#allocation10 + $0xf0] sm:$0xff]  }
 0x815   :  { %v9913_v49 = vld [vmem:[#allocation10 + $0x30] sm:$0xff]  }
 0x816   :  { %4031 = vmatpush1.bf16.msra.mxu0 %v8619_v6  ;;  %v2991_v6 = vld [vmem:[%s12344_s10 + $0x4b8] sm:$0xff] }
 0x817   :  { %4113 = vmatpush1.bf16.msra.mxu1 %v8621_v7  ;;  %4032 = vmatprep.subr.bf16.mxu0 %v8628_v8  ;;  %v8675_v7 = vcombine.low %v2978_v56, %v2982_v58  ;;  %v8677_v8 = vcombine.low %v2979_v59, %v2983_v60  ;;  %v8686_v11 = vcombine.high %v2987_v5, %v2991_v6  ;;  %v9918_v56 = vld [vmem:[#allocation10 + $0xb8] sm:$0xff]   ;;  %v9919_v58 = vld [vmem:[#allocation10 + $0x140] sm:$0xff]  }
 0x818   :  { %4114 = vmatprep.subr.bf16.mxu1 %v8630_v10  ;;  %v8684_v10 = vcombine.high %v2986_v2, %v2990_v3  ;;  %v9920_v59 = vld [vmem:[#allocation10 + $0x1c0] sm:$0xff]   ;;  %v12232_v60 = vld [vmem:[#allocation9] sm:$0xff] }
 0x81a   :  { %4033 = vmatpush1.bf16.msra.mxu0 %v8627_v15  ;;  %v8683_v15 = vcombine.low %v2986_v2, %v2990_v3 }
 0x81b   :  { %4115 = vmatpush1.bf16.msra.mxu1 %v8629_v16  ;;  %4034 = vmatprep.subr.bf16.mxu0 %v8636_v17  ;;  %v8685_v16 = vcombine.low %v2987_v5, %v2991_v6  ;;  %v8692_v17 = vcombine.high %v2994_v14, %v2998_v12 }
 0x81c   :  { %4116 = vmatprep.subr.bf16.mxu1 %v8638_v20 }
 0x81e   :  { %4035 = vmatpush1.bf16.msra.mxu0 %v8635_v26  ;;  %v9889_v26 = vld [vmem:[#allocation10] sm:$0xff]  }
 0x81f   :  { %4117 = vmatpush1.bf16.msra.mxu1 %v8637_v27  ;;  %4036 = vmatprep.subr.bf16.mxu0 %v8644_v28  ;;  %v9890_v27 = vld [vmem:[#allocation10 + $0x80] sm:$0xff]   ;;  %v9891_v28 = vld [vmem:[#allocation10 + $0x48] sm:$0xff]  }
 0x820   :  { %4118 = vmatprep.subr.bf16.mxu1 %v8646_v29  ;;  %v9892_v29 = vld [vmem:[#allocation10 + $0xc8] sm:$0xff]  }
 0x822   :  { %4037 = vmatpush1.bf16.msra.mxu0 %v8643_v38  ;;  %v9897_v38 = vld [vmem:[#allocation10 + $0x10] sm:$0xff]  }
 0x823   :  { %4119 = vmatpush1.bf16.msra.mxu1 %v8645_v4  ;;  %4038 = vmatprep.subr.bf16.mxu0 %v8652_v33  ;;  %v9898_v4 = vld [vmem:[#allocation10 + $0x90] sm:$0xff]   ;;  %v9899_v33 = vld [vmem:[#allocation10 + $0x58] sm:$0xff]  }
 0x824   :  { %4120 = vmatprep.subr.bf16.mxu1 %v8654_v40  ;;  %v9900_v40 = vld [vmem:[#allocation10 + $0xd8] sm:$0xff]  }
 0x826   :  { %4039 = vmatpush1.bf16.msra.mxu0 %v8651_v43  ;;  %v9906_v43 = vld [vmem:[#allocation10 + $0xa0] sm:$0xff]  }
 0x827   :  { %4121 = vmatpush1.bf16.msra.mxu1 %v8653_v44  ;;  %4040 = vmatprep.subr.bf16.mxu0 %v8660_v9  ;;  %v9907_v44 = vld [vmem:[#allocation10 + $0x68] sm:$0xff]  }
 0x828   :  { %4122 = vmatprep.subr.bf16.mxu1 %v8662_v45  ;;  %v9908_v9 = vld [vmem:[#allocation10 + $0xe8] sm:$0xff]  }
 0x829   :  { %v9909_v45 = vld [vmem:[#allocation10 + $0x28] sm:$0xff]  }
 0x82a   :  { %4041 = vmatpush1.bf16.msra.mxu0 %v8659_v50  ;;  %v9914_v50 = vld [vmem:[#allocation10 + $0xb0] sm:$0xff]  }
 0x82b   :  { %4123 = vmatpush1.bf16.msra.mxu1 %v8661_v51  ;;  %4051 = vmatprep.subr.bf16.mxu0 %v8668_v52  ;;  %v9915_v51 = vld [vmem:[#allocation10 + $0x78] sm:$0xff]  }
 0x82c   :  { %4133 = vmatprep.subr.bf16.mxu1 %v8670_v53  ;;  %v9916_v52 = vld [vmem:[#allocation10 + $0xf8] sm:$0xff]  }
 0x82d   :  { %4043 = vmatmul.mubr.bf16.vlgmr.msra.gmra.mrb[68].mxu0 %v11944_v63  ;;  %v9917_v53 = vld [vmem:[#allocation10 + $0x38] sm:$0xff]  }
 0x82e   :  { %4125 = vmatmul.mubr.bf16.vlgmr.msra.gmra.mrb[48].mxu1 %v11944_v63  ;;  %4052 = vmatpush1.bf16.msra.mxu0 %v8667_v61  ;;  %v2995_v63 = vld [vmem:[%s12344_s10 + $0x4d8] sm:$0xff]  ;;  %v3005_v61 = vrot.slane %v12232_v60, %v11234_v55 }
 0x82f   :  { %4134 = vmatpush1.bf16.msra.mxu1 %v8669_v62  ;;  %4053 = vmatprep.subr.bf16.mxu0 %v8676_v0  ;;  %v8694_v20 = vcombine.high %v2995_v63, %v2999_v13  ;;  %v8693_v22 = vcombine.low %v2995_v63, %v2999_v13  ;;  %v3013_v62 = vrot.slane %v12232_v60, %v11459_v18 }
 0x830   :  { %4135 = vmatprep.subr.bf16.mxu1 %v8678_v1  ;;  %4083 = vmatprep.mubr.bf16.mxu0 %v10715_v36  ;;  %v3009_v0 = vrot.slane %v12232_v60, %v11237_v57  ;;  %v3017_v1 = vrot.slane %v12232_v60, %v11462_v24 }
 0x831   :  { %4165 = vmatprep.mubr.bf16.mxu1 %v10715_v36 }
 0x832   :  { %4054 = vmatpush1.bf16.msra.mxu0 %v8675_v7 }
 0x833   :  { %4136 = vmatpush1.bf16.msra.mxu1 %v8677_v8  ;;  %4055 = vmatprep.subr.bf16.mxu0 %v8684_v10 }
 0x834   :  { %4137 = vmatprep.subr.bf16.mxu1 %v8686_v11 }
 0x836   :  { %4056 = vmatpush1.bf16.msra.mxu0 %v8683_v15 }
 0x837   :  { %4138 = vmatpush1.bf16.msra.mxu1 %v8685_v16  ;;  %4057 = vmatprep.subr.bf16.mxu0 %v8692_v17 }
 0x838   :  { %4139 = vmatprep.subr.bf16.mxu1 %v8694_v20 }
 0x83a   :  { %4058 = vmatpush1.bf16.msra.mxu0 %v8691_v21 }
 0x83b   :  { %4140 = vmatpush1.bf16.msra.mxu1 %v8693_v22  ;;  %9286 = vmatprep.subr.bf16.mxu0 %v9887_v23  ;;  %v9921_v23 = vld [vmem:[#allocation10 + $0x100] sm:$0xff]  }
 0x83c   :  { %9308 = vmatprep.subr.bf16.mxu1 %v9888_v25  ;;  %v9922_v25 = vld [vmem:[#allocation10 + $0x180] sm:$0xff]  }
 0x83d   :  { %8697 = vmatmul.mubr.msk.bf16.vlgmr.msra.gmra.mrb[68].mxu0 %vm3842_vm2, %v11991_v39 }
 0x83e   :  { %8698 = vmatmul.mubr.msk.bf16.vlgmr.msra.gmra.mrb[48].mxu1 %vm3842_vm2, %v11991_v39  ;;  %9287 = vmatpush3.bf16.msra.mxu0 %v9889_v26  ;;  %v9902_v39 = vld [vmem:[#allocation10 + $0x98] sm:$0xff]  }
 0x83f   :  { %9309 = vmatpush3.bf16.msra.mxu1 %v9890_v27  ;;  %9288 = vmatprep.subr.bf16.mxu0 %v9891_v28  ;;  %v9923_v28 = vld [vmem:[#allocation10 + $0x148] sm:$0xff]  }
 0x840   :  { %9310 = vmatprep.subr.bf16.mxu1 %v9892_v29  ;;  %v9924_v29 = vld [vmem:[#allocation10 + $0x1c8] sm:$0xff]  }
 0x842   :  { %9289 = vmatpush3.bf16.msra.mxu0 %v9893_v31  ;;  %v9925_v31 = vld [vmem:[#allocation10 + $0x108] sm:$0xff]  }
 0x843   :  { %9311 = vmatpush3.bf16.msra.mxu1 %v9894_v32  ;;  %9290 = vmatprep.subr.bf16.mxu0 %v9895_v34  ;;  %v9926_v32 = vld [vmem:[#allocation10 + $0x188] sm:$0xff]   ;;  %v9927_v34 = vld [vmem:[#allocation10 + $0x150] sm:$0xff]  }
 0x844   :  { %9312 = vmatprep.subr.bf16.mxu1 %v9896_v35  ;;  %v9928_v35 = vld [vmem:[#allocation10 + $0x1d0] sm:$0xff]  }
 0x846   :  { %9291 = vmatpush3.bf16.msra.mxu0 %v9897_v38  ;;  %v9929_v38 = vld [vmem:[#allocation10 + $0x110] sm:$0xff]  }
 0x847   :  { %9313 = vmatpush3.bf16.msra.mxu1 %v9898_v4  ;;  %9292 = vmatprep.subr.bf16.mxu0 %v9899_v33  ;;  %v9930_v4 = vld [vmem:[#allocation10 + $0x190] sm:$0xff]   ;;  %v9931_v33 = vld [vmem:[#allocation10 + $0x158] sm:$0xff]  }
 0x848   :  { %9314 = vmatprep.subr.bf16.mxu1 %v9900_v40  ;;  %v9932_v40 = vld [vmem:[#allocation10 + $0x1d8] sm:$0xff]  }
 0x84a   :  { %9293 = vmatpush3.bf16.msra.mxu0 %v9901_v30  ;;  %v9933_v30 = vld [vmem:[#allocation10 + $0x118] sm:$0xff]  }
 0x84b   :  { %9315 = vmatpush3.bf16.msra.mxu1 %v9902_v39  ;;  %9294 = vmatprep.subr.bf16.mxu0 %v9903_v41  ;;  %v9934_v39 = vld [vmem:[#allocation10 + $0x198] sm:$0xff]   ;;  %v9935_v41 = vld [vmem:[#allocation10 + $0x160] sm:$0xff]  }
 0x84c   :  { %9316 = vmatprep.subr.bf16.mxu1 %v9904_v42  ;;  %v9936_v42 = vld [vmem:[#allocation10 + $0x1e0] sm:$0xff]  }
 0x84e   :  { %9295 = vmatpush3.bf16.msra.mxu0 %v9905_v19  ;;  %v9937_v19 = vld [vmem:[#allocation10 + $0x120] sm:$0xff]  }
 0x84f   :  { %9317 = vmatpush3.bf16.msra.mxu1 %v9906_v43  ;;  %9296 = vmatprep.subr.bf16.mxu0 %v9907_v44  ;;  %v9938_v43 = vld [vmem:[#allocation10 + $0x1a0] sm:$0xff]   ;;  %v9939_v44 = vld [vmem:[#allocation10 + $0x168] sm:$0xff]  }
 0x850   :  { %9318 = vmatprep.subr.bf16.mxu1 %v9908_v9  ;;  %v9940_v9 = vld [vmem:[#allocation10 + $0x1e8] sm:$0xff]  }
 0x852   :  { %9297 = vmatpush3.bf16.msra.mxu0 %v9909_v45  ;;  %v9941_v45 = vld [vmem:[#allocation10 + $0x128] sm:$0xff]  }
 0x853   :  { %9319 = vmatpush3.bf16.msra.mxu1 %v9910_v46  ;;  %9298 = vmatprep.subr.bf16.mxu0 %v9911_v47  ;;  %v9942_v46 = vld [vmem:[#allocation10 + $0x1a8] sm:$0xff]   ;;  %v9943_v47 = vld [vmem:[#allocation10 + $0x170] sm:$0xff]  }
 0x854   :  { %9320 = vmatprep.subr.bf16.mxu1 %v9912_v48  ;;  %v9944_v48 = vld [vmem:[#allocation10 + $0x1f0] sm:$0xff]  }
 0x856   :  { %9299 = vmatpush3.bf16.msra.mxu0 %v9913_v49  ;;  %v9945_v49 = vld [vmem:[#allocation10 + $0x130] sm:$0xff]  }
 0x857   :  { %9321 = vmatpush3.bf16.msra.mxu1 %v9914_v50  ;;  %9300 = vmatprep.subr.bf16.mxu0 %v9915_v51  ;;  %v9946_v50 = vld [vmem:[#allocation10 + $0x1b0] sm:$0xff]   ;;  %v9947_v51 = vld [vmem:[#allocation10 + $0x178] sm:$0xff]  }
 0x858   :  { %9322 = vmatprep.subr.bf16.mxu1 %v9916_v52  ;;  %v9948_v52 = vld [vmem:[#allocation10 + $0x1f8] sm:$0xff]  }
 0x85a   :  { %9301 = vmatpush3.bf16.msra.mxu0 %v9917_v53  ;;  %v9949_v53 = vld [vmem:[#allocation10 + $0x138] sm:$0xff]  }
 0x85b   :  { %9323 = vmatpush3.bf16.msra.mxu1 %v9918_v56  ;;  %9330 = vmatprep.subr.bf16.mxu0 %v9919_v58  ;;  %v9950_v56 = vld [vmem:[#allocation10 + $0x1b8] sm:$0xff]   ;;  %v3028_v58 = vsub.s32 6, %v11231_v54 }
 0x85c   :  { %9352 = vmatprep.subr.bf16.mxu1 %v9920_v59  ;;  %v3024_v59 = vsub.s32 5, %v11231_v54 }
 0x8c0   :  { %v3921_v2 = vpop.f32.mrb[64].mxu0  ;;  %v4003_v3 = vpop.f32.mrb[44].mxu1 }
 0x8c1   :  { %v9466_v5 = vadd.f32 %v3921_v2, %v3005_v61  ;;  %v9468_v6 = vadd.f32 %v4003_v3, %v3013_v62  ;;  %v3923_v7 = vpop.f32.mrb[65].mxu0  ;;  %v4005_v8 = vpop.f32.mrb[45].mxu1  ;;  %v3032_v61 = vsub.s32 7, %v11231_v54  ;;  %v3021_v62 = vrot.slane %v12232_v60, %v11535_v37 }
 0x8c2   :  { %v9467_v10 = vadd.f32 %v3923_v7, %v3009_v0  ;;  %v9469_v11 = vadd.f32 %v4005_v8, %v3017_v1  ;;  %v3925_v14 = vpop.f32.mrb[66].mxu0  ;;  %v4007_v12 = vpop.f32.mrb[46].mxu1  ;;  %v3029_v0 = vrot.slane %v12232_v60, %v3028_v58  ;;  %v3025_v1 = vrot.slane %v12232_v60, %v3024_v59 }
 0x8c3   :  { %v4174_v63 = vmax.f32 %v9466_v5, 0.0  ;;  %v4176_v13 = vmax.f32 %v9468_v6, 0.0  ;;  %v3926_v15 = vpop.f32.mrb[67].mxu0  ;;  %v4008_v16 = vpop.f32.mrb[47].mxu1  ;;  %v3033_v2 = vrot.slane %v12232_v60, %v3032_v61 }
 0x8c4   :  { %v4175_v17 = vmax.f32 %v9467_v10, 0.0  ;;  %v4177_v20 = vmax.f32 %v9469_v11, 0.0 }
 0x8c5   :  { %v4182_v26 = vpack.c.bf16 %v4174_v63, %v4174_v63  ;;  %v4184_v27 = vpack.c.bf16 %v4176_v13, %v4176_v13 }
 0x8c6   :  { %v4183_v21 = vpack.c.bf16 %v4175_v17, %v4175_v17  ;;  %v4185_v22 = vpack.c.bf16 %v4177_v20, %v4177_v20 }
 0x8c8   :  { %4741 = vmatprep.mubr.bf16.mxu0 %v4183_v21  ;;  %4781 = vmatprep.mubr.bf16.mxu1 %v4185_v22 }
 0x8c9   :  { %4742 = vmatmul.mubr.bf16.vlgmr.msra.gmra.mrb[72].mxu0 %v4182_v26  ;;  %4782 = vmatmul.mubr.bf16.vlgmr.msra.gmra.mrb[52].mxu1 %v4184_v27  ;;  %v4935_v26 = vld [vmem:[#allocation15] sm:$0xff] }
 0x8ca   :  { %9331 = vmatpush3.bf16.msra.mxu0 %v9921_v23  ;;  %9353 = vmatpush3.bf16.msra.mxu1 %v9922_v25  ;;  %v4939_v27 = vld [vmem:[#allocation15 + $0x20] sm:$0xff] }
 0x8cb   :  { %9332 = vmatprep.subr.bf16.mxu0 %v9923_v28  ;;  %9354 = vmatprep.subr.bf16.mxu1 %v9924_v29  ;;  %v4936_v28 = vld [vmem:[#allocation15 + $0x8] sm:$0xff]  ;;  %v8764_v29 = vcombine.low %v4935_v26, %v4939_v27 }
 0x8ce   :  { %9333 = vmatpush3.bf16.msra.mxu0 %v9925_v31  ;;  %9355 = vmatpush3.bf16.msra.mxu1 %v9926_v32  ;;  %v8765_v31 = vcombine.high %v4935_v26, %v4939_v27  ;;  %v4940_v32 = vld [vmem:[#allocation15 + $0x28] sm:$0xff] }
 0x8cf   :  { %9334 = vmatprep.subr.bf16.mxu0 %v9927_v34  ;;  %9356 = vmatprep.subr.bf16.mxu1 %v9928_v35  ;;  %v4943_v34 = vld [vmem:[#allocation15 + $0x40] sm:$0xff] }
 0x8d0   :  { %v4947_v35 = vld [vmem:[#allocation15 + $0x60] sm:$0xff] }
 0x8d2   :  { %9335 = vmatpush3.bf16.msra.mxu0 %v9929_v38  ;;  %9357 = vmatpush3.bf16.msra.mxu1 %v9930_v4  ;;  %v8766_v38 = vcombine.low %v4936_v28, %v4940_v32  ;;  %v8767_v4 = vcombine.high %v4936_v28, %v4940_v32  ;;  %v4991_v28 = vld [vmem:[#allocation15 + $0x1c0] sm:$0xff] }
 0x8d3   :  { %9336 = vmatprep.subr.bf16.mxu0 %v9931_v33  ;;  %9358 = vmatprep.subr.bf16.mxu1 %v9932_v40  ;;  %v8773_v33 = vcombine.high %v4943_v34, %v4947_v35  ;;  %v4944_v40 = vld [vmem:[#allocation15 + $0x48] sm:$0xff] }
 0x8d6   :  { %9337 = vmatpush3.bf16.msra.mxu0 %v9933_v30  ;;  %9359 = vmatpush3.bf16.msra.mxu1 %v9934_v39  ;;  %v4948_v30 = vld [vmem:[#allocation15 + $0x68] sm:$0xff]  ;;  %v4951_v39 = vld [vmem:[#allocation15 + $0x80] sm:$0xff] }
 0x8d7   :  { %9338 = vmatprep.subr.bf16.mxu0 %v9935_v41  ;;  %9360 = vmatprep.subr.bf16.mxu1 %v9936_v42  ;;  %v8775_v41 = vcombine.high %v4944_v40, %v4948_v30  ;;  %v4955_v42 = vld [vmem:[#allocation15 + $0xa0] sm:$0xff] }
 0x8da   :  { %9339 = vmatpush3.bf16.msra.mxu0 %v9937_v19  ;;  %9361 = vmatpush3.bf16.msra.mxu1 %v9938_v43  ;;  %v4952_v19 = vld [vmem:[#allocation15 + $0x88] sm:$0xff] }
 0x8db   :  { %9340 = vmatprep.subr.bf16.mxu0 %v9939_v44  ;;  %9362 = vmatprep.subr.bf16.mxu1 %v9940_v9  ;;  %v4956_v43 = vld [vmem:[#allocation15 + $0xa8] sm:$0xff]  ;;  %v8772_v44 = vcombine.low %v4943_v34, %v4947_v35  ;;  %v8774_v9 = vcombine.low %v4944_v40, %v4948_v30  ;;  %v4941_v40 = vld [vmem:[#allocation15 + $0x30] sm:$0xff]  ;;  %v4938_v30 = vld [vmem:[#allocation15 + $0x18] sm:$0xff] }
 0x8dc   :  { %v4996_v34 = vld [vmem:[#allocation15 + $0x1e8] sm:$0xff] }
 0x8de   :  { %9341 = vmatpush3.bf16.msra.mxu0 %v9941_v45  ;;  %9363 = vmatpush3.bf16.msra.mxu1 %v9942_v46  ;;  %v8781_v45 = vcombine.high %v4951_v39, %v4955_v42  ;;  %v8783_v46 = vcombine.high %v4952_v19, %v4956_v43 }
 0x8df   :  { %9342 = vmatprep.subr.bf16.mxu0 %v9943_v47  ;;  %9364 = vmatprep.subr.bf16.mxu1 %v9944_v48  ;;  %v4959_v47 = vld [vmem:[#allocation15 + $0xc0] sm:$0xff] }
 0x8e0   :  { %v4963_v48 = vld [vmem:[#allocation15 + $0xe0] sm:$0xff] }
 0x8e2   :  { %9343 = vmatpush3.bf16.msra.mxu0 %v9945_v49  ;;  %9365 = vmatpush3.bf16.msra.mxu1 %v9946_v50  ;;  %v4960_v49 = vld [vmem:[#allocation15 + $0xc8] sm:$0xff] }
 0x8e3   :  { %9344 = vmatprep.subr.bf16.mxu0 %v9947_v51  ;;  %9366 = vmatprep.subr.bf16.mxu1 %v9948_v52  ;;  %v4964_v50 = vld [vmem:[#allocation15 + $0xe8] sm:$0xff]  ;;  %v8780_v51 = vcombine.low %v4951_v39, %v4955_v42  ;;  %v8782_v52 = vcombine.low %v4952_v19, %v4956_v43  ;;  %v4942_v42 = vld [vmem:[#allocation15 + $0x38] sm:$0xff] }
 0x8e4   :  { %v8770_v19 = vcombine.low %v4938_v30, %v4942_v42  ;;  %v8771_v43 = vcombine.high %v4938_v30, %v4942_v42  ;;  %v4969_v30 = vld [vmem:[#allocation15 + $0x110] sm:$0xff]  ;;  %v4974_v42 = vld [vmem:[#allocation15 + $0x138] sm:$0xff] }
 0x8e6   :  { %9345 = vmatpush3.bf16.msra.mxu0 %v9949_v53  ;;  %9367 = vmatpush3.bf16.msra.mxu1 %v9950_v56  ;;  %v8789_v53 = vcombine.high %v4959_v47, %v4963_v48  ;;  %v8791_v56 = vcombine.high %v4960_v49, %v4964_v50 }
 0x8e7   :  { %5319 = vmatprep.subr.bf16.mxu0 %v8765_v31  ;;  %5360 = vmatprep.subr.bf16.mxu1 %v8767_v4  ;;  %v4992_v31 = vld [vmem:[#allocation15 + $0x1c8] sm:$0xff] }
 0x8e8   :  { %v8823_v4 = vcombine.high %v4992_v31, %v4996_v34 }
 0x910   :  { %v4085_v3 = vpop.f32.mrb[68].mxu0 }
 0x911   :  { %v9470_v5 = vadd.f32 %v4085_v3, %v3021_v62  ;;  %v4167_v6 = vpop.f32.mrb[48].mxu1  ;;  %v4087_v7 = vpop.f32.mrb[69].mxu0  ;;  %v4967_v62 = vld [vmem:[#allocation15 + $0x100] sm:$0xff]  ;;  %v8788_v3 = vcombine.low %v4959_v47, %v4963_v48 }
 0x912   :  { %v9472_v8 = vadd.f32 %v4167_v6, %v3029_v0  ;;  %v9471_v10 = vadd.f32 %v4087_v7, %v3025_v1  ;;  %v4169_v11 = vpop.f32.mrb[49].mxu1  ;;  %v4089_v14 = vpop.f32.mrb[70].mxu0  ;;  %v4971_v0 = vld [vmem:[#allocation15 + $0x120] sm:$0xff]  ;;  %v4968_v1 = vld [vmem:[#allocation15 + $0x108] sm:$0xff] }
 0x913   :  { %v4178_v12 = vmax.f32 %v9470_v5, 0.0  ;;  %v9473_v63 = vadd.f32 %v4169_v11, %v3033_v2  ;;  %v4171_v13 = vpop.f32.mrb[50].mxu1  ;;  %v4090_v15 = vpop.f32.mrb[71].mxu0  ;;  %v4972_v2 = vld [vmem:[#allocation15 + $0x128] sm:$0xff]  ;;  %v8790_v5 = vcombine.low %v4960_v49, %v4964_v50  ;;  %v8797_v6 = vcombine.high %v4967_v62, %v4971_v0 }
 0x914   :  { %v4180_v16 = vmax.f32 %v9472_v8, 0.0  ;;  %v4179_v17 = vmax.f32 %v9471_v10, 0.0  ;;  %v4172_v20 = vpop.f32.mrb[51].mxu1  ;;  %v8799_v7 = vcombine.high %v4968_v1, %v4972_v2  ;;  %v4975_v8 = vld [vmem:[#allocation15 + $0x140] sm:$0xff]  ;;  %v4976_v11 = vld [vmem:[#allocation15 + $0x148] sm:$0xff] }
 0x915   :  { %v4181_v21 = vmax.f32 %v9473_v63, 0.0  ;;  %v4186_v23 = vpack.c.bf16 %v4178_v12, %v4178_v12  ;;  %v4979_v10 = vld [vmem:[#allocation15 + $0x160] sm:$0xff]  ;;  %v4980_v14 = vld [vmem:[#allocation15 + $0x168] sm:$0xff]  ;;  %v8796_v12 = vcombine.low %v4967_v62, %v4971_v0  ;;  %v8798_v63 = vcombine.low %v4968_v1, %v4972_v2 }
 0x916   :  { %v4187_v22 = vpack.c.bf16 %v4179_v17, %v4179_v17  ;;  %v4188_v60 = vpack.c.bf16 %v4180_v16, %v4180_v16  ;;  %v8805_v13 = vcombine.high %v4975_v8, %v4979_v10  ;;  %v8807_v15 = vcombine.high %v4976_v11, %v4980_v14  ;;  %v4983_v20 = vld [vmem:[#allocation15 + $0x180] sm:$0xff] }
 0x917   :  { %v4189_v25 = vpack.c.bf16 %v4181_v21, %v4181_v21  ;;  %v8804_v16 = vcombine.low %v4975_v8, %v4979_v10  ;;  %v8806_v17 = vcombine.low %v4976_v11, %v4980_v14  ;;  %v4987_v21 = vld [vmem:[#allocation15 + $0x1a0] sm:$0xff] }
 0x918   :  { %4821 = vmatprep.mubr.bf16.mxu0 %v4187_v22  ;;  %v4984_v22 = vld [vmem:[#allocation15 + $0x188] sm:$0xff] }
 0x919   :  { %4861 = vmatprep.mubr.bf16.mxu1 %v4189_v25  ;;  %4822 = vmatmul.mubr.bf16.vlgmr.msra.gmra.mrb[76].mxu0 %v4186_v23  ;;  %v8813_v23 = vcombine.high %v4983_v20, %v4987_v21  ;;  %v4988_v25 = vld [vmem:[#allocation15 + $0x1a8] sm:$0xff] }
 0x91a   :  { %4862 = vmatmul.mubr.bf16.vlgmr.msra.gmra.mrb[56].mxu1 %v4188_v60  ;;  %5351 = vmatprep.mubr.bf16.mxu0 %v10715_v36  ;;  %v8812_v60 = vcombine.low %v4983_v20, %v4987_v21  ;;  %v8814_v26 = vcombine.low %v4984_v22, %v4988_v25  ;;  %v8815_v27 = vcombine.high %v4984_v22, %v4988_v25  ;;  %v4953_v22 = vld [vmem:[#allocation15 + $0x90] sm:$0xff]  ;;  %v4954_v25 = vld [vmem:[#allocation15 + $0x98] sm:$0xff] }
 0x91b   :  { %5392 = vmatprep.mubr.bf16.mxu1 %v10715_v36  ;;  %5320 = vmatpush1.bf16.msra.mxu0 %v8764_v29  ;;  %v4995_v29 = vld [vmem:[#allocation15 + $0x1e0] sm:$0xff] }
 0x91c   :  { %5361 = vmatpush1.bf16.msra.mxu1 %v8766_v38  ;;  %5321 = vmatprep.subr.bf16.mxu0 %v8773_v33  ;;  %v8821_v32 = vcombine.high %v4991_v28, %v4995_v29  ;;  %v8820_v35 = vcombine.low %v4991_v28, %v4995_v29  ;;  %v8822_v38 = vcombine.low %v4992_v31, %v4996_v34  ;;  %v4937_v33 = vld [vmem:[#allocation15 + $0x10] sm:$0xff]  ;;  %v4962_v34 = vld [vmem:[#allocation15 + $0xd8] sm:$0xff] }
 0x91d   :  { %5362 = vmatprep.subr.bf16.mxu1 %v8775_v41  ;;  %v8768_v39 = vcombine.low %v4937_v33, %v4941_v40  ;;  %v8769_v41 = vcombine.high %v4937_v33, %v4941_v40  ;;  %v4961_v31 = vld [vmem:[#allocation15 + $0xd0] sm:$0xff] }
 0x91f   :  { %5322 = vmatpush1.bf16.msra.mxu0 %v8772_v44 }
 0x920   :  { %5363 = vmatpush1.bf16.msra.mxu1 %v8774_v9  ;;  %5323 = vmatprep.subr.bf16.mxu0 %v8781_v45  ;;  %v8699_v45 = vld [vmem:[#allocation12] ss:$0 sm:$0xff] }
 0x921   :  { %5364 = vmatprep.subr.bf16.mxu1 %v8783_v46 }
 0x923   :  { %5324 = vmatpush1.bf16.msra.mxu0 %v8780_v51 }
 0x924   :  { %5365 = vmatpush1.bf16.msra.mxu1 %v8782_v52  ;;  %5325 = vmatprep.subr.bf16.mxu0 %v8789_v53 }
 0x925   :  { %5366 = vmatprep.subr.bf16.mxu1 %v8791_v56 }
 0x927   :  { %5326 = vmatpush1.bf16.msra.mxu0 %v8788_v3 }
 0x928   :  { %5367 = vmatpush1.bf16.msra.mxu1 %v8790_v5  ;;  %5327 = vmatprep.subr.bf16.mxu0 %v8797_v6 }
 0x929   :  { %5368 = vmatprep.subr.bf16.mxu1 %v8799_v7 }
 0x92b   :  { %5328 = vmatpush1.bf16.msra.mxu0 %v8796_v12  ;;  %v4945_v12 = vld [vmem:[#allocation15 + $0x50] sm:$0xff] }
 0x92c   :  { %5369 = vmatpush1.bf16.msra.mxu1 %v8798_v63  ;;  %5329 = vmatprep.subr.bf16.mxu0 %v8805_v13  ;;  %v4949_v63 = vld [vmem:[#allocation15 + $0x70] sm:$0xff]  ;;  %v4946_v13 = vld [vmem:[#allocation15 + $0x58] sm:$0xff] }
 0x92d   :  { %5370 = vmatprep.subr.bf16.mxu1 %v8807_v15  ;;  %v4950_v15 = vld [vmem:[#allocation15 + $0x78] sm:$0xff]  ;;  %v8777_v20 = vcombine.high %v4945_v12, %v4949_v63 }
 0x92e   :  { %v8779_v21 = vcombine.high %v4946_v13, %v4950_v15 }
 0x92f   :  { %5330 = vmatpush1.bf16.msra.mxu0 %v8804_v16 }
 0x930   :  { %5371 = vmatpush1.bf16.msra.mxu1 %v8806_v17  ;;  %5331 = vmatprep.subr.bf16.mxu0 %v8813_v23  ;;  %v4957_v23 = vld [vmem:[#allocation15 + $0xb0] sm:$0xff] }
 0x931   :  { %5372 = vmatprep.subr.bf16.mxu1 %v8815_v27  ;;  %v8778_v27 = vcombine.low %v4946_v13, %v4950_v15  ;;  %v8785_v28 = vcombine.high %v4953_v22, %v4957_v23  ;;  %v4870_v13 = vld [vmem:[#allocation13] sm:$0xff] }
 0x932   :  { %v4874_v15 = vld [vmem:[#allocation13 + $0x20] sm:$0xff] }
 0x933   :  { %5332 = vmatpush1.bf16.msra.mxu0 %v8812_v60  ;;  %v4958_v60 = vld [vmem:[#allocation15 + $0xb8] sm:$0xff] }
 0x934   :  { %5373 = vmatpush1.bf16.msra.mxu1 %v8814_v26  ;;  %5333 = vmatprep.subr.bf16.mxu0 %v8821_v32  ;;  %v8776_v26 = vcombine.low %v4945_v12, %v4949_v63  ;;  %v8787_v29 = vcombine.high %v4954_v25, %v4958_v60  ;;  %v4965_v32 = vld [vmem:[#allocation15 + $0xf0] sm:$0xff] }
 0x935   :  { %5374 = vmatprep.subr.bf16.mxu1 %v8823_v4  ;;  %v8786_v4 = vcombine.low %v4954_v25, %v4958_v60  ;;  %v8793_v33 = vcombine.high %v4961_v31, %v4965_v32  ;;  %v4878_v60 = vld [vmem:[#allocation13 + $0x40] sm:$0xff] }
 0x937   :  { %5334 = vmatpush1.bf16.msra.mxu0 %v8820_v35  ;;  %v4966_v35 = vld [vmem:[#allocation15 + $0xf8] sm:$0xff] }
 0x938   :  { %5375 = vmatpush1.bf16.msra.mxu1 %v8822_v38  ;;  %5401 = vmatprep.subr.bf16.mxu0 %v8769_v41  ;;  %v8784_v38 = vcombine.low %v4953_v22, %v4957_v23  ;;  %v8795_v40 = vcombine.high %v4962_v34, %v4966_v35  ;;  %v4970_v41 = vld [vmem:[#allocation15 + $0x118] sm:$0xff]  ;;  %v8829_v23 = vcombine.high %v4870_v13, %v4874_v15 }
 0x939   :  { %5442 = vmatprep.subr.bf16.mxu1 %v8771_v43  ;;  %v8794_v43 = vcombine.low %v4962_v34, %v4966_v35  ;;  %v4886_v35 = vld [vmem:[#allocation13 + $0x80] sm:$0xff] }
 0x99c   :  { %v9302_v44 = vpop.f32.mrb[72].mxu0  ;;  %v9324_v9 = vpop.f32.mrb[52].mxu1 }
 0x99d   :  { %v9303_v46 = vpop.f32.mrb[73].mxu0  ;;  %v9325_v47 = vpop.f32.mrb[53].mxu1 }
 0x99e   :  { %v9304_v48 = vadd.f32 %v9303_v46, %v9302_v44  ;;  %v9326_v49 = vadd.f32 %v9325_v47, %v9324_v9  ;;  %v9305_v50 = vpop.f32.mrb[74].mxu0  ;;  %v9327_v51 = vpop.f32.mrb[54].mxu1  ;;  %v8803_v9 = vcombine.high %v4970_v41, %v4974_v42  ;;  %v4981_v46 = vld [vmem:[#allocation15 + $0x170] sm:$0xff]  ;;  %v4978_v47 = vld [vmem:[#allocation15 + $0x158] sm:$0xff] }
 0x99f   :  { %v9306_v52 = vpop.f32.mrb[75].mxu0  ;;  %v9328_v53 = vpop.f32.mrb[55].mxu1  ;;  %v8802_v50 = vcombine.low %v4970_v41, %v4974_v42  ;;  %v4894_v42 = vld [vmem:[#allocation13 + $0xc0] sm:$0xff] }
 0x9a0   :  { %v4744_v56 = vadd.f32 %v9304_v48, %v8699_v45  ;;  %v4977_v45 = vld [vmem:[#allocation15 + $0x150] sm:$0xff]  ;;  %v4982_v48 = vld [vmem:[#allocation15 + $0x178] sm:$0xff] }
 0x9a1   :  { %v8809_v51 = vcombine.high %v4977_v45, %v4981_v46  ;;  %v8811_v52 = vcombine.high %v4978_v47, %v4982_v48  ;;  %v4985_v53 = vld [vmem:[#allocation15 + $0x190] sm:$0xff] }
 0x9a2   :  { %v4784_v62 = vadd.f32 %v9326_v49, %v4744_v56  ;;  %v4989_v56 = vld [vmem:[#allocation15 + $0x1b0] sm:$0xff] }
 0x9ec   :  { %v9346_v0 = vpop.f32.mrb[76].mxu0 }
 0x9ed   :  { %v9368_v1 = vpop.f32.mrb[56].mxu1  ;;  %v9347_v2 = vpop.f32.mrb[77].mxu0 }
 0x9ee   :  { %v9348_v3 = vadd.f32 %v9347_v2, %v9346_v0  ;;  %v9369_v5 = vpop.f32.mrb[57].mxu1  ;;  %v9349_v6 = vpop.f32.mrb[78].mxu0  ;;  %v4990_v0 = vld [vmem:[#allocation15 + $0x1b8] sm:$0xff]  ;;  %v8810_v2 = vcombine.low %v4978_v47, %v4982_v48  ;;  %v4902_v47 = vld [vmem:[#allocation13 + $0x100] sm:$0xff] }
 0x9ef   :  { %v9370_v7 = vadd.f32 %v9369_v5, %v9368_v1  ;;  %v9371_v8 = vpop.f32.mrb[58].mxu1  ;;  %v9350_v10 = vpop.f32.mrb[79].mxu0  ;;  %v8808_v1 = vcombine.low %v4977_v45, %v4981_v46  ;;  %v4993_v6 = vld [vmem:[#allocation15 + $0x1d0] sm:$0xff]  ;;  %v4906_v48 = vld [vmem:[#allocation13 + $0x120] sm:$0xff] }
 0x9f0   :  { %v4824_v11 = vadd.f32 %v9348_v3, %v4784_v62  ;;  %v9372_v14 = vpop.f32.mrb[59].mxu1  ;;  %v4986_v62 = vld [vmem:[#allocation15 + $0x198] sm:$0xff]  ;;  %v8817_v3 = vcombine.high %v4985_v53, %v4989_v56 }
 0x9f1   :  { %v8819_v5 = vcombine.high %v4986_v62, %v4990_v0  ;;  %v4994_v8 = vld [vmem:[#allocation15 + $0x1d8] sm:$0xff]  ;;  %v8818_v14 = vcombine.low %v4986_v62, %v4990_v0  ;;  %v4910_v62 = vld [vmem:[#allocation13 + $0x140] sm:$0xff] }
 0x9f2   :  { %v4864_v16 = vadd.f32 %v9370_v7, %v4824_v11  ;;  %v4997_v7 = vld [vmem:[#allocation15 + $0x1f0] sm:$0xff]  ;;  %v4998_v10 = vld [vmem:[#allocation15 + $0x1f8] sm:$0xff]  ;;  %v8816_v11 = vcombine.low %v4985_v53, %v4989_v56  ;;  %v8861_v53 = vcombine.high %v4902_v47, %v4906_v48  ;;  %v4914_v0 = vld [vmem:[#allocation13 + $0x160] sm:$0xff] }
 0x9f3   :  { %v8825_v12 = vcombine.high %v4993_v6, %v4997_v7  ;;  %v8827_v63 = vcombine.high %v4994_v8, %v4998_v10  ;;  %v8826_v22 = vcombine.low %v4994_v8, %v4998_v10  ;;  %v4918_v8 = vld [vmem:[#allocation13 + $0x180] sm:$0xff] }
 0x9f4   :  { %v12258_v17 = vpack.c.bf16 %v4864_v16, %v4864_v16  ;;  %v4871_v16 = vld [vmem:[#allocation13 + $0x8] sm:$0xff]  ;;  %v4922_v10 = vld [vmem:[#allocation13 + $0x1a0] sm:$0xff] }
 0x9f6   :  { %5352 = vmatmul.mubr.bf16.vlgmr.msra.gmra.mrb[80].mxu0 %v12258_v17  ;;  %5393 = vmatmul.mubr.bf16.vlgmr.msra.gmra.mrb[60].mxu1 %v12258_v17 }
 0x9f7   :  { %5402 = vmatpush1.bf16.msra.mxu0 %v8768_v39  ;;  %5443 = vmatpush1.bf16.msra.mxu1 %v8770_v19  ;;  %v4973_v39 = vld [vmem:[#allocation15 + $0x130] sm:$0xff]  ;;  %v8792_v19 = vcombine.low %v4961_v31, %v4965_v32 }
 0x9f8   :  { %5403 = vmatprep.subr.bf16.mxu0 %v8777_v20  ;;  %5444 = vmatprep.subr.bf16.mxu1 %v8779_v21  ;;  %v8801_v44 = vcombine.high %v4969_v30, %v4973_v39  ;;  %v8800_v49 = vcombine.low %v4969_v30, %v4973_v39  ;;  %v4875_v20 = vld [vmem:[#allocation13 + $0x28] sm:$0xff]  ;;  %v8824_v21 = vcombine.low %v4993_v6, %v4997_v7 }
 0x9f9   :  { %5433 = vmatprep.mubr.bf16.mxu0 %v10715_v36  ;;  %5474 = vmatprep.mubr.bf16.mxu1 %v10715_v36  ;;  %v8831_v25 = vcombine.high %v4871_v16, %v4875_v20  ;;  %v8830_v31 = vcombine.low %v4871_v16, %v4875_v20  ;;  %v8869_v6 = vcombine.high %v4910_v62, %v4914_v0  ;;  %v4926_v16 = vld [vmem:[#allocation13 + $0x1c0] sm:$0xff] }
 0x9fa   :  { %v4930_v20 = vld [vmem:[#allocation13 + $0x1e0] sm:$0xff] }
 0x9fb   :  { %5404 = vmatpush1.bf16.msra.mxu0 %v8776_v26  ;;  %5445 = vmatpush1.bf16.msra.mxu1 %v8778_v27  ;;  %v4882_v26 = vld [vmem:[#allocation13 + $0x60] sm:$0xff]  ;;  %v4879_v27 = vld [vmem:[#allocation13 + $0x48] sm:$0xff] }
 0x9fc   :  { %5405 = vmatprep.subr.bf16.mxu0 %v8785_v28  ;;  %5446 = vmatprep.subr.bf16.mxu1 %v8787_v29  ;;  %v4883_v28 = vld [vmem:[#allocation13 + $0x68] sm:$0xff]  ;;  %v8828_v29 = vcombine.low %v4870_v13, %v4874_v15  ;;  %v8837_v32 = vcombine.high %v4878_v60, %v4882_v26  ;;  %v8877_v13 = vcombine.high %v4918_v8, %v4922_v10 }
 0x9fd   :  { %v8839_v34 = vcombine.high %v4879_v27, %v4883_v28  ;;  %v8838_v30 = vcombine.low %v4879_v27, %v4883_v28  ;;  %v4872_v27 = vld [vmem:[#allocation13 + $0x10] sm:$0xff] }
 0x9fe   :  { %v4876_v28 = vld [vmem:[#allocation13 + $0x30] sm:$0xff] }
 0x9ff   :  { %5406 = vmatpush1.bf16.msra.mxu0 %v8784_v38  ;;  %5447 = vmatpush1.bf16.msra.mxu1 %v8786_v4  ;;  %v4890_v38 = vld [vmem:[#allocation13 + $0xa0] sm:$0xff]  ;;  %v4887_v4 = vld [vmem:[#allocation13 + $0x88] sm:$0xff] }
 0xa00   :  { %5407 = vmatprep.subr.bf16.mxu0 %v8793_v33  ;;  %5448 = vmatprep.subr.bf16.mxu1 %v8795_v40  ;;  %v4891_v33 = vld [vmem:[#allocation13 + $0xa8] sm:$0xff]  ;;  %v8836_v40 = vcombine.low %v4878_v60, %v4882_v26  ;;  %v8845_v39 = vcombine.high %v4886_v35, %v4890_v38  ;;  %v8885_v60 = vcombine.high %v4926_v16, %v4930_v20 }
 0xa01   :  { %v8847_v41 = vcombine.high %v4887_v4, %v4891_v33 }
 0xa03   :  { %5408 = vmatpush1.bf16.msra.mxu0 %v8792_v19  ;;  %5449 = vmatpush1.bf16.msra.mxu1 %v8794_v43  ;;  %v4898_v19 = vld [vmem:[#allocation13 + $0xe0] sm:$0xff]  ;;  %v4895_v43 = vld [vmem:[#allocation13 + $0xc8] sm:$0xff] }
 0xa04   :  { %5409 = vmatprep.subr.bf16.mxu0 %v8801_v44  ;;  %5450 = vmatprep.subr.bf16.mxu1 %v8803_v9  ;;  %v4899_v44 = vld [vmem:[#allocation13 + $0xe8] sm:$0xff]  ;;  %v8844_v9 = vcombine.low %v4886_v35, %v4890_v38  ;;  %v8853_v45 = vcombine.high %v4894_v42, %v4898_v19  ;;  %v8833_v35 = vcombine.high %v4872_v27, %v4876_v28 }
 0xa05   :  { %v8855_v46 = vcombine.high %v4895_v43, %v4899_v44 }
 0xa07   :  { %5410 = vmatpush1.bf16.msra.mxu0 %v8800_v49  ;;  %5451 = vmatpush1.bf16.msra.mxu1 %v8802_v50  ;;  %v4903_v49 = vld [vmem:[#allocation13 + $0x108] sm:$0xff] }
 0xa08   :  { %5411 = vmatprep.subr.bf16.mxu0 %v8809_v51  ;;  %5452 = vmatprep.subr.bf16.mxu1 %v8811_v52  ;;  %v4907_v50 = vld [vmem:[#allocation13 + $0x128] sm:$0xff]  ;;  %v8852_v51 = vcombine.low %v4894_v42, %v4898_v19  ;;  %v8854_v52 = vcombine.low %v4895_v43, %v4899_v44  ;;  %v4888_v44 = vld [vmem:[#allocation13 + $0x90] sm:$0xff] }
 0xa09   :  { %v8863_v56 = vcombine.high %v4903_v49, %v4907_v50 }
 0xa0b   :  { %5412 = vmatpush1.bf16.msra.mxu0 %v8808_v1  ;;  %5453 = vmatpush1.bf16.msra.mxu1 %v8810_v2  ;;  %v4911_v1 = vld [vmem:[#allocation13 + $0x148] sm:$0xff] }
 0xa0c   :  { %5413 = vmatprep.subr.bf16.mxu0 %v8817_v3  ;;  %5454 = vmatprep.subr.bf16.mxu1 %v8819_v5  ;;  %v4915_v2 = vld [vmem:[#allocation13 + $0x168] sm:$0xff]  ;;  %v8860_v3 = vcombine.low %v4902_v47, %v4906_v48  ;;  %v8862_v5 = vcombine.low %v4903_v49, %v4907_v50  ;;  %v4896_v50 = vld [vmem:[#allocation13 + $0xd0] sm:$0xff] }
 0xa0d   :  { %v8871_v7 = vcombine.high %v4911_v1, %v4915_v2 }
 0xa0f   :  { %5414 = vmatpush1.bf16.msra.mxu0 %v8816_v11  ;;  %5455 = vmatpush1.bf16.msra.mxu1 %v8818_v14  ;;  %v4919_v11 = vld [vmem:[#allocation13 + $0x188] sm:$0xff] }
 0xa10   :  { %5415 = vmatprep.subr.bf16.mxu0 %v8825_v12  ;;  %5456 = vmatprep.subr.bf16.mxu1 %v8827_v63  ;;  %v4923_v14 = vld [vmem:[#allocation13 + $0x1a8] sm:$0xff]  ;;  %v8868_v12 = vcombine.low %v4910_v62, %v4914_v0  ;;  %v8870_v63 = vcombine.low %v4911_v1, %v4915_v2  ;;  %v4904_v2 = vld [vmem:[#allocation13 + $0x110] sm:$0xff] }
 0xa11   :  { %v8879_v15 = vcombine.high %v4919_v11, %v4923_v14 }
 0xa13   :  { %5416 = vmatpush1.bf16.msra.mxu0 %v8824_v21  ;;  %5457 = vmatpush1.bf16.msra.mxu1 %v8826_v22  ;;  %v4927_v21 = vld [vmem:[#allocation13 + $0x1c8] sm:$0xff] }
 0xa14   :  { %5803 = vmatprep.subr.bf16.mxu0 %v8829_v23  ;;  %5844 = vmatprep.subr.bf16.mxu1 %v8831_v25  ;;  %v4931_v22 = vld [vmem:[#allocation13 + $0x1e8] sm:$0xff]  ;;  %v8876_v23 = vcombine.low %v4918_v8, %v4922_v10  ;;  %v8878_v25 = vcombine.low %v4919_v11, %v4923_v14  ;;  %v4912_v11 = vld [vmem:[#allocation13 + $0x150] sm:$0xff] }
 0xa15   :  { %v8887_v26 = vcombine.high %v4927_v21, %v4931_v22  ;;  %v4916_v14 = vld [vmem:[#allocation13 + $0x170] sm:$0xff] }
 0xa16   :  { %5434 = vmatmul.mubr.bf16.vlgmr.msra.gmra.mrb[84].mxu0 %v12258_v17  ;;  %5475 = vmatmul.mubr.bf16.vlgmr.msra.gmra.mrb[64].mxu1 %v12258_v17  ;;  %v8846_v17 = vcombine.low %v4887_v4, %v4891_v33  ;;  %v4880_v4 = vld [vmem:[#allocation13 + $0x50] sm:$0xff] }
 0xa17   :  { %5804 = vmatpush1.bf16.msra.mxu0 %v8828_v29  ;;  %5845 = vmatpush1.bf16.msra.mxu1 %v8830_v31  ;;  %v4873_v29 = vld [vmem:[#allocation13 + $0x18] sm:$0xff]  ;;  %v4884_v33 = vld [vmem:[#allocation13 + $0x70] sm:$0xff] }
 0xa18   :  { %5805 = vmatprep.subr.bf16.mxu0 %v8837_v32  ;;  %5846 = vmatprep.subr.bf16.mxu1 %v8839_v34  ;;  %v4877_v31 = vld [vmem:[#allocation13 + $0x38] sm:$0xff]  ;;  %v8884_v32 = vcombine.low %v4926_v16, %v4930_v20  ;;  %v8886_v34 = vcombine.low %v4927_v21, %v4931_v22  ;;  %v8841_v19 = vcombine.high %v4880_v4, %v4884_v33  ;;  %v4920_v21 = vld [vmem:[#allocation13 + $0x190] sm:$0xff] }
 0xa19   :  { %5835 = vmatprep.mubr.bf16.mxu0 %v10715_v36  ;;  %5876 = vmatprep.mubr.bf16.mxu1 %v10715_v36  ;;  %v8835_v38 = vcombine.high %v4873_v29, %v4877_v31  ;;  %v8834_v42 = vcombine.low %v4873_v29, %v4877_v31  ;;  %v8873_v16 = vcombine.high %v4912_v11, %v4916_v14  ;;  %v4924_v22 = vld [vmem:[#allocation13 + $0x1b0] sm:$0xff] }
 0xa1a   :  { %v4928_v29 = vld [vmem:[#allocation13 + $0x1d0] sm:$0xff] }
 0xa1b   :  { %5806 = vmatpush1.bf16.msra.mxu0 %v8836_v40  ;;  %5847 = vmatpush1.bf16.msra.mxu1 %v8838_v30  ;;  %v4881_v40 = vld [vmem:[#allocation13 + $0x58] sm:$0xff]  ;;  %v4932_v31 = vld [vmem:[#allocation13 + $0x1f0] sm:$0xff] }
 0xa1c   :  { %5807 = vmatprep.subr.bf16.mxu0 %v8845_v39  ;;  %5848 = vmatprep.subr.bf16.mxu1 %v8847_v41  ;;  %v4885_v30 = vld [vmem:[#allocation13 + $0x78] sm:$0xff]  ;;  %v12271_v39 = vld [vmem:[%s12373_s4] sm:$0xf]  ;;  %v8832_v41 = vcombine.low %v4872_v27, %v4876_v28  ;;  %v8881_v27 = vcombine.high %v4920_v21, %v4924_v22 }
 0xa1d   :  { %v8843_v43 = vcombine.high %v4881_v40, %v4885_v30  ;;  %v8842_v47 = vcombine.low %v4881_v40, %v4885_v30  ;;  %v8888_v40 = vcombine.low %v4928_v29, %v4932_v31 }
 0xa1f   :  { %5808 = vmatpush1.bf16.msra.mxu0 %v8844_v9  ;;  %5849 = vmatpush1.bf16.msra.mxu1 %v8846_v17  ;;  %v4892_v9 = vld [vmem:[#allocation13 + $0xb0] sm:$0xff]  ;;  %v4889_v17 = vld [vmem:[#allocation13 + $0x98] sm:$0xff] }
 0xa20   :  { %5809 = vmatprep.subr.bf16.mxu0 %v8853_v45  ;;  %5850 = vmatprep.subr.bf16.mxu1 %v8855_v46  ;;  %v4893_v45 = vld [vmem:[#allocation13 + $0xb8] sm:$0xff]  ;;  %v8840_v46 = vcombine.low %v4880_v4, %v4884_v33  ;;  %v8849_v48 = vcombine.high %v4888_v44, %v4892_v9  ;;  %v8889_v4 = vcombine.high %v4928_v29, %v4932_v31  ;;  %v10022_v29 = vld [vmem:[#allocation18 + $0x16c] ss:$16 sps:$4 sm:$0xff]  }
 0xa21   :  { %v8851_v49 = vcombine.high %v4889_v17, %v4893_v45  ;;  %v8850_v62 = vcombine.low %v4889_v17, %v4893_v45  ;;  %v9957_v17 = vld [vmem:[#allocation18 + $0x20] ss:$16 sps:$4 sm:$0xff]   ;;  %v9960_v45 = vld [vmem:[#allocation18 + $0x28] ss:$16 sps:$4 sm:$0xff]  }
 0xa22   :  { %v10017_v31 = vld [vmem:[#allocation18 + $0x160] ss:$16 sps:$4 sm:$0xff]  }
 0xa23   :  { %5810 = vmatpush1.bf16.msra.mxu0 %v8852_v51  ;;  %5851 = vmatpush1.bf16.msra.mxu1 %v8854_v52  ;;  %v4900_v51 = vld [vmem:[#allocation13 + $0xf0] sm:$0xff]  ;;  %v4897_v52 = vld [vmem:[#allocation13 + $0xd8] sm:$0xff] }
 0xa24   :  { %5811 = vmatprep.subr.bf16.mxu0 %v8861_v53  ;;  %5852 = vmatprep.subr.bf16.mxu1 %v8863_v56  ;;  %v4901_v53 = vld [vmem:[#allocation13 + $0xf8] sm:$0xff]  ;;  %v8848_v56 = vcombine.low %v4888_v44, %v4892_v9  ;;  %v8857_v0 = vcombine.high %v4896_v50, %v4900_v51  ;;  %v9962_v9 = vld [vmem:[#allocation18 + $0x2c] ss:$16 sps:$4 sm:$0xff]  }
 0xa25   :  { %v8859_v1 = vcombine.high %v4897_v52, %v4901_v53  ;;  %v8858_v8 = vcombine.low %v4897_v52, %v4901_v53  ;;  %v9959_v44 = vld [vmem:[#allocation18 + $0x24] ss:$16 sps:$4 sm:$0xff]   ;;  %v9969_v52 = vld [vmem:[#allocation18 + $0x60] ss:$16 sps:$4 sm:$0xff]  }
 0xa26   :  { %v9977_v53 = vld [vmem:[#allocation18 + $0x84] ss:$16 sps:$4 sm:$0xff]  }
 0xa27   :  { %5812 = vmatpush1.bf16.msra.mxu0 %v8860_v3  ;;  %5853 = vmatpush1.bf16.msra.mxu1 %v8862_v5  ;;  %v4908_v3 = vld [vmem:[#allocation13 + $0x130] sm:$0xff]  ;;  %v4905_v5 = vld [vmem:[#allocation13 + $0x118] sm:$0xff] }
 0xa28   :  { %5813 = vmatprep.subr.bf16.mxu0 %v8869_v6  ;;  %5854 = vmatprep.subr.bf16.mxu1 %v8871_v7  ;;  %v4909_v6 = vld [vmem:[#allocation13 + $0x138] sm:$0xff]  ;;  %v8856_v7 = vcombine.low %v4896_v50, %v4900_v51  ;;  %v8865_v10 = vcombine.high %v4904_v2, %v4908_v3  ;;  %v9974_v51 = vld [vmem:[#allocation18 + $0x6c] ss:$16 sps:$4 sm:$0xff]  }
 0xa29   :  { %v9971_v50 = vld [vmem:[#allocation18 + $0x64] ss:$16 sps:$4 sm:$0xff]  }
 0xa2b   :  { %5814 = vmatpush1.bf16.msra.mxu0 %v8868_v12  ;;  %5855 = vmatpush1.bf16.msra.mxu1 %v8870_v63  ;;  %v4913_v12 = vld [vmem:[#allocation13 + $0x158] sm:$0xff] }
 0xa2c   :  { %5815 = vmatprep.subr.bf16.mxu0 %v8877_v13  ;;  %5856 = vmatprep.subr.bf16.mxu1 %v8879_v15  ;;  %v4917_v63 = vld [vmem:[#allocation13 + $0x178] sm:$0xff]  ;;  %v8864_v13 = vcombine.low %v4904_v2, %v4908_v3  ;;  %v8866_v15 = vcombine.low %v4905_v5, %v4909_v6  ;;  %v9986_v2 = vld [vmem:[#allocation18 + $0xac] ss:$16 sps:$4 sm:$0xff]  }
 0xa2d   :  { %v8875_v20 = vcombine.high %v4913_v12, %v4917_v63  ;;  %v9981_v3 = vld [vmem:[#allocation18 + $0xa0] ss:$16 sps:$4 sm:$0xff]  }
 0xa2f   :  { %5816 = vmatpush1.bf16.msra.mxu0 %v8876_v23  ;;  %5857 = vmatpush1.bf16.msra.mxu1 %v8878_v25  ;;  %v4921_v23 = vld [vmem:[#allocation13 + $0x198] sm:$0xff] }
 0xa30   :  { %5817 = vmatprep.subr.bf16.mxu0 %v8885_v60  ;;  %5858 = vmatprep.subr.bf16.mxu1 %v8887_v26  ;;  %v4925_v25 = vld [vmem:[#allocation13 + $0x1b8] sm:$0xff]  ;;  %v8872_v60 = vcombine.low %v4912_v11, %v4916_v14  ;;  %v8874_v26 = vcombine.low %v4913_v12, %v4917_v63  ;;  %v9998_v11 = vld [vmem:[#allocation18 + $0xec] ss:$16 sps:$4 sm:$0xff]   ;;  %v9996_v12 = vld [vmem:[#allocation18 + $0xe8] ss:$16 sps:$4 sm:$0xff]  }
 0xa31   :  { %v8883_v28 = vcombine.high %v4921_v23, %v4925_v25  ;;  %v9993_v14 = vld [vmem:[#allocation18 + $0xe0] ss:$16 sps:$4 sm:$0xff]   ;;  %v10001_v63 = vld [vmem:[#allocation18 + $0x104] ss:$16 sps:$4 sm:$0xff]  }
 0xa33   :  { %5818 = vmatpush1.bf16.msra.mxu0 %v8884_v32  ;;  %5859 = vmatpush1.bf16.msra.mxu1 %v8886_v34  ;;  %v4929_v32 = vld [vmem:[#allocation13 + $0x1d8] sm:$0xff] }
 0xa34   :  { %5885 = vmatprep.subr.bf16.mxu0 %v8833_v35  ;;  %5926 = vmatprep.subr.bf16.mxu1 %v8835_v38  ;;  %v4933_v34 = vld [vmem:[#allocation13 + $0x1f8] sm:$0xff]  ;;  %v8880_v35 = vcombine.low %v4920_v21, %v4924_v22  ;;  %v8882_v38 = vcombine.low %v4921_v23, %v4925_v25  ;;  %v10010_v21 = vld [vmem:[#allocation18 + $0x12c] ss:$16 sps:$4 sm:$0xff]   ;;  %v10008_v23 = vld [vmem:[#allocation18 + $0x128] ss:$16 sps:$4 sm:$0xff]  }
 0xa35   :  { %v8891_v33 = vcombine.high %v4929_v32, %v4933_v34  ;;  %v8890_v30 = vcombine.low %v4929_v32, %v4933_v34  ;;  %v10005_v22 = vld [vmem:[#allocation18 + $0x120] ss:$16 sps:$4 sm:$0xff]   ;;  %v10013_v25 = vld [vmem:[#allocation18 + $0x144] ss:$16 sps:$4 sm:$0xff]   ;;  %v10020_v32 = vld [vmem:[#allocation18 + $0x168] ss:$16 sps:$4 sm:$0xff]  }
 0xa36   :  { %5836 = vmatmul.mubr.bf16.vlgmr.msra.gmra.mrb[88].mxu0 %v12271_v39  ;;  %5877 = vmatmul.mubr.bf16.vlgmr.msra.gmra.mrb[68].mxu1 %v12271_v39  ;;  %v10025_v34 = vld [vmem:[#allocation18 + $0x184] ss:$16 sps:$4 sm:$0xff]  }
 0xa37   :  { %5886 = vmatpush1.bf16.msra.mxu0 %v8832_v41  ;;  %5927 = vmatpush1.bf16.msra.mxu1 %v8834_v42  ;;  %v9953_v41 = vld [vmem:[#allocation18 + $0x4] ss:$16 sps:$4 sm:$0xff]   ;;  %v9956_v42 = vld [vmem:[#allocation18 + $0xc] ss:$16 sps:$4 sm:$0xff]  }
 0xa38   :  { %5887 = vmatprep.subr.bf16.mxu0 %v8841_v19  ;;  %5928 = vmatprep.subr.bf16.mxu1 %v8843_v43  ;;  %v9951_v19 = vld [vmem:[#allocation18] ss:$16 sps:$4 sm:$0xff]   ;;  %v9954_v43 = vld [vmem:[#allocation18 + $0x8] ss:$16 sps:$4 sm:$0xff]  }
 0xa39   :  { %5917 = vmatprep.mubr.bf16.mxu0 %v10715_v36  ;;  %5958 = vmatprep.mubr.bf16.mxu1 %v10715_v36  ;;  %v8867_v36 = vcombine.high %v4905_v5, %v4909_v6  ;;  %v9984_v5 = vld [vmem:[#allocation18 + $0xa8] ss:$16 sps:$4 sm:$0xff]   ;;  %v9989_v6 = vld [vmem:[#allocation18 + $0xc4] ss:$16 sps:$4 sm:$0xff]  }
 0xa3b   :  { %5888 = vmatpush1.bf16.msra.mxu0 %v8840_v46  ;;  %5929 = vmatpush1.bf16.msra.mxu1 %v8842_v47  ;;  %v9965_v46 = vld [vmem:[#allocation18 + $0x44] ss:$16 sps:$4 sm:$0xff]   ;;  %v9968_v47 = vld [vmem:[#allocation18 + $0x4c] ss:$16 sps:$4 sm:$0xff]  }
 0xa3c   :  { %5889 = vmatprep.subr.bf16.mxu0 %v8849_v48  ;;  %5930 = vmatprep.subr.bf16.mxu1 %v8851_v49  ;;  %v9963_v48 = vld [vmem:[#allocation18 + $0x40] ss:$16 sps:$4 sm:$0xff]   ;;  %v9966_v49 = vld [vmem:[#allocation18 + $0x48] ss:$16 sps:$4 sm:$0xff]  }
 0xa3f   :  { %5890 = vmatpush1.bf16.msra.mxu0 %v8848_v56  ;;  %5931 = vmatpush1.bf16.msra.mxu1 %v8850_v62  ;;  %v9980_v56 = vld [vmem:[#allocation18 + $0x8c] ss:$16 sps:$4 sm:$0xff]   ;;  %v9975_v62 = vld [vmem:[#allocation18 + $0x80] ss:$16 sps:$4 sm:$0xff]  }
 0xa40   :  { %5891 = vmatprep.subr.bf16.mxu0 %v8857_v0  ;;  %5932 = vmatprep.subr.bf16.mxu1 %v8859_v1  ;;  %v9978_v0 = vld [vmem:[#allocation18 + $0x88] ss:$16 sps:$4 sm:$0xff]   ;;  %v9983_v1 = vld [vmem:[#allocation18 + $0xa4] ss:$16 sps:$4 sm:$0xff]  }
 0xa43   :  { %5892 = vmatpush1.bf16.msra.mxu0 %v8856_v7  ;;  %5933 = vmatpush1.bf16.msra.mxu1 %v8858_v8  ;;  %v9992_v7 = vld [vmem:[#allocation18 + $0xcc] ss:$16 sps:$4 sm:$0xff]   ;;  %v9987_v8 = vld [vmem:[#allocation18 + $0xc0] ss:$16 sps:$4 sm:$0xff]  }
 0xa44   :  { %5893 = vmatprep.subr.bf16.mxu0 %v8865_v10  ;;  %5934 = vmatprep.subr.bf16.mxu1 %v8867_v36  ;;  %v9990_v10 = vld [vmem:[#allocation18 + $0xc8] ss:$16 sps:$4 sm:$0xff]   ;;  %v9995_v36 = vld [vmem:[#allocation18 + $0xe4] ss:$16 sps:$4 sm:$0xff]  }
 0xa47   :  { %5894 = vmatpush1.bf16.msra.mxu0 %v8864_v13  ;;  %5935 = vmatpush1.bf16.msra.mxu1 %v8866_v15  ;;  %v10004_v13 = vld [vmem:[#allocation18 + $0x10c] ss:$16 sps:$4 sm:$0xff]   ;;  %v9999_v15 = vld [vmem:[#allocation18 + $0x100] ss:$16 sps:$4 sm:$0xff]  }
 0xa48   :  { %5895 = vmatprep.subr.bf16.mxu0 %v8873_v16  ;;  %5936 = vmatprep.subr.bf16.mxu1 %v8875_v20  ;;  %v10002_v16 = vld [vmem:[#allocation18 + $0x108] ss:$16 sps:$4 sm:$0xff]   ;;  %v10007_v20 = vld [vmem:[#allocation18 + $0x124] ss:$16 sps:$4 sm:$0xff]  }
 0xa4b   :  { %5896 = vmatpush1.bf16.msra.mxu0 %v8872_v60  ;;  %5937 = vmatpush1.bf16.msra.mxu1 %v8874_v26  ;;  %v10016_v60 = vld [vmem:[#allocation18 + $0x14c] ss:$16 sps:$4 sm:$0xff]   ;;  %v10011_v26 = vld [vmem:[#allocation18 + $0x140] ss:$16 sps:$4 sm:$0xff]  }
 0xa4c   :  { %5897 = vmatprep.subr.bf16.mxu0 %v8881_v27  ;;  %5938 = vmatprep.subr.bf16.mxu1 %v8883_v28  ;;  %v10014_v27 = vld [vmem:[#allocation18 + $0x148] ss:$16 sps:$4 sm:$0xff]   ;;  %v10019_v28 = vld [vmem:[#allocation18 + $0x164] ss:$16 sps:$4 sm:$0xff]  }
 0xa4f   :  { %5898 = vmatpush1.bf16.msra.mxu0 %v8880_v35  ;;  %5939 = vmatpush1.bf16.msra.mxu1 %v8882_v38  ;;  %v10028_v35 = vld [vmem:[#allocation18 + $0x18c] ss:$16 sps:$4 sm:$0xff]   ;;  %v10023_v38 = vld [vmem:[#allocation18 + $0x180] ss:$16 sps:$4 sm:$0xff]  }
 0xa50   :  { %5899 = vmatprep.subr.bf16.mxu0 %v8889_v4  ;;  %5940 = vmatprep.subr.bf16.mxu1 %v8891_v33  ;;  %v10026_v4 = vld [vmem:[#allocation18 + $0x188] ss:$16 sps:$4 sm:$0xff]   ;;  %v10031_v33 = vld [vmem:[#allocation18 + $0x1a4] ss:$16 sps:$4 sm:$0xff]  }
 0xa53   :  { %5900 = vmatpush1.bf16.msra.mxu0 %v8888_v40  ;;  %5941 = vmatpush1.bf16.msra.mxu1 %v8890_v30  ;;  %v10034_v40 = vld [vmem:[#allocation18 + $0x1ac] ss:$16 sps:$4 sm:$0xff]   ;;  %v10029_v30 = vld [vmem:[#allocation18 + $0x1a0] ss:$16 sps:$4 sm:$0xff]  }
 0xa54   :  { %7591 = vmatprep.subr.bf16.mxu0 %v9953_v41  ;;  %7755 = vmatprep.subr.bf16.mxu1 %v9956_v42  ;;  %v10032_v41 = vld [vmem:[#allocation18 + $0x1a8] ss:$16 sps:$4 sm:$0xff]   ;;  %v10037_v42 = vld [vmem:[#allocation18 + $0x1c4] ss:$16 sps:$4 sm:$0xff]  }
 0xa56   :  { %5918 = vmatmul.mubr.bf16.vlgmr.msra.gmra.mrb[92].mxu0 %v12271_v39  ;;  %5959 = vmatmul.mubr.bf16.vlgmr.msra.gmra.mrb[72].mxu1 %v12271_v39  ;;  %v9972_v39 = vld [vmem:[#allocation18 + $0x68] ss:$16 sps:$4 sm:$0xff]  }
 0xa57   :  { %7592 = vmatpush1.bf16.msra.mxu0 %v9951_v19  ;;  %7756 = vmatpush1.bf16.msra.mxu1 %v9954_v43  ;;  %v10040_v19 = vld [vmem:[#allocation18 + $0x1cc] ss:$16 sps:$4 sm:$0xff]   ;;  %v10035_v43 = vld [vmem:[#allocation18 + $0x1c0] ss:$16 sps:$4 sm:$0xff]  }
 0xa58   :  { %7593 = vmatprep.subr.bf16.mxu0 %v9959_v44  ;;  %7757 = vmatprep.subr.bf16.mxu1 %v9962_v9  ;;  %v10038_v44 = vld [vmem:[#allocation18 + $0x1c8] ss:$16 sps:$4 sm:$0xff]   ;;  %v10043_v9 = vld [vmem:[#allocation18 + $0x1e4] ss:$16 sps:$4 sm:$0xff]  }
 0xa5b   :  { %7594 = vmatpush1.bf16.msra.mxu0 %v9957_v17  ;;  %7758 = vmatpush1.bf16.msra.mxu1 %v9960_v45  ;;  %v10046_v17 = vld [vmem:[#allocation18 + $0x1ec] ss:$16 sps:$4 sm:$0xff]   ;;  %v10041_v45 = vld [vmem:[#allocation18 + $0x1e0] ss:$16 sps:$4 sm:$0xff]  }
 0xa5c   :  { %7595 = vmatprep.subr.bf16.mxu0 %v9965_v46  ;;  %7759 = vmatprep.subr.bf16.mxu1 %v9968_v47  ;;  %v10044_v46 = vld [vmem:[#allocation18 + $0x1e8] ss:$16 sps:$4 sm:$0xff]   ;;  %v10049_v47 = vld [vmem:[#allocation18 + $0x204] ss:$16 sps:$4 sm:$0xff]  }
 0xa5f   :  { %7596 = vmatpush1.bf16.msra.mxu0 %v9963_v48  ;;  %7760 = vmatpush1.bf16.msra.mxu1 %v9966_v49  ;;  %v10052_v48 = vld [vmem:[#allocation18 + $0x20c] ss:$16 sps:$4 sm:$0xff]  }
 0xa60   :  { %7597 = vmatprep.subr.bf16.mxu0 %v9971_v50  ;;  %7761 = vmatprep.subr.bf16.mxu1 %v9974_v51 }
 0xa63   :  { %7598 = vmatpush1.bf16.msra.mxu0 %v9969_v52  ;;  %7762 = vmatpush1.bf16.msra.mxu1 %v9972_v39 }
 0xa64   :  { %7599 = vmatprep.subr.bf16.mxu0 %v9977_v53  ;;  %7763 = vmatprep.subr.bf16.mxu1 %v9980_v56 }
 0xa67   :  { %7600 = vmatpush1.bf16.msra.mxu0 %v9975_v62  ;;  %7764 = vmatpush1.bf16.msra.mxu1 %v9978_v0 }
 0xa68   :  { %7601 = vmatprep.subr.bf16.mxu0 %v9983_v1  ;;  %7765 = vmatprep.subr.bf16.mxu1 %v9986_v2 }
 0xa6b   :  { %7602 = vmatpush1.bf16.msra.mxu0 %v9981_v3  ;;  %7766 = vmatpush1.bf16.msra.mxu1 %v9984_v5 }
 0xa6c   :  { %7603 = vmatprep.subr.bf16.mxu0 %v9989_v6  ;;  %7767 = vmatprep.subr.bf16.mxu1 %v9992_v7 }
 0xa6f   :  { %7604 = vmatpush1.bf16.msra.mxu0 %v9987_v8  ;;  %7768 = vmatpush1.bf16.msra.mxu1 %v9990_v10  ;;  %v12287_v10 = vld [vmem:[#allocation16] sm:$0xff] }
 0xa70   :  { %7605 = vmatprep.subr.bf16.mxu0 %v9995_v36  ;;  %7769 = vmatprep.subr.bf16.mxu1 %v9998_v11  ;;  %v5972_v36 = vrot.slane %v12287_v10, %v11234_v55  ;;  %v5980_v11 = vrot.slane %v12287_v10, %v11459_v18 }
 0xa73   :  { %7606 = vmatpush1.bf16.msra.mxu0 %v9993_v14  ;;  %7770 = vmatpush1.bf16.msra.mxu1 %v9996_v12 }
 0xa74   :  { %7607 = vmatprep.subr.bf16.mxu0 %v10001_v63  ;;  %7771 = vmatprep.subr.bf16.mxu1 %v10004_v13  ;;  %v5976_v63 = vrot.slane %v12287_v10, %v11237_v57  ;;  %v5984_v13 = vrot.slane %v12287_v10, %v11462_v24 }
 0xa77   :  { %7608 = vmatpush1.bf16.msra.mxu0 %v9999_v15  ;;  %7772 = vmatpush1.bf16.msra.mxu1 %v10002_v16 }
 0xa78   :  { %7609 = vmatprep.subr.bf16.mxu0 %v10007_v20  ;;  %7773 = vmatprep.subr.bf16.mxu1 %v10010_v21 }
 0xa7b   :  { %7610 = vmatpush1.bf16.msra.mxu0 %v10005_v22  ;;  %7774 = vmatpush1.bf16.msra.mxu1 %v10008_v23 }
 0xa7c   :  { %7611 = vmatprep.subr.bf16.mxu0 %v10013_v25  ;;  %7775 = vmatprep.subr.bf16.mxu1 %v10016_v60 }
 0xa7f   :  { %7612 = vmatpush1.bf16.msra.mxu0 %v10011_v26  ;;  %7776 = vmatpush1.bf16.msra.mxu1 %v10014_v27 }
 0xa80   :  { %7613 = vmatprep.subr.bf16.mxu0 %v10019_v28  ;;  %7777 = vmatprep.subr.bf16.mxu1 %v10022_v29 }
 0xa83   :  { %7614 = vmatpush1.bf16.msra.mxu0 %v10017_v31  ;;  %7778 = vmatpush1.bf16.msra.mxu1 %v10020_v32 }
 0xa84   :  { %7615 = vmatprep.subr.bf16.mxu0 %v10025_v34  ;;  %7779 = vmatprep.subr.bf16.mxu1 %v10028_v35 }
 0xa87   :  { %7616 = vmatpush1.bf16.msra.mxu0 %v10023_v38  ;;  %7780 = vmatpush1.bf16.msra.mxu1 %v10026_v4 }
 0xa88   :  { %7617 = vmatprep.subr.bf16.mxu0 %v10031_v33  ;;  %7781 = vmatprep.subr.bf16.mxu1 %v10034_v40  ;;  %v10047_v33 = vld [vmem:[#allocation18 + $0x200] ss:$16 sps:$4 sm:$0xff]   ;;  %v10050_v40 = vld [vmem:[#allocation18 + $0x208] ss:$16 sps:$4 sm:$0xff]  }
 0xa8b   :  { %7618 = vmatpush1.bf16.msra.mxu0 %v10029_v30  ;;  %7782 = vmatpush1.bf16.msra.mxu1 %v10032_v41  ;;  %v10055_v41 = vld [vmem:[#allocation18 + $0x224] ss:$16 sps:$4 sm:$0xff]  }
 0xa8c   :  { %7619 = vmatprep.subr.bf16.mxu0 %v10037_v42  ;;  %7783 = vmatprep.subr.bf16.mxu1 %v10040_v19  ;;  %v10058_v42 = vld [vmem:[#allocation18 + $0x22c] ss:$16 sps:$4 sm:$0xff]  }
 0xa8f   :  { %7620 = vmatpush1.bf16.msra.mxu0 %v10035_v43  ;;  %7784 = vmatpush1.bf16.msra.mxu1 %v10038_v44  ;;  %v10053_v43 = vld [vmem:[#allocation18 + $0x220] ss:$16 sps:$4 sm:$0xff]   ;;  %v10056_v44 = vld [vmem:[#allocation18 + $0x228] ss:$16 sps:$4 sm:$0xff]  }
 0xa90   :  { %7621 = vmatprep.subr.bf16.mxu0 %v10043_v9  ;;  %7785 = vmatprep.subr.bf16.mxu1 %v10046_v17  ;;  %v10061_v9 = vld [vmem:[#allocation18 + $0x244] ss:$16 sps:$4 sm:$0xff]   ;;  %v10064_v17 = vld [vmem:[#allocation18 + $0x24c] ss:$16 sps:$4 sm:$0xff]  }
 0xa93   :  { %7622 = vmatpush1.bf16.msra.mxu0 %v10041_v45  ;;  %7786 = vmatpush1.bf16.msra.mxu1 %v10044_v46  ;;  %v10059_v45 = vld [vmem:[#allocation18 + $0x240] ss:$16 sps:$4 sm:$0xff]   ;;  %v10062_v46 = vld [vmem:[#allocation18 + $0x248] ss:$16 sps:$4 sm:$0xff]  }
 0xa94   :  { %7632 = vmatprep.subr.bf16.mxu0 %v10049_v47  ;;  %7796 = vmatprep.subr.bf16.mxu1 %v10052_v48  ;;  %v10067_v47 = vld [vmem:[#allocation18 + $0x264] ss:$16 sps:$4 sm:$0xff]   ;;  %v10070_v48 = vld [vmem:[#allocation18 + $0x26c] ss:$16 sps:$4 sm:$0xff]  }
 0xac9   :  { %v5353_v49 = vpop.f32.mrb[80].mxu0  ;;  %v5394_v50 = vpop.f32.mrb[60].mxu1 }
 0xaca   :  { %v5355_v51 = vpop.f32.mrb[81].mxu0  ;;  %v5396_v52 = vpop.f32.mrb[61].mxu1 }
 0xacb   :  { %v5357_v39 = vpop.f32.mrb[82].mxu0  ;;  %v5398_v53 = vpop.f32.mrb[62].mxu1 }
 0xacc   :  { %v5358_v56 = vpop.f32.mrb[83].mxu0  ;;  %v5399_v62 = vpop.f32.mrb[63].mxu1  ;;  %v10071_v39 = vld [vmem:[#allocation18 + $0x280] ss:$16 sps:$4 sm:$0xff]   ;;  %v10074_v53 = vld [vmem:[#allocation18 + $0x288] ss:$16 sps:$4 sm:$0xff]  }
 0xacd   :  { %v10079_v56 = vld [vmem:[#allocation18 + $0x2a4] ss:$16 sps:$4 sm:$0xff]   ;;  %v10082_v62 = vld [vmem:[#allocation18 + $0x2ac] ss:$16 sps:$4 sm:$0xff]  }
 0xae9   :  { %v12279_v0 = vpop.f32.mrb[84].mxu0  ;;  %v12281_v1 = vpop.f32.mrb[64].mxu1 }
 0xaea   :  { %v12283_v2 = vpop.f32.mrb[85].mxu0  ;;  %v12285_v3 = vpop.f32.mrb[65].mxu1 }
 0xaeb   :  { %v5439_v5 = vpop.f32.mrb[86].mxu0  ;;  %v5480_v6 = vpop.f32.mrb[66].mxu1 }
 0xaec   :  { %v5440_v7 = vpop.f32.mrb[87].mxu0  ;;  %v5481_v8 = vpop.f32.mrb[67].mxu1  ;;  %v10077_v5 = vld [vmem:[#allocation18 + $0x2a0] ss:$16 sps:$4 sm:$0xff]   ;;  %v10080_v6 = vld [vmem:[#allocation18 + $0x2a8] ss:$16 sps:$4 sm:$0xff]  }
 0xaed   :  { %v10085_v7 = vld [vmem:[#allocation18 + $0x2c4] ss:$16 sps:$4 sm:$0xff]   ;;  %v10088_v8 = vld [vmem:[#allocation18 + $0x2cc] ss:$16 sps:$4 sm:$0xff]  }
 0xb09   :  { %v5837_v14 = vpop.f32.mrb[88].mxu0  ;;  %v5878_v12 = vpop.f32.mrb[68].mxu1 }
 0xb0a   :  { %v5838_v15 = vadd.f32 %v5837_v14, %v5353_v49  ;;  %v5879_v16 = vadd.f32 %v5878_v12, %v5394_v50  ;;  %v5839_v20 = vpop.f32.mrb[89].mxu0  ;;  %v5880_v21 = vpop.f32.mrb[69].mxu1  ;;  %v10065_v49 = vld [vmem:[#allocation18 + $0x260] ss:$16 sps:$4 sm:$0xff]   ;;  %v10068_v50 = vld [vmem:[#allocation18 + $0x268] ss:$16 sps:$4 sm:$0xff]  }
 0xb0b   :  { %v5840_v22 = vadd.f32 %v5839_v20, %v5355_v51  ;;  %v5881_v23 = vadd.f32 %v5880_v21, %v5396_v52  ;;  %v5841_v25 = vpop.f32.mrb[90].mxu0  ;;  %v5882_v60 = vpop.f32.mrb[70].mxu1  ;;  %v10073_v51 = vld [vmem:[#allocation18 + $0x284] ss:$16 sps:$4 sm:$0xff]   ;;  %v10076_v52 = vld [vmem:[#allocation18 + $0x28c] ss:$16 sps:$4 sm:$0xff]  }
 0xb0c   :  { %v6009_v26 = vadd.f32 %v5972_v36, %v5838_v15  ;;  %v12297_v27 = vadd.f32 %v5980_v11, %v5879_v16  ;;  %v5842_v28 = vpop.f32.mrb[91].mxu0  ;;  %v5883_v29 = vpop.f32.mrb[71].mxu1  ;;  %v5988_v36 = vrot.slane %v12287_v10, %v11535_v37  ;;  %v5996_v11 = vrot.slane %v12287_v10, %v3028_v58  ;;  %v10083_v15 = vld [vmem:[#allocation18 + $0x2c0] ss:$16 sps:$4 sm:$0xff]   ;;  %v10086_v16 = vld [vmem:[#allocation18 + $0x2c8] ss:$16 sps:$4 sm:$0xff]  }
 0xb0d   :  { %v6010_v31 = vadd.f32 %v5976_v63, %v5840_v22  ;;  %v6012_v32 = vadd.f32 %v5984_v13, %v5881_v23  ;;  %v5992_v63 = vrot.slane %v12287_v10, %v3024_v59  ;;  %v6000_v13 = vrot.slane %v12287_v10, %v3032_v61  ;;  %v10091_v22 = vld [vmem:[#allocation18 + $0x2e4] ss:$16 sps:$4 sm:$0xff]   ;;  %v10094_v23 = vld [vmem:[#allocation18 + $0x2ec] ss:$16 sps:$4 sm:$0xff]   ;;  %v10089_v29 = vld [vmem:[#allocation18 + $0x2e0] ss:$16 sps:$4 sm:$0xff]  }
 0xb0e   :  { %v6017_v34 = vmax.f32 %v6009_v26, 0.0 }
 0xb0f   :  { %v6018_v35 = vmax.f32 %v6010_v31, 0.0  ;;  %v6020_v38 = vmax.f32 %v6012_v32, 0.0  ;;  %v10092_v31 = vld [vmem:[#allocation18 + $0x2e8] ss:$16 sps:$4 sm:$0xff]   ;;  %v10095_v32 = vld [vmem:[#allocation18 + $0x300] ss:$16 sps:$4 sm:$0xff]  }
 0xb10   :  { %v6025_v30 = vpack.c.bf16 %v6017_v34, %v6017_v34  ;;  %v10098_v34 = vld [vmem:[#allocation18 + $0x308] ss:$16 sps:$4 sm:$0xff]  }
 0xb11   :  { %v6026_v4 = vpack.c.bf16 %v6018_v35, %v6018_v35  ;;  %v6028_v19 = vpack.c.bf16 %v6020_v38, %v6020_v38  ;;  %v10103_v35 = vld [vmem:[#allocation18 + $0x324] ss:$16 sps:$4 sm:$0xff]   ;;  %v10106_v38 = vld [vmem:[#allocation18 + $0x32c] ss:$16 sps:$4 sm:$0xff]  }
 0xb13   :  { %7623 = vmatprep.mubr.bf16.mxu0 %v6026_v4  ;;  %7787 = vmatprep.mubr.bf16.mxu1 %v6026_v4  ;;  %v10101_v4 = vld [vmem:[#allocation18 + $0x320] ss:$16 sps:$4 sm:$0xff]  }
 0xb14   :  { %7624 = vmatmul.mubr.bf16.vlgmr.msra.gmra.mrb[96].mxu0 %v6025_v30  ;;  %7788 = vmatmul.mubr.bf16.vlgmr.msra.gmra.mrb[76].mxu1 %v6025_v30  ;;  %v10112_v30 = vld [vmem:[#allocation18 + $0x34c] ss:$16 sps:$4 sm:$0xff]  }
 0xb15   :  { %7633 = vmatpush1.bf16.msra.mxu0 %v10047_v33  ;;  %7797 = vmatpush1.bf16.msra.mxu1 %v10050_v40  ;;  %v10104_v33 = vld [vmem:[#allocation18 + $0x328] ss:$16 sps:$4 sm:$0xff]   ;;  %v10109_v40 = vld [vmem:[#allocation18 + $0x344] ss:$16 sps:$4 sm:$0xff]  }
 0xb16   :  { %7664 = vmatprep.mubr.bf16.mxu0 %v6028_v19  ;;  %7828 = vmatprep.mubr.bf16.mxu1 %v6028_v19  ;;  %v10115_v19 = vld [vmem:[#allocation18 + $0x364] ss:$16 sps:$4 sm:$0xff]  }
 0xb17   :  { %7634 = vmatprep.subr.bf16.mxu0 %v10055_v41  ;;  %7798 = vmatprep.subr.bf16.mxu1 %v10058_v42  ;;  %v10107_v41 = vld [vmem:[#allocation18 + $0x340] ss:$16 sps:$4 sm:$0xff]   ;;  %v10110_v42 = vld [vmem:[#allocation18 + $0x348] ss:$16 sps:$4 sm:$0xff]  }
 0xb19   :  { %7635 = vmatpush1.bf16.msra.mxu0 %v10053_v43  ;;  %7799 = vmatpush1.bf16.msra.mxu1 %v10056_v44  ;;  %v10118_v43 = vld [vmem:[#allocation18 + $0x36c] ss:$16 sps:$4 sm:$0xff]   ;;  %v10113_v44 = vld [vmem:[#allocation18 + $0x360] ss:$16 sps:$4 sm:$0xff]  }
 0xb1a   :  { %7636 = vmatprep.subr.bf16.mxu0 %v10061_v9  ;;  %7800 = vmatprep.subr.bf16.mxu1 %v10064_v17  ;;  %v10116_v9 = vld [vmem:[#allocation18 + $0x368] ss:$16 sps:$4 sm:$0xff]   ;;  %v10121_v17 = vld [vmem:[#allocation18 + $0x384] ss:$16 sps:$4 sm:$0xff]  }
 0xb1d   :  { %7637 = vmatpush1.bf16.msra.mxu0 %v10059_v45  ;;  %7801 = vmatpush1.bf16.msra.mxu1 %v10062_v46  ;;  %v10124_v45 = vld [vmem:[#allocation18 + $0x38c] ss:$16 sps:$4 sm:$0xff]   ;;  %v10119_v46 = vld [vmem:[#allocation18 + $0x380] ss:$16 sps:$4 sm:$0xff]  }
 0xb1e   :  { %7638 = vmatprep.subr.bf16.mxu0 %v10067_v47  ;;  %7802 = vmatprep.subr.bf16.mxu1 %v10070_v48  ;;  %v10122_v47 = vld [vmem:[#allocation18 + $0x388] ss:$16 sps:$4 sm:$0xff]   ;;  %v10127_v48 = vld [vmem:[#allocation18 + $0x3a4] ss:$16 sps:$4 sm:$0xff]  }
 0xb21   :  { %7639 = vmatpush1.bf16.msra.mxu0 %v10065_v49  ;;  %7803 = vmatpush1.bf16.msra.mxu1 %v10068_v50  ;;  %v10130_v49 = vld [vmem:[#allocation18 + $0x3ac] ss:$16 sps:$4 sm:$0xff]   ;;  %v10125_v50 = vld [vmem:[#allocation18 + $0x3a0] ss:$16 sps:$4 sm:$0xff]  }
 0xb22   :  { %7640 = vmatprep.subr.bf16.mxu0 %v10073_v51  ;;  %7804 = vmatprep.subr.bf16.mxu1 %v10076_v52  ;;  %v10128_v51 = vld [vmem:[#allocation18 + $0x3a8] ss:$16 sps:$4 sm:$0xff]   ;;  %v10133_v52 = vld [vmem:[#allocation18 + $0x3c4] ss:$16 sps:$4 sm:$0xff]  }
 0xb25   :  { %7641 = vmatpush1.bf16.msra.mxu0 %v10071_v39  ;;  %7805 = vmatpush1.bf16.msra.mxu1 %v10074_v53  ;;  %v10136_v39 = vld [vmem:[#allocation18 + $0x3cc] ss:$16 sps:$4 sm:$0xff]   ;;  %v10131_v53 = vld [vmem:[#allocation18 + $0x3c0] ss:$16 sps:$4 sm:$0xff]  }
 0xb26   :  { %7642 = vmatprep.subr.bf16.mxu0 %v10079_v56  ;;  %7806 = vmatprep.subr.bf16.mxu1 %v10082_v62  ;;  %v10134_v56 = vld [vmem:[#allocation18 + $0x3c8] ss:$16 sps:$4 sm:$0xff]   ;;  %v10139_v62 = vld [vmem:[#allocation18 + $0x3e4] ss:$16 sps:$4 sm:$0xff]  }
 0xb29   :  { %7643 = vmatpush1.bf16.msra.mxu0 %v10077_v5  ;;  %7807 = vmatpush1.bf16.msra.mxu1 %v10080_v6  ;;  %v5919_v14 = vpop.f32.mrb[92].mxu0  ;;  %v5960_v12 = vpop.f32.mrb[72].mxu1  ;;  %v10142_v5 = vld [vmem:[#allocation18 + $0x3ec] ss:$16 sps:$4 sm:$0xff]   ;;  %v10137_v6 = vld [vmem:[#allocation18 + $0x3e0] ss:$16 sps:$4 sm:$0xff]  }
 0xb2a   :  { %v5920_v37 = vadd.f32 %v5919_v14, %v12279_v0  ;;  %v5961_v20 = vadd.f32 %v5960_v12, %v12281_v1  ;;  %v5921_v21 = vpop.f32.mrb[93].mxu0  ;;  %v5962_v58 = vpop.f32.mrb[73].mxu1  ;;  %7644 = vmatprep.subr.bf16.mxu0 %v10085_v7  ;;  %7808 = vmatprep.subr.bf16.mxu1 %v10088_v8  ;;  %v10140_v7 = vld [vmem:[#allocation18 + $0x3e8] ss:$16 sps:$4 sm:$0xff]   ;;  %v6019_v8 = vmax.f32 %v12297_v27, 0.0 }
 0xb2b   :  { %v5922_v25 = vadd.f32 %v5921_v21, %v12283_v2  ;;  %v5963_v59 = vadd.f32 %v5962_v58, %v12285_v3  ;;  %v5923_v60 = vpop.f32.mrb[94].mxu0  ;;  %v5964_v54 = vpop.f32.mrb[74].mxu1  ;;  %v10097_v2 = vld [vmem:[#allocation18 + $0x304] ss:$16 sps:$4 sm:$0xff]   ;;  %v10100_v3 = vld [vmem:[#allocation18 + $0x30c] ss:$16 sps:$4 sm:$0xff]  }
 0xb2c   :  { %v12314_v26 = vadd.f32 %v5988_v36, %v5920_v37  ;;  %v12316_v61 = vadd.f32 %v5996_v11, %v5961_v20  ;;  %v5924_v10 = vpop.f32.mrb[95].mxu0  ;;  %v5965_v0 = vpop.f32.mrb[75].mxu1  ;;  %v10145_v36 = vld [vmem:[#allocation18 + $0x404] ss:$16 sps:$4 sm:$0xff]   ;;  %v10148_v11 = vld [vmem:[#allocation18 + $0x40c] ss:$16 sps:$4 sm:$0xff]  }
 0xb2d   :  { %v12318_v28 = vadd.f32 %v5992_v63, %v5922_v25  ;;  %v12320_v1 = vadd.f32 %v6000_v13, %v5963_v59  ;;  %7645 = vmatpush1.bf16.msra.mxu0 %v10083_v15  ;;  %7809 = vmatpush1.bf16.msra.mxu1 %v10086_v16  ;;  %v10143_v12 = vld [vmem:[#allocation18 + $0x400] ss:$16 sps:$4 sm:$0xff]   ;;  %v6027_v63 = vpack.c.bf16 %v6019_v8, %v6019_v8  ;;  %v10146_v13 = vld [vmem:[#allocation18 + $0x408] ss:$16 sps:$4 sm:$0xff]   ;;  %v10151_v16 = vld [vmem:[#allocation18 + $0x424] ss:$16 sps:$4 sm:$0xff]  }
 0xb2e   :  { %7646 = vmatprep.subr.bf16.mxu0 %v10091_v22  ;;  %7810 = vmatprep.subr.bf16.mxu1 %v10094_v23  ;;  %v10154_v37 = vld [vmem:[#allocation18 + $0x42c] ss:$16 sps:$4 sm:$0xff]   ;;  %v10149_v27 = vld [vmem:[#allocation18 + $0x420] ss:$16 sps:$4 sm:$0xff]   ;;  %v10152_v20 = vld [vmem:[#allocation18 + $0x428] ss:$16 sps:$4 sm:$0xff]  }
 0xb2f   :  { %v6022_v14 = vmax.f32 %v12318_v28, 0.0  ;;  %v10157_v21 = vld [vmem:[#allocation18 + $0x444] ss:$16 sps:$4 sm:$0xff]   ;;  %v10160_v58 = vld [vmem:[#allocation18 + $0x44c] ss:$16 sps:$4 sm:$0xff]  }
 0xb30   :  { %v10155_v22 = vld [vmem:[#allocation18 + $0x440] ss:$16 sps:$4 sm:$0xff]   ;;  %v10158_v23 = vld [vmem:[#allocation18 + $0x448] ss:$16 sps:$4 sm:$0xff]   ;;  %v10163_v25 = vld [vmem:[#allocation18 + $0x464] ss:$16 sps:$4 sm:$0xff]  }
 0xb31   :  { %7647 = vmatpush1.bf16.msra.mxu0 %v10089_v29  ;;  %7811 = vmatpush1.bf16.msra.mxu1 %v10092_v31  ;;  %v6030_v15 = vpack.c.bf16 %v6022_v14, %v6022_v14  ;;  %v10166_v59 = vld [vmem:[#allocation18 + $0x46c] ss:$16 sps:$4 sm:$0xff]   ;;  %v10161_v60 = vld [vmem:[#allocation18 + $0x460] ss:$16 sps:$4 sm:$0xff]   ;;  %v10164_v54 = vld [vmem:[#allocation18 + $0x468] ss:$16 sps:$4 sm:$0xff]  }
 0xb32   :  { %7648 = vmatprep.subr.bf16.mxu0 %v10097_v2  ;;  %7812 = vmatprep.subr.bf16.mxu1 %v10100_v3  ;;  %v10169_v10 = vld [vmem:[#allocation18 + $0x484] ss:$16 sps:$4 sm:$0xff]   ;;  %v10172_v0 = vld [vmem:[#allocation18 + $0x48c] ss:$16 sps:$4 sm:$0xff]   ;;  %v10167_v28 = vld [vmem:[#allocation18 + $0x480] ss:$16 sps:$4 sm:$0xff]  }
 0xb33   :  { %v10170_v29 = vld [vmem:[#allocation18 + $0x488] ss:$16 sps:$4 sm:$0xff]   ;;  %v10175_v31 = vld [vmem:[#allocation18 + $0x4a4] ss:$16 sps:$4 sm:$0xff]   ;;  %v10178_v2 = vld [vmem:[#allocation18 + $0x4ac] ss:$16 sps:$4 sm:$0xff]  }
 0xb34   :  { %v10173_v3 = vld [vmem:[#allocation18 + $0x4a0] ss:$16 sps:$4 sm:$0xff]   ;;  %v10226_v8 = vld [vmem:[#allocation18 + $0x5ac] ss:$16 sps:$4 sm:$0xff]   ;;  %v10229_v14 = vld [vmem:[#allocation18 + $0x5c4] ss:$16 sps:$4 sm:$0xff]  }
 0xb35   :  { %7649 = vmatpush1.bf16.msra.mxu0 %v10095_v32  ;;  %7813 = vmatpush1.bf16.msra.mxu1 %v10098_v34  ;;  %v10176_v32 = vld [vmem:[#allocation18 + $0x4a8] ss:$16 sps:$4 sm:$0xff]   ;;  %v10181_v34 = vld [vmem:[#allocation18 + $0x4c4] ss:$16 sps:$4 sm:$0xff]  }
 0xb36   :  { %7650 = vmatprep.subr.bf16.mxu0 %v10103_v35  ;;  %7814 = vmatprep.subr.bf16.mxu1 %v10106_v38  ;;  %v10184_v35 = vld [vmem:[#allocation18 + $0x4cc] ss:$16 sps:$4 sm:$0xff]   ;;  %v10179_v38 = vld [vmem:[#allocation18 + $0x4c0] ss:$16 sps:$4 sm:$0xff]  }
 0xb39   :  { %7651 = vmatpush1.bf16.msra.mxu0 %v10101_v4  ;;  %7815 = vmatpush1.bf16.msra.mxu1 %v10104_v33  ;;  %v10182_v4 = vld [vmem:[#allocation18 + $0x4c8] ss:$16 sps:$4 sm:$0xff]   ;;  %v10187_v33 = vld [vmem:[#allocation18 + $0x4e4] ss:$16 sps:$4 sm:$0xff]  }
 0xb3a   :  { %7652 = vmatprep.subr.bf16.mxu0 %v10109_v40  ;;  %7816 = vmatprep.subr.bf16.mxu1 %v10112_v30  ;;  %v10190_v40 = vld [vmem:[#allocation18 + $0x4ec] ss:$16 sps:$4 sm:$0xff]   ;;  %v10185_v30 = vld [vmem:[#allocation18 + $0x4e0] ss:$16 sps:$4 sm:$0xff]  }
 0xb3d   :  { %7653 = vmatpush1.bf16.msra.mxu0 %v10107_v41  ;;  %7817 = vmatpush1.bf16.msra.mxu1 %v10110_v42  ;;  %v10188_v41 = vld [vmem:[#allocation18 + $0x4e8] ss:$16 sps:$4 sm:$0xff]   ;;  %v10193_v42 = vld [vmem:[#allocation18 + $0x504] ss:$16 sps:$4 sm:$0xff]  }
 0xb3e   :  { %7654 = vmatprep.subr.bf16.mxu0 %v10115_v19  ;;  %7818 = vmatprep.subr.bf16.mxu1 %v10118_v43  ;;  %v10196_v19 = vld [vmem:[#allocation18 + $0x50c] ss:$16 sps:$4 sm:$0xff]   ;;  %v10191_v43 = vld [vmem:[#allocation18 + $0x500] ss:$16 sps:$4 sm:$0xff]  }
 0xb41   :  { %7655 = vmatpush1.bf16.msra.mxu0 %v10113_v44  ;;  %7819 = vmatpush1.bf16.msra.mxu1 %v10116_v9  ;;  %v10194_v44 = vld [vmem:[#allocation18 + $0x508] ss:$16 sps:$4 sm:$0xff]   ;;  %v10199_v9 = vld [vmem:[#allocation18 + $0x524] ss:$16 sps:$4 sm:$0xff]  }
 0xb42   :  { %7656 = vmatprep.subr.bf16.mxu0 %v10121_v17  ;;  %7820 = vmatprep.subr.bf16.mxu1 %v10124_v45  ;;  %v10202_v17 = vld [vmem:[#allocation18 + $0x52c] ss:$16 sps:$4 sm:$0xff]   ;;  %v10197_v45 = vld [vmem:[#allocation18 + $0x520] ss:$16 sps:$4 sm:$0xff]  }
 0xb45   :  { %7657 = vmatpush1.bf16.msra.mxu0 %v10119_v46  ;;  %7821 = vmatpush1.bf16.msra.mxu1 %v10122_v47  ;;  %v10200_v46 = vld [vmem:[#allocation18 + $0x528] ss:$16 sps:$4 sm:$0xff]   ;;  %v10205_v47 = vld [vmem:[#allocation18 + $0x544] ss:$16 sps:$4 sm:$0xff]  }
 0xb46   :  { %7658 = vmatprep.subr.bf16.mxu0 %v10127_v48  ;;  %7822 = vmatprep.subr.bf16.mxu1 %v10130_v49  ;;  %v10208_v48 = vld [vmem:[#allocation18 + $0x54c] ss:$16 sps:$4 sm:$0xff]   ;;  %v10203_v49 = vld [vmem:[#allocation18 + $0x540] ss:$16 sps:$4 sm:$0xff]  }
 0xb49   :  { %7659 = vmatpush1.bf16.msra.mxu0 %v10125_v50  ;;  %7823 = vmatpush1.bf16.msra.mxu1 %v10128_v51  ;;  %v10206_v50 = vld [vmem:[#allocation18 + $0x548] ss:$16 sps:$4 sm:$0xff]   ;;  %v10211_v51 = vld [vmem:[#allocation18 + $0x564] ss:$16 sps:$4 sm:$0xff]  }
 0xb4a   :  { %7660 = vmatprep.subr.bf16.mxu0 %v10133_v52  ;;  %7824 = vmatprep.subr.bf16.mxu1 %v10136_v39  ;;  %v10214_v52 = vld [vmem:[#allocation18 + $0x56c] ss:$16 sps:$4 sm:$0xff]   ;;  %v10209_v39 = vld [vmem:[#allocation18 + $0x560] ss:$16 sps:$4 sm:$0xff]  }
 0xb4d   :  { %7661 = vmatpush1.bf16.msra.mxu0 %v10131_v53  ;;  %7825 = vmatpush1.bf16.msra.mxu1 %v10134_v56  ;;  %v10212_v53 = vld [vmem:[#allocation18 + $0x568] ss:$16 sps:$4 sm:$0xff]   ;;  %v10217_v56 = vld [vmem:[#allocation18 + $0x584] ss:$16 sps:$4 sm:$0xff]  }
 0xb4e   :  { %7662 = vmatprep.subr.bf16.mxu0 %v10139_v62  ;;  %7826 = vmatprep.subr.bf16.mxu1 %v10142_v5  ;;  %v10220_v62 = vld [vmem:[#allocation18 + $0x58c] ss:$16 sps:$4 sm:$0xff]   ;;  %v10215_v5 = vld [vmem:[#allocation18 + $0x580] ss:$16 sps:$4 sm:$0xff]  }
 0xb51   :  { %7663 = vmatpush1.bf16.msra.mxu0 %v10137_v6  ;;  %7827 = vmatpush1.bf16.msra.mxu1 %v10140_v7  ;;  %v10218_v6 = vld [vmem:[#allocation18 + $0x588] ss:$16 sps:$4 sm:$0xff]   ;;  %v10223_v7 = vld [vmem:[#allocation18 + $0x5a4] ss:$16 sps:$4 sm:$0xff]  }
 0xb52   :  { %7673 = vmatprep.subr.bf16.mxu0 %v10145_v36  ;;  %7837 = vmatprep.subr.bf16.mxu1 %v10148_v11  ;;  %v10221_v36 = vld [vmem:[#allocation18 + $0x5a0] ss:$16 sps:$4 sm:$0xff]   ;;  %v10224_v11 = vld [vmem:[#allocation18 + $0x5a8] ss:$16 sps:$4 sm:$0xff]  }
 0xb54   :  { %7665 = vmatmul.mubr.bf16.vlgmr.msra.gmra.mrb[96].mxu0 %v6027_v63  ;;  %7829 = vmatmul.mubr.bf16.vlgmr.msra.gmra.mrb[76].mxu1 %v6027_v63  ;;  %v10227_v63 = vld [vmem:[#allocation18 + $0x5c0] ss:$16 sps:$4 sm:$0xff]  }
 0xb55   :  { %7674 = vmatpush1.bf16.msra.mxu0 %v10143_v12  ;;  %7705 = vmatprep.mubr.bf16.mxu0 %v6030_v15  ;;  %v10232_v12 = vld [vmem:[#allocation18 + $0x5cc] ss:$16 sps:$4 sm:$0xff]  }
 0xb56   :  { %7838 = vmatpush1.bf16.msra.mxu1 %v10146_v13  ;;  %7869 = vmatprep.mubr.bf16.mxu1 %v6030_v15  ;;  %v10230_v13 = vld [vmem:[#allocation18 + $0x5c8] ss:$16 sps:$4 sm:$0xff]   ;;  %v10235_v15 = vld [vmem:[#allocation18 + $0x5e4] ss:$16 sps:$4 sm:$0xff]  }
 0xb57   :  { %7675 = vmatprep.subr.bf16.mxu0 %v10151_v16  ;;  %7839 = vmatprep.subr.bf16.mxu1 %v10154_v37  ;;  %v10238_v16 = vld [vmem:[#allocation18 + $0x5ec] ss:$16 sps:$4 sm:$0xff]   ;;  %v10233_v37 = vld [vmem:[#allocation18 + $0x5e0] ss:$16 sps:$4 sm:$0xff]  }
 0xb59   :  { %7676 = vmatpush1.bf16.msra.mxu0 %v10149_v27  ;;  %v6021_v27 = vmax.f32 %v12314_v26, 0.0  ;;  %v10245_v26 = vld [vmem:[#allocation18 + $0x620] ss:$16 sps:$4 sm:$0xff]  }
 0xb5a   :  { %7840 = vmatpush1.bf16.msra.mxu1 %v10152_v20  ;;  %7677 = vmatprep.subr.bf16.mxu0 %v10157_v21  ;;  %v10236_v20 = vld [vmem:[#allocation18 + $0x5e8] ss:$16 sps:$4 sm:$0xff]   ;;  %v10241_v21 = vld [vmem:[#allocation18 + $0x604] ss:$16 sps:$4 sm:$0xff]  }
 0xb5b   :  { %7841 = vmatprep.subr.bf16.mxu1 %v10160_v58  ;;  %v10244_v58 = vld [vmem:[#allocation18 + $0x60c] ss:$16 sps:$4 sm:$0xff]  }
 0xb5d   :  { %7678 = vmatpush1.bf16.msra.mxu0 %v10155_v22  ;;  %v6024_v22 = vmax.f32 %v12320_v1, 0.0  ;;  %v10256_v1 = vld [vmem:[#allocation18 + $0x64c] ss:$16 sps:$4 sm:$0xff]  }
 0xb5e   :  { %7842 = vmatpush1.bf16.msra.mxu1 %v10158_v23  ;;  %7679 = vmatprep.subr.bf16.mxu0 %v10163_v25  ;;  %v10239_v23 = vld [vmem:[#allocation18 + $0x600] ss:$16 sps:$4 sm:$0xff]   ;;  %v6029_v25 = vpack.c.bf16 %v6021_v27, %v6021_v27 }
 0xb5f   :  { %7843 = vmatprep.subr.bf16.mxu1 %v10166_v59  ;;  %v10242_v59 = vld [vmem:[#allocation18 + $0x608] ss:$16 sps:$4 sm:$0xff]   ;;  %v10317_v27 = vld [vmem:[#allocation18 + $0x7a0] ss:$16 sps:$4 sm:$0xff]  }
 0xb61   :  { %7680 = vmatpush1.bf16.msra.mxu0 %v10161_v60  ;;  %v10247_v60 = vld [vmem:[#allocation18 + $0x624] ss:$16 sps:$4 sm:$0xff]  }
 0xb62   :  { %7844 = vmatpush1.bf16.msra.mxu1 %v10164_v54  ;;  %7681 = vmatprep.subr.bf16.mxu0 %v10169_v10  ;;  %v6032_v54 = vpack.c.bf16 %v6024_v22, %v6024_v22  ;;  %v10250_v10 = vld [vmem:[#allocation18 + $0x62c] ss:$16 sps:$4 sm:$0xff]   ;;  %v10323_v22 = vld [vmem:[#allocation18 + $0x7c0] ss:$16 sps:$4 sm:$0xff]  }
 0xb63   :  { %7845 = vmatprep.subr.bf16.mxu1 %v10172_v0  ;;  %v10248_v0 = vld [vmem:[#allocation18 + $0x628] ss:$16 sps:$4 sm:$0xff]  }
 0xb65   :  { %7682 = vmatpush1.bf16.msra.mxu0 %v10167_v28  ;;  %v10253_v28 = vld [vmem:[#allocation18 + $0x644] ss:$16 sps:$4 sm:$0xff]  }
 0xb66   :  { %7846 = vmatpush1.bf16.msra.mxu1 %v10170_v29  ;;  %7683 = vmatprep.subr.bf16.mxu0 %v10175_v31  ;;  %v10251_v29 = vld [vmem:[#allocation18 + $0x640] ss:$16 sps:$4 sm:$0xff]   ;;  %v10254_v31 = vld [vmem:[#allocation18 + $0x648] ss:$16 sps:$4 sm:$0xff]  }
 0xb67   :  { %7847 = vmatprep.subr.bf16.mxu1 %v10178_v2  ;;  %v10259_v2 = vld [vmem:[#allocation18 + $0x664] ss:$16 sps:$4 sm:$0xff]  }
 0xb69   :  { %7684 = vmatpush1.bf16.msra.mxu0 %v10173_v3  ;;  %v10262_v3 = vld [vmem:[#allocation18 + $0x66c] ss:$16 sps:$4 sm:$0xff]  }
 0xb6a   :  { %7848 = vmatpush1.bf16.msra.mxu1 %v10176_v32  ;;  %7685 = vmatprep.subr.bf16.mxu0 %v10181_v34  ;;  %v10257_v32 = vld [vmem:[#allocation18 + $0x660] ss:$16 sps:$4 sm:$0xff]   ;;  %v10260_v34 = vld [vmem:[#allocation18 + $0x668] ss:$16 sps:$4 sm:$0xff]  }
 0xb6b   :  { %7849 = vmatprep.subr.bf16.mxu1 %v10184_v35  ;;  %v10265_v35 = vld [vmem:[#allocation18 + $0x684] ss:$16 sps:$4 sm:$0xff]  }
 0xb6d   :  { %7686 = vmatpush1.bf16.msra.mxu0 %v10179_v38  ;;  %v10268_v38 = vld [vmem:[#allocation18 + $0x68c] ss:$16 sps:$4 sm:$0xff]  }
 0xb6e   :  { %7850 = vmatpush1.bf16.msra.mxu1 %v10182_v4  ;;  %7687 = vmatprep.subr.bf16.mxu0 %v10187_v33  ;;  %v10263_v4 = vld [vmem:[#allocation18 + $0x680] ss:$16 sps:$4 sm:$0xff]   ;;  %v10266_v33 = vld [vmem:[#allocation18 + $0x688] ss:$16 sps:$4 sm:$0xff]  }
 0xb6f   :  { %7851 = vmatprep.subr.bf16.mxu1 %v10190_v40  ;;  %v10271_v40 = vld [vmem:[#allocation18 + $0x6a4] ss:$16 sps:$4 sm:$0xff]  }
 0xb71   :  { %7688 = vmatpush1.bf16.msra.mxu0 %v10185_v30  ;;  %v10274_v30 = vld [vmem:[#allocation18 + $0x6ac] ss:$16 sps:$4 sm:$0xff]  }
 0xb72   :  { %7852 = vmatpush1.bf16.msra.mxu1 %v10188_v41  ;;  %7689 = vmatprep.subr.bf16.mxu0 %v10193_v42  ;;  %v10269_v41 = vld [vmem:[#allocation18 + $0x6a0] ss:$16 sps:$4 sm:$0xff]   ;;  %v10272_v42 = vld [vmem:[#allocation18 + $0x6a8] ss:$16 sps:$4 sm:$0xff]  }
 0xb73   :  { %7853 = vmatprep.subr.bf16.mxu1 %v10196_v19  ;;  %v10277_v19 = vld [vmem:[#allocation18 + $0x6c4] ss:$16 sps:$4 sm:$0xff]  }
 0xb75   :  { %7690 = vmatpush1.bf16.msra.mxu0 %v10191_v43  ;;  %v10280_v43 = vld [vmem:[#allocation18 + $0x6cc] ss:$16 sps:$4 sm:$0xff]  }
 0xb76   :  { %7854 = vmatpush1.bf16.msra.mxu1 %v10194_v44  ;;  %7691 = vmatprep.subr.bf16.mxu0 %v10199_v9  ;;  %v10275_v44 = vld [vmem:[#allocation18 + $0x6c0] ss:$16 sps:$4 sm:$0xff]   ;;  %v10278_v9 = vld [vmem:[#allocation18 + $0x6c8] ss:$16 sps:$4 sm:$0xff]  }
 0xb77   :  { %7855 = vmatprep.subr.bf16.mxu1 %v10202_v17  ;;  %v10283_v17 = vld [vmem:[#allocation18 + $0x6e4] ss:$16 sps:$4 sm:$0xff]  }
 0xb79   :  { %7692 = vmatpush1.bf16.msra.mxu0 %v10197_v45  ;;  %v10286_v45 = vld [vmem:[#allocation18 + $0x6ec] ss:$16 sps:$4 sm:$0xff]  }
 0xb7a   :  { %7856 = vmatpush1.bf16.msra.mxu1 %v10200_v46  ;;  %7693 = vmatprep.subr.bf16.mxu0 %v10205_v47  ;;  %v10281_v46 = vld [vmem:[#allocation18 + $0x6e0] ss:$16 sps:$4 sm:$0xff]   ;;  %v10284_v47 = vld [vmem:[#allocation18 + $0x6e8] ss:$16 sps:$4 sm:$0xff]  }
 0xb7b   :  { %7857 = vmatprep.subr.bf16.mxu1 %v10208_v48  ;;  %v10289_v48 = vld [vmem:[#allocation18 + $0x704] ss:$16 sps:$4 sm:$0xff]  }
 0xb7d   :  { %7694 = vmatpush1.bf16.msra.mxu0 %v10203_v49  ;;  %v10292_v49 = vld [vmem:[#allocation18 + $0x70c] ss:$16 sps:$4 sm:$0xff]  }
 0xb7e   :  { %7858 = vmatpush1.bf16.msra.mxu1 %v10206_v50  ;;  %7695 = vmatprep.subr.bf16.mxu0 %v10211_v51  ;;  %v10287_v50 = vld [vmem:[#allocation18 + $0x700] ss:$16 sps:$4 sm:$0xff]   ;;  %v10290_v51 = vld [vmem:[#allocation18 + $0x708] ss:$16 sps:$4 sm:$0xff]  }
 0xb7f   :  { %7859 = vmatprep.subr.bf16.mxu1 %v10214_v52  ;;  %v10295_v52 = vld [vmem:[#allocation18 + $0x724] ss:$16 sps:$4 sm:$0xff]  }
 0xb81   :  { %7696 = vmatpush1.bf16.msra.mxu0 %v10209_v39  ;;  %v10298_v39 = vld [vmem:[#allocation18 + $0x72c] ss:$16 sps:$4 sm:$0xff]  }
 0xb82   :  { %7860 = vmatpush1.bf16.msra.mxu1 %v10212_v53  ;;  %7697 = vmatprep.subr.bf16.mxu0 %v10217_v56  ;;  %v10293_v53 = vld [vmem:[#allocation18 + $0x720] ss:$16 sps:$4 sm:$0xff]   ;;  %v10296_v56 = vld [vmem:[#allocation18 + $0x728] ss:$16 sps:$4 sm:$0xff]  }
 0xb83   :  { %7861 = vmatprep.subr.bf16.mxu1 %v10220_v62  ;;  %v10301_v62 = vld [vmem:[#allocation18 + $0x744] ss:$16 sps:$4 sm:$0xff]  }
 0xb85   :  { %7698 = vmatpush1.bf16.msra.mxu0 %v10215_v5  ;;  %v10304_v5 = vld [vmem:[#allocation18 + $0x74c] ss:$16 sps:$4 sm:$0xff]  }
 0xb86   :  { %7862 = vmatpush1.bf16.msra.mxu1 %v10218_v6  ;;  %7699 = vmatprep.subr.bf16.mxu0 %v10223_v7  ;;  %v10299_v6 = vld [vmem:[#allocation18 + $0x740] ss:$16 sps:$4 sm:$0xff]   ;;  %v10302_v7 = vld [vmem:[#allocation18 + $0x748] ss:$16 sps:$4 sm:$0xff]  }
 0xb87   :  { %7863 = vmatprep.subr.bf16.mxu1 %v10226_v8  ;;  %v10307_v8 = vld [vmem:[#allocation18 + $0x764] ss:$16 sps:$4 sm:$0xff]  }
 0xb89   :  { %7700 = vmatpush1.bf16.msra.mxu0 %v10221_v36  ;;  %v10310_v36 = vld [vmem:[#allocation18 + $0x76c] ss:$16 sps:$4 sm:$0xff]  }
 0xb8a   :  { %7864 = vmatpush1.bf16.msra.mxu1 %v10224_v11  ;;  %7701 = vmatprep.subr.bf16.mxu0 %v10229_v14  ;;  %v10305_v11 = vld [vmem:[#allocation18 + $0x760] ss:$16 sps:$4 sm:$0xff]   ;;  %v10308_v14 = vld [vmem:[#allocation18 + $0x768] ss:$16 sps:$4 sm:$0xff]  }
 0xb8b   :  { %7865 = vmatprep.subr.bf16.mxu1 %v10232_v12  ;;  %v10313_v12 = vld [vmem:[#allocation18 + $0x784] ss:$16 sps:$4 sm:$0xff]  }
 0xb8d   :  { %7702 = vmatpush1.bf16.msra.mxu0 %v10227_v63  ;;  %v10316_v63 = vld [vmem:[#allocation18 + $0x78c] ss:$16 sps:$4 sm:$0xff]  }
 0xb8e   :  { %7866 = vmatpush1.bf16.msra.mxu1 %v10230_v13  ;;  %7703 = vmatprep.subr.bf16.mxu0 %v10235_v15  ;;  %v10311_v13 = vld [vmem:[#allocation18 + $0x780] ss:$16 sps:$4 sm:$0xff]   ;;  %v10314_v15 = vld [vmem:[#allocation18 + $0x788] ss:$16 sps:$4 sm:$0xff]  }
 0xb8f   :  { %7867 = vmatprep.subr.bf16.mxu1 %v10238_v16  ;;  %v10319_v16 = vld [vmem:[#allocation18 + $0x7a4] ss:$16 sps:$4 sm:$0xff]  }
 0xb91   :  { %7704 = vmatpush1.bf16.msra.mxu0 %v10233_v37  ;;  %v10322_v37 = vld [vmem:[#allocation18 + $0x7ac] ss:$16 sps:$4 sm:$0xff]  }
 0xb92   :  { %7868 = vmatpush1.bf16.msra.mxu1 %v10236_v20  ;;  %7714 = vmatprep.subr.bf16.mxu0 %v10241_v21  ;;  %v10320_v20 = vld [vmem:[#allocation18 + $0x7a8] ss:$16 sps:$4 sm:$0xff]   ;;  %v10325_v21 = vld [vmem:[#allocation18 + $0x7c4] ss:$16 sps:$4 sm:$0xff]  }
 0xb93   :  { %7878 = vmatprep.subr.bf16.mxu1 %v10244_v58  ;;  %v10328_v58 = vld [vmem:[#allocation18 + $0x7cc] ss:$16 sps:$4 sm:$0xff]  }
 0xb94   :  { %7706 = vmatmul.mubr.bf16.vlgmr.msra.gmra.mrb[96].mxu0 %v6029_v25 }
 0xb95   :  { %7870 = vmatmul.mubr.bf16.vlgmr.msra.gmra.mrb[76].mxu1 %v6029_v25  ;;  %7715 = vmatpush1.bf16.msra.mxu0 %v10239_v23  ;;  %v10326_v23 = vld [vmem:[#allocation18 + $0x7c8] ss:$16 sps:$4 sm:$0xff]   ;;  %v10331_v25 = vld [vmem:[#allocation18 + $0x7e4] ss:$16 sps:$4 sm:$0xff]  }
 0xb96   :  { %7746 = vmatprep.mubr.bf16.mxu0 %v6032_v54  ;;  %7879 = vmatpush1.bf16.msra.mxu1 %v10242_v59  ;;  %v10334_v59 = vld [vmem:[#allocation18 + $0x7ec] ss:$16 sps:$4 sm:$0xff]  }
 0xb97   :  { %7910 = vmatprep.mubr.bf16.mxu1 %v6032_v54  ;;  %7716 = vmatprep.subr.bf16.mxu0 %v10247_v60  ;;  %v10329_v60 = vld [vmem:[#allocation18 + $0x7e0] ss:$16 sps:$4 sm:$0xff]   ;;  %v6023_v54 = vmax.f32 %v12316_v61, 0.0 }
 0xb98   :  { %7880 = vmatprep.subr.bf16.mxu1 %v10250_v10  ;;  %v10332_v10 = vld [vmem:[#allocation18 + $0x7e8] ss:$16 sps:$4 sm:$0xff]   ;;  %v10342_v61 = vld [vmem:[#allocation21 + $0x88] sm:$0xff]  }
 0xb99   :  { %7717 = vmatpush1.bf16.msra.mxu0 %v10245_v26  ;;  %v10335_v26 = vld [vmem:[#allocation21 + $0x40] sm:$0xff]  }
 0xb9a   :  { %7881 = vmatpush1.bf16.msra.mxu1 %v10248_v0  ;;  %7718 = vmatprep.subr.bf16.mxu0 %v10253_v28  ;;  %v10336_v0 = vld [vmem:[#allocation21 + $0xc0] sm:$0xff]  }
 0xb9b   :  { %7882 = vmatprep.subr.bf16.mxu1 %v10256_v1  ;;  %v10337_v28 = vld [vmem:[#allocation21] sm:$0xff]   ;;  %v6031_v1 = vpack.c.bf16 %v6023_v54, %v6023_v54 }
 0xb9d   :  { %7719 = vmatpush1.bf16.msra.mxu0 %v10251_v29  ;;  %v10338_v29 = vld [vmem:[#allocation21 + $0x80] sm:$0xff]  }
 0xb9e   :  { %7883 = vmatpush1.bf16.msra.mxu1 %v10254_v31  ;;  %7720 = vmatprep.subr.bf16.mxu0 %v10259_v2  ;;  %v10339_v31 = vld [vmem:[#allocation21 + $0x48] sm:$0xff]  }
 0xb9f   :  { %7884 = vmatprep.subr.bf16.mxu1 %v10262_v3  ;;  %v10340_v2 = vld [vmem:[#allocation21 + $0xc8] sm:$0xff]  }
 0xba0   :  { %v10341_v3 = vld [vmem:[#allocation21 + $0x8] sm:$0xff]  }
 0xba1   :  { %7721 = vmatpush1.bf16.msra.mxu0 %v10257_v32  ;;  %v10343_v32 = vld [vmem:[#allocation21 + $0x50] sm:$0xff]  }
 0xba2   :  { %7885 = vmatpush1.bf16.msra.mxu1 %v10260_v34  ;;  %7722 = vmatprep.subr.bf16.mxu0 %v10265_v35  ;;  %v10344_v34 = vld [vmem:[#allocation21 + $0xd0] sm:$0xff]  }
 0xba3   :  { %7886 = vmatprep.subr.bf16.mxu1 %v10268_v38  ;;  %v10345_v35 = vld [vmem:[#allocation21 + $0x10] sm:$0xff]  }
 0xba4   :  { %v10346_v38 = vld [vmem:[#allocation21 + $0x90] sm:$0xff]  }
 0xba5   :  { %7723 = vmatpush1.bf16.msra.mxu0 %v10263_v4  ;;  %v10347_v4 = vld [vmem:[#allocation21 + $0x58] sm:$0xff]  }
 0xba6   :  { %7887 = vmatpush1.bf16.msra.mxu1 %v10266_v33  ;;  %7724 = vmatprep.subr.bf16.mxu0 %v10271_v40  ;;  %v10348_v33 = vld [vmem:[#allocation21 + $0xd8] sm:$0xff]  }
 0xba7   :  { %7888 = vmatprep.subr.bf16.mxu1 %v10274_v30  ;;  %v10349_v40 = vld [vmem:[#allocation21 + $0x18] sm:$0xff]  }
 0xba8   :  { %v10350_v30 = vld [vmem:[#allocation21 + $0x98] sm:$0xff]  }
 0xba9   :  { %7725 = vmatpush1.bf16.msra.mxu0 %v10269_v41  ;;  %v10351_v41 = vld [vmem:[#allocation21 + $0x60] sm:$0xff]  }
 0xbaa   :  { %7889 = vmatpush1.bf16.msra.mxu1 %v10272_v42  ;;  %7726 = vmatprep.subr.bf16.mxu0 %v10277_v19  ;;  %v10352_v42 = vld [vmem:[#allocation21 + $0xe0] sm:$0xff]  }
 0xbab   :  { %7890 = vmatprep.subr.bf16.mxu1 %v10280_v43  ;;  %v10353_v19 = vld [vmem:[#allocation21 + $0x20] sm:$0xff]  }
 0xbac   :  { %v10354_v43 = vld [vmem:[#allocation21 + $0xa0] sm:$0xff]  }
 0xbad   :  { %7727 = vmatpush1.bf16.msra.mxu0 %v10275_v44  ;;  %v10355_v44 = vld [vmem:[#allocation21 + $0x68] sm:$0xff]  }
 0xbae   :  { %7891 = vmatpush1.bf16.msra.mxu1 %v10278_v9  ;;  %7728 = vmatprep.subr.bf16.mxu0 %v10283_v17  ;;  %v10356_v9 = vld [vmem:[#allocation21 + $0xe8] sm:$0xff]  }
 0xbaf   :  { %7892 = vmatprep.subr.bf16.mxu1 %v10286_v45  ;;  %v10357_v17 = vld [vmem:[#allocation21 + $0x28] sm:$0xff]  }
 0xbb0   :  { %v10358_v45 = vld [vmem:[#allocation21 + $0xa8] sm:$0xff]  }
 0xbb1   :  { %7729 = vmatpush1.bf16.msra.mxu0 %v10281_v46  ;;  %v10359_v46 = vld [vmem:[#allocation21 + $0x70] sm:$0xff]  }
 0xbb2   :  { %7893 = vmatpush1.bf16.msra.mxu1 %v10284_v47  ;;  %7730 = vmatprep.subr.bf16.mxu0 %v10289_v48  ;;  %v10360_v47 = vld [vmem:[#allocation21 + $0xf0] sm:$0xff]  }
 0xbb3   :  { %7894 = vmatprep.subr.bf16.mxu1 %v10292_v49  ;;  %v10361_v48 = vld [vmem:[#allocation21 + $0x30] sm:$0xff]  }
 0xbb4   :  { %v10362_v49 = vld [vmem:[#allocation21 + $0xb0] sm:$0xff]  }
 0xbb5   :  { %7731 = vmatpush1.bf16.msra.mxu0 %v10287_v50  ;;  %v10363_v50 = vld [vmem:[#allocation21 + $0x78] sm:$0xff]  }
 0xbb6   :  { %7895 = vmatpush1.bf16.msra.mxu1 %v10290_v51  ;;  %7732 = vmatprep.subr.bf16.mxu0 %v10295_v52  ;;  %v10364_v51 = vld [vmem:[#allocation21 + $0xf8] sm:$0xff]  }
 0xbb7   :  { %7896 = vmatprep.subr.bf16.mxu1 %v10298_v39  ;;  %v10365_v52 = vld [vmem:[#allocation21 + $0x38] sm:$0xff]  }
 0xbb8   :  { %v10366_v39 = vld [vmem:[#allocation21 + $0xb8] sm:$0xff]  }
 0xbb9   :  { %7733 = vmatpush1.bf16.msra.mxu0 %v10293_v53  ;;  %v6289_v53 = vld [vmem:[#allocation19] sm:$0xf] }
 0xbba   :  { %7897 = vmatpush1.bf16.msra.mxu1 %v10296_v56  ;;  %7734 = vmatprep.subr.bf16.mxu0 %v10301_v62  ;;  %v6294_v56 = vrot.slane %v6289_v53, %v11234_v55  ;;  %v6302_v62 = vrot.slane %v6289_v53, %v11459_v18 }
 0xbbb   :  { %7898 = vmatprep.subr.bf16.mxu1 %v10304_v5  ;;  %v6298_v5 = vrot.slane %v6289_v53, %v11237_v57 }
 0xbbd   :  { %7735 = vmatpush1.bf16.msra.mxu0 %v10299_v6  ;;  %v6306_v6 = vrot.slane %v6289_v53, %v11462_v24 }
 0xbbe   :  { %7899 = vmatpush1.bf16.msra.mxu1 %v10302_v7  ;;  %7736 = vmatprep.subr.bf16.mxu0 %v10307_v8 }
 0xbbf   :  { %7900 = vmatprep.subr.bf16.mxu1 %v10310_v36 }
 0xbc1   :  { %7737 = vmatpush1.bf16.msra.mxu0 %v10305_v11 }
 0xbc2   :  { %7901 = vmatpush1.bf16.msra.mxu1 %v10308_v14  ;;  %7738 = vmatprep.subr.bf16.mxu0 %v10313_v12 }
 0xbc3   :  { %7902 = vmatprep.subr.bf16.mxu1 %v10316_v63 }
 0xbc5   :  { %7739 = vmatpush1.bf16.msra.mxu0 %v10311_v13 }
 0xbc6   :  { %7903 = vmatpush1.bf16.msra.mxu1 %v10314_v15  ;;  %7740 = vmatprep.subr.bf16.mxu0 %v10319_v16 }
 0xbc7   :  { %7904 = vmatprep.subr.bf16.mxu1 %v10322_v37 }
 0xbc9   :  { %7741 = vmatpush1.bf16.msra.mxu0 %v10317_v27 }
 0xbca   :  { %7905 = vmatpush1.bf16.msra.mxu1 %v10320_v20  ;;  %7742 = vmatprep.subr.bf16.mxu0 %v10325_v21 }
 0xbcb   :  { %7906 = vmatprep.subr.bf16.mxu1 %v10328_v58 }
 0xbcd   :  { %7743 = vmatpush1.bf16.msra.mxu0 %v10323_v22 }
 0xbce   :  { %7907 = vmatpush1.bf16.msra.mxu1 %v10326_v23  ;;  %7744 = vmatprep.subr.bf16.mxu0 %v10331_v25 }
 0xbcf   :  { %7908 = vmatprep.subr.bf16.mxu1 %v10334_v59  ;;  %v9148_v59 = vld [vmem:[#allocation22] ss:$0 sm:$0xff] }
 0xbd1   :  { %7745 = vmatpush1.bf16.msra.mxu0 %v10329_v60 }
 0xbd2   :  { %7909 = vmatpush1.bf16.msra.mxu1 %v10332_v10  ;;  %9374 = vmatprep.subr.bf16.mxu0 %v10335_v26 }
 0xbd3   :  { %9396 = vmatprep.subr.bf16.mxu1 %v10336_v0 }
 0xbd4   :  { %7747 = vmatmul.mubr.bf16.vlgmr.msra.gmra.mrb[96].mxu0 %v6031_v1 }
 0xbd5   :  { %7911 = vmatmul.mubr.bf16.vlgmr.msra.gmra.mrb[76].mxu1 %v6031_v1  ;;  %9375 = vmatpush3.bf16.msra.mxu0 %v10337_v28 }
 0xbd6   :  { %9397 = vmatpush3.bf16.msra.mxu1 %v10338_v29  ;;  %9376 = vmatprep.subr.bf16.mxu0 %v10339_v31 }
 0xbd7   :  { %9398 = vmatprep.subr.bf16.mxu1 %v10340_v2 }
 0xbd9   :  { %9377 = vmatpush3.bf16.msra.mxu0 %v10341_v3 }
 0xbda   :  { %9399 = vmatpush3.bf16.msra.mxu1 %v10342_v61  ;;  %9378 = vmatprep.subr.bf16.mxu0 %v10343_v32 }
 0xbdb   :  { %9400 = vmatprep.subr.bf16.mxu1 %v10344_v34 }
 0xbdd   :  { %9379 = vmatpush3.bf16.msra.mxu0 %v10345_v35 }
 0xbde   :  { %9401 = vmatpush3.bf16.msra.mxu1 %v10346_v38  ;;  %9380 = vmatprep.subr.bf16.mxu0 %v10347_v4 }
 0xbdf   :  { %9402 = vmatprep.subr.bf16.mxu1 %v10348_v33 }
 0xbe1   :  { %9381 = vmatpush3.bf16.msra.mxu0 %v10349_v40 }
 0xbe2   :  { %9403 = vmatpush3.bf16.msra.mxu1 %v10350_v30  ;;  %9382 = vmatprep.subr.bf16.mxu0 %v10351_v41 }
 0xbe3   :  { %9404 = vmatprep.subr.bf16.mxu1 %v10352_v42 }
 0xbe5   :  { %9383 = vmatpush3.bf16.msra.mxu0 %v10353_v19 }
 0xbe6   :  { %9405 = vmatpush3.bf16.msra.mxu1 %v10354_v43  ;;  %9384 = vmatprep.subr.bf16.mxu0 %v10355_v44 }
 0xbe7   :  { %9406 = vmatprep.subr.bf16.mxu1 %v10356_v9 }
 0xbe9   :  { %9385 = vmatpush3.bf16.msra.mxu0 %v10357_v17 }
 0xbea   :  { %9407 = vmatpush3.bf16.msra.mxu1 %v10358_v45  ;;  %9386 = vmatprep.subr.bf16.mxu0 %v10359_v46 }
 0xbeb   :  { %9408 = vmatprep.subr.bf16.mxu1 %v10360_v47 }
 0xbed   :  { %9387 = vmatpush3.bf16.msra.mxu0 %v10361_v48 }
 0xbee   :  { %9409 = vmatpush3.bf16.msra.mxu1 %v10362_v49  ;;  %9388 = vmatprep.subr.bf16.mxu0 %v10363_v50 }
 0xbef   :  { %9410 = vmatprep.subr.bf16.mxu1 %v10364_v51 }
 0xbf1   :  { %9389 = vmatpush3.bf16.msra.mxu0 %v10365_v52 }
 0xbf2   :  { %9411 = vmatpush3.bf16.msra.mxu1 %v10366_v39 }
 0xca7   :  { %v7748_v7 = vpop.f32.mrb[96].mxu0 }
 0xca8   :  { %v9474_v8 = vadd.f32 %v7748_v7, %v6294_v56  ;;  %v7912_v36 = vpop.f32.mrb[76].mxu1  ;;  %v7750_v11 = vpop.f32.mrb[97].mxu0 }
 0xca9   :  { %v9476_v14 = vadd.f32 %v7912_v36, %v6302_v62  ;;  %v9475_v12 = vadd.f32 %v7750_v11, %v6298_v5  ;;  %v7914_v63 = vpop.f32.mrb[77].mxu1  ;;  %v7752_v13 = vpop.f32.mrb[98].mxu0 }
 0xcaa   :  { %v7919_v15 = vmax.f32 %v9474_v8, 0.0  ;;  %v9477_v16 = vadd.f32 %v7914_v63, %v6306_v6  ;;  %v7916_v37 = vpop.f32.mrb[78].mxu1  ;;  %v7753_v27 = vpop.f32.mrb[99].mxu0 }
 0xcab   :  { %v7921_v20 = vmax.f32 %v9476_v14, 0.0  ;;  %v7920_v55 = vmax.f32 %v9475_v12, 0.0  ;;  %v7917_v21 = vpop.f32.mrb[79].mxu1 }
 0xcac   :  { %v7922_v18 = vmax.f32 %v9477_v16, 0.0  ;;  %v7923_v57 = vpack.c.bf16 %v7919_v15, %v7919_v15 }
 0xcad   :  { %v7924_v58 = vpack.c.bf16 %v7920_v55, %v7920_v55  ;;  %v7925_v24 = vpack.c.bf16 %v7921_v20, %v7921_v20 }
 0xcae   :  { %v7926_v22 = vpack.c.bf16 %v7922_v18, %v7922_v18 }
 0xcaf   :  { %8222 = vmatprep.mubr.bf16.mxu0 %v7924_v58 }
 0xcb0   :  { %8262 = vmatprep.mubr.bf16.mxu1 %v7926_v22  ;;  %8223 = vmatmul.mubr.bf16.vlgmr.msra.gmra.mrb[100].mxu0 %v7923_v57 }
 0xcb1   :  { %8263 = vmatmul.mubr.bf16.vlgmr.msra.gmra.mrb[80].mxu1 %v7925_v24 }
 0xd83   :  { %v9390_v23 = vpop.f32.mrb[100].mxu0 }
 0xd84   :  { %v9412_v25 = vpop.f32.mrb[80].mxu1  ;;  %v9391_v60 = vpop.f32.mrb[101].mxu0 }
 0xd85   :  { %v9392_v54 = vadd.f32 %v9391_v60, %v9390_v23  ;;  %v9413_v10 = vpop.f32.mrb[81].mxu1  ;;  %v9393_v26 = vpop.f32.mrb[102].mxu0 }
 0xd86   :  { %v9414_v0 = vadd.f32 %v9413_v10, %v9412_v25  ;;  %v9415_v28 = vpop.f32.mrb[82].mxu1  ;;  %v9394_v1 = vpop.f32.mrb[103].mxu0 }
 0xd87   :  { %v8225_v29 = vadd.f32 %v9392_v54, %v9148_v59  ;;  %v9416_v31 = vpop.f32.mrb[83].mxu1 }
 0xd89   :  { %v8265_v2 = vadd.f32 %v9414_v0, %v8225_v29 }
 0xd8b   :  { %8270 = vst [vmem:[%s12355_s21] sm:$0xff] %v8265_v2 }
 0xd8c   :  { %8275 = vsyncpa [#allocation3], 1 }
 0xd8d   :  { %8276 = vsyncpa [#allocation5], 1 }
 0xd8e   :  { %8277 = vsyncpa [#allocation8], 1 }
 0xd8f   :  { %8278 = vsyncpa [#allocation11], 1 }
 0xd90   :  { %8279 = vsyncpa [#allocation14], 1 }
 0xd91   :  { %8280 = vsyncpa [#allocation17], 1 }
 0xd92   :  { %8281 = vsyncpa [#allocation20], 1 }
 0xd93   :  { %8282 = vsyncpa [#allocation23], 1 }

</bundles_post_ra>
